<compile_context>
chip_gen: v5e
topology: v5e:2x2
jax: 0.10.0
libtpu: 0.0.40
codegen_flags: <defaults>
</compile_context>

<pallas_src>
import math

import jax
import jax.numpy as jnp
from jax.experimental import pallas as pl
from jax.experimental.pallas import tpu as pltpu

EPS = 1e-5
_VMEM_LIMIT_BYTES = 48 * 1024 * 1024   # < 64 MiB physical on v7x; > 16/32 MiB defaults


def _choose_row_tile(N, H, W, C, use_im2col):
    """Pick a row tile TH (divisor of H).

    Blocks are sized to be big enough to amortize per-grid-step overhead but small
    enough that double-buffered blocks + in-kernel window/patch temporaries + bf16
    weights fit the 48 MiB scoped-VMEM budget (v7x has only 64 MiB physical VMEM).
    """
    row_bytes = W * C * 4
    if use_im2col:
        # im2col materializes a ~9x patch matrix per block -> keep blocks modest.
        target = 512 * 1024
    else:
        weight_bytes = 2 * 9 * C * C * 2            # double-buffered bf16 weights
        target = min(2 * 1024 * 1024,
                     max(256 * 1024, (40 * 1024 * 1024 - weight_bytes) // 8))
    divisors = [d for d in range(1, H + 1) if H % d == 0]
    fitting = [d for d in divisors if d * row_bytes <= target]
    th = max(fitting) if fitting else 1
    # v7x megacore: prefer >=16 total grid steps, but never shrink blocks below 128 KiB.
    smaller = [d for d in divisors
               if d <= th and d * row_bytes >= 128 * 1024 and N * (H // d) >= 16]
    if smaller:
        th = min(smaller)
    return th


def _make_conv_stats_kernel(TH, W, Cin, Cout, T, apply_affine, use_im2col):
    """(optional BN-affine + ReLU on the input) -> 3x3 'same' conv on the MXU (bf16
    operands, f32 accumulation) -> write conv tile + per-tile (sum, sumsq) channel stats."""

    def kernel(*refs):
        if apply_affine:
            prev_ref, cur_ref, next_ref, scale_ref, bias_ref, w_ref, out_ref, stats_ref = refs
        else:
            prev_ref, cur_ref, next_ref, w_ref, out_ref, stats_ref = refs
        i = pl.program_id(1)

        if apply_affine:
            scale = scale_ref[...].reshape(1, 1, Cin)
            bias = bias_ref[...].reshape(1, 1, Cin)

            def transform(v):
                return jnp.maximum(v.astype(jnp.float32) * scale + bias, 0.0)
        else:
            def transform(v):
                return v.astype(jnp.float32)

        # Single-row halos (clamped at the array edge by the index maps).  Mask them to
        # zero here -> zero padding of the conv input, applied AFTER affine + ReLU.
        top = transform(prev_ref[0]) * (i > 0).astype(jnp.float32)          # (1, W, Cin)
        mid = transform(cur_ref[0])                                          # (TH, W, Cin)
        bot = transform(next_ref[0]) * (i < T - 1).astype(jnp.float32)       # (1, W, Cin)
        win = jnp.concatenate([top, mid, bot], axis=0)                       # (TH+2, W, Cin)

        zcol = jnp.zeros((TH + 2, 1, Cin), jnp.float32)
        win = jnp.concatenate([zcol, win, zcol], axis=1)                     # (TH+2, W+2, Cin)

        if use_im2col:
            # Small Cin: one (TH*W, 9*Cin) x (9*Cin, Cout) MXU matmul.
            cols = []
            for kh in range(3):
                for kw in range(3):
                    cols.append(win[kh:kh + TH, kw:kw + W, :].reshape(TH * W, Cin))
            patches = jnp.concatenate(cols, axis=1).astype(jnp.bfloat16)
            acc = jnp.dot(patches, w_ref[...], preferred_element_type=jnp.float32)
        else:
            # Large Cin: never materialize the 9x patch matrix -- accumulate 9 matmuls.
            acc = jnp.zeros((TH * W, Cout), jnp.float32)
            for kh in range(3):
                for kw in range(3):
                    k = kh * 3 + kw
                    sl = win[kh:kh + TH, kw:kw + W, :].reshape(TH * W, Cin)
                    acc = acc + jnp.dot(sl.astype(jnp.bfloat16),
                                        w_ref[k * Cin:(k + 1) * Cin, :],
                                        preferred_element_type=jnp.float32)

        out_ref[...] = acc.reshape(1, TH, W, Cout).astype(out_ref.dtype)

        ssum = jnp.sum(acc, axis=0, keepdims=True)
        ssq = jnp.sum(acc * acc, axis=0, keepdims=True)
        stats_ref[...] = jnp.concatenate([ssum, ssq], axis=0).reshape(1, 1, 2, Cout)

    return kernel


def _conv_stats_stage(x, w_k, TH, scale=None, bias=None, out_dtype=jnp.float32):
    """One conv stage: returns (conv output (N,H,W,Cout), per-tile stats (N,T,2,Cout))."""
    N, H, W, Cin = x.shape
    Cout = w_k.shape[1]
    T = H // TH
    grid = (N, T)
    use_im2col = Cin < 128

    cur_map = lambda n, i: (n, i, 0, 0)
    # Single-row halo specs: block (1, 1, W, Cin), index map returns the ROW index
    # (block size 1 along H), clamped to the image edge; masked in-kernel.
    prev_map = lambda n, i: (n, jnp.maximum(i * TH - 1, 0), 0, 0)
    next_map = lambda n, i: (n, jnp.minimum((i + 1) * TH, H - 1), 0, 0)

    in_specs = [pl.BlockSpec((1, 1, W, Cin), prev_map),
                pl.BlockSpec((1, TH, W, Cin), cur_map),
                pl.BlockSpec((1, 1, W, Cin), next_map)]
    args = [x, x, x]
    if scale is not None:
        in_specs += [pl.BlockSpec((1, Cin), lambda n, i: (0, 0))] * 2
        args += [scale.reshape(1, Cin), bias.reshape(1, Cin)]
    in_specs.append(pl.BlockSpec((9 * Cin, Cout), lambda n, i: (0, 0)))
    args.append(w_k)

    out_shape = (jax.ShapeDtypeStruct((N, H, W, Cout), out_dtype),
                 jax.ShapeDtypeStruct((N, T, 2, Cout), jnp.float32))
    out_specs = (pl.BlockSpec((1, TH, W, Cout), cur_map),
                 pl.BlockSpec((1, 1, 2, Cout), lambda n, i: (n, i, 0, 0)))

    kernel = _make_conv_stats_kernel(TH, W, Cin, Cout, T,
                                     apply_affine=scale is not None,
                                     use_im2col=use_im2col)
    return pl.pallas_call(
        kernel,
        grid=grid,
        in_specs=in_specs,
        out_specs=out_specs,
        out_shape=out_shape,
        compiler_params=pltpu.CompilerParams(
            dimension_semantics=("parallel", "parallel"),
            vmem_limit_bytes=_VMEM_LIMIT_BYTES),
    )(*args)


def _bn_fold(stats, gamma, beta, count):
    """Fold per-tile (sum, sumsq) into per-channel BN scale/bias (training-mode stats)."""
    s = jnp.sum(stats[:, :, 0, :], axis=(0, 1))
    ss = jnp.sum(stats[:, :, 1, :], axis=(0, 1))
    mean = s / count
    var = jnp.maximum(ss / count - mean * mean, 0.0)   # biased variance
    scale = gamma * jax.lax.rsqrt(var + EPS)
    bias = beta - mean * scale
    return scale, bias


def _bn_residual_kernel(y_ref, res_ref, scale_ref, bias_ref, out_ref):
    C = out_ref.shape[-1]
    scale = scale_ref[...].reshape(1, 1, 1, C)
    bias = bias_ref[...].reshape(1, 1, 1, C)
    out_ref[...] = (y_ref[...].astype(jnp.float32) * scale + bias
                    + res_ref[...].astype(jnp.float32))


def _bn_residual_stage(y, res, scale, bias, TH):
    N, H, W, C = y.shape
    T = H // TH
    blk = pl.BlockSpec((1, TH, W, C), lambda n, i: (n, i, 0, 0))
    sb = pl.BlockSpec((1, C), lambda n, i: (0, 0))
    return pl.pallas_call(
        _bn_residual_kernel,
        grid=(N, T),
        in_specs=[blk, blk, sb, sb],
        out_specs=blk,
        out_shape=jax.ShapeDtypeStruct((N, H, W, C), jnp.float32),
        input_output_aliases={0: 0},   # reuse y2's HBM buffer for the output
        compiler_params=pltpu.CompilerParams(
            dimension_semantics=("parallel", "parallel"),
            vmem_limit_bytes=_VMEM_LIMIT_BYTES),
    )(y, res, scale.reshape(1, C), bias.reshape(1, C))


def residual_block_forward(x_nchw, params, *, conv1_out_dtype=jnp.float32):
    """ResidualBlock forward. x_nchw: (N, Cin, H, W) float32 (PyTorch NCHW layout).

    conv1_out_dtype: set to jnp.bfloat16 on v5e to halve the conv1->conv2 HBM round trip
    (BN stats stay f32 either way).
    """
    x = jnp.transpose(x_nchw, (0, 2, 3, 1)).astype(jnp.float32)   # -> NHWC (C on lanes)
    N, H, W, Cin = x.shape
    w1, w2 = params["w1"], params["w2"]                           # (Cout, Cin, 3, 3)
    Cout = w1.shape[0]
    assert Cin == Cout, "downsample=None requires in_channels == out_channels"
    TH = _choose_row_tile(N, H, W, Cin, use_im2col=Cin < 128)

    # (Cout, Cin, kh, kw) -> (kh, kw, Cin, Cout) -> (9*Cin, Cout), bf16 for the MXU.
    w1k = jnp.transpose(w1, (2, 3, 1, 0)).reshape(9 * Cin, Cout).astype(jnp.bfloat16)
    w2k = jnp.transpose(w2, (2, 3, 1, 0)).reshape(9 * Cout, Cout).astype(jnp.bfloat16)

    # Stage 1: conv1 raw output + per-tile BN1 stats.
    y1, st1 = _conv_stats_stage(x, w1k, TH, out_dtype=conv1_out_dtype)
    scale1, bias1 = _bn_fold(st1, params["gamma1"], params["beta1"], N * H * W)

    # Stage 2: BN1 affine + ReLU fused on the fly, conv2 raw output + per-tile BN2 stats.
    y2, st2 = _conv_stats_stage(y1, w2k, TH, scale=scale1, bias=bias1,
                                out_dtype=jnp.float32)
    scale2, bias2 = _bn_fold(st2, params["gamma2"], params["beta2"], N * H * W)

    # Stage 3: BN2 affine + residual add (output aliases y2's buffer).
    out = _bn_residual_stage(y2, x, scale2, bias2, TH)
    return jnp.transpose(out, (0, 3, 1, 2))                       # back to NCHW


def residual_block_reference(x_nchw, params):
    """Pure-JAX reference matching the PyTorch module (training-mode BN)."""
    x = jnp.transpose(x_nchw, (0, 2, 3, 1)).astype(jnp.float32)

    def conv(v, w):
        return jax.lax.conv_general_dilated(
            v, jnp.transpose(w, (2, 3, 1, 0)), window_strides=(1, 1),
            padding=((1, 1), (1, 1)),
            dimension_numbers=("NHWC", "HWIO", "NHWC"),
            precision=jax.lax.Precision.HIGHEST)

    def bn(v, g, b):
        mean = jnp.mean(v, axis=(0, 1, 2))
        var = jnp.mean((v - mean) ** 2, axis=(0, 1, 2))
        return (v - mean) * jax.lax.rsqrt(var + EPS) * g + b

    h = jax.nn.relu(bn(conv(x, params["w1"]), params["gamma1"], params["beta1"]))
    h = bn(conv(h, params["w2"]), params["gamma2"], params["beta2"])
    return jnp.transpose(h + x, (0, 3, 1, 2))


def init_params(key, in_channels, out_channels):
    """Params matching ResidualBlock.__init__ shapes / xavier_normal_(gain=sqrt(2)) init."""
    k1, k2 = jax.random.split(key)
    fan1 = in_channels * 9 + out_channels * 9
    fan2 = out_channels * 9 + out_channels * 9
    std1 = math.sqrt(2.0) * math.sqrt(2.0 / fan1)
    std2 = math.sqrt(2.0) * math.sqrt(2.0 / fan2)
    w1 = std1 * jax.random.normal(k1, (out_channels, in_channels, 3, 3), jnp.float32)
    w2 = std2 * jax.random.normal(k2, (out_channels, out_channels, 3, 3), jnp.float32)
    return {
        "w1": w1,
        "w2": w2,
        "gamma1": jnp.ones((out_channels,), jnp.float32),
        "beta1": jnp.zeros((out_channels,), jnp.float32),
        "gamma2": jnp.ones((out_channels,), jnp.float32),
        "beta2": jnp.zeros((out_channels,), jnp.float32),
    }


if __name__ == "__main__":
    key = jax.random.PRNGKey(0)
    kx, kp = jax.random.split(key)

    N, C, H, W = 2, 8, 16, 16   # in_channels == out_channels, downsample=None
    x = jax.random.normal(kx, (N, C, H, W), jnp.float32)
    params = init_params(kp, C, C)

    fwd = jax.jit(residual_block_forward)
    out = jax.block_until_ready(fwd(x, params))
    assert out.shape == (N, C, H, W)

    ref = jax.block_until_ready(residual_block_reference(x, params))
    max_err = float(jnp.max(jnp.abs(out - ref)))
    assert bool(jnp.all(jnp.isfinite(out))), "non-finite output"
    assert max_err < 5e-2, f"mismatch vs reference: max abs err = {max_err}"

    print("KERNEL_OK")
</pallas_src>

<mosaic_0001>
module attributes {stable_mosaic.version = 11 : i64} {
  func.func @kernel(%arg0: i32, %arg1: i32, %arg2: memref<1x1x16x8xf32, #tpu.memory_space<vmem>>, %arg3: memref<1x16x16x8xf32, #tpu.memory_space<vmem>>, %arg4: memref<1x1x16x8xf32, #tpu.memory_space<vmem>>, %arg5: memref<1x8xf32, #tpu.memory_space<vmem>>, %arg6: memref<1x8xf32, #tpu.memory_space<vmem>>, %arg7: memref<72x8xbf16, #tpu.memory_space<vmem>>, %arg8: memref<1x16x16x8xf32, #tpu.memory_space<vmem>>, %arg9: memref<1x1x2x8xf32, #tpu.memory_space<vmem>>) attributes {dimension_semantics = [#tpu.dimension_semantics<parallel>, #tpu.dimension_semantics<parallel>], iteration_bounds = array<i64: 2, 1>, scalar_prefetch = 0 : i64, scratch_operands = 0 : i64, tpu.core_type = #tpu.core_type<tc>, window_params = [{transform_indices = @transform_0, window_bounds = array<i64: 1, 1, 16, 8>}, {transform_indices = @transform_1, window_bounds = array<i64: 1, 16, 16, 8>}, {transform_indices = @transform_2, window_bounds = array<i64: 1, 1, 16, 8>}, {pipeline_mode = #tpu.pipeline_mode<synchronous>, transform_indices = @transform_3, window_bounds = array<i64: 1, 8>}, {pipeline_mode = #tpu.pipeline_mode<synchronous>, transform_indices = @transform_4, window_bounds = array<i64: 1, 8>}, {pipeline_mode = #tpu.pipeline_mode<synchronous>, transform_indices = @transform_5, window_bounds = array<i64: 72, 8>}, {transform_indices = @transform_6, window_bounds = array<i64: 1, 16, 16, 8>}, {transform_indices = @transform_7, window_bounds = array<i64: 1, 1, 2, 8>}]} {
    %c0 = arith.constant 0 : index
    %c0_0 = arith.constant 0 : index
    %0 = vector.load %arg5[%c0, %c0_0] : memref<1x8xf32, #tpu.memory_space<vmem>>, vector<1x8xf32>
    %1 = vector.shape_cast %0 : vector<1x8xf32> to vector<1x1x8xf32>
    %c0_1 = arith.constant 0 : index
    %c0_2 = arith.constant 0 : index
    %2 = vector.load %arg6[%c0_1, %c0_2] : memref<1x8xf32, #tpu.memory_space<vmem>>, vector<1x8xf32>
    %3 = vector.shape_cast %2 : vector<1x8xf32> to vector<1x1x8xf32>
    %c0_3 = arith.constant 0 : index
    %c0_4 = arith.constant 0 : index
    %c0_5 = arith.constant 0 : index
    %c0_6 = arith.constant 0 : index
    %4 = vector.load %arg2[%c0_3, %c0_4, %c0_5, %c0_6] : memref<1x1x16x8xf32, #tpu.memory_space<vmem>>, vector<1x1x16x8xf32>
    %5 = vector.shape_cast %4 : vector<1x1x16x8xf32> to vector<1x16x8xf32>
    %6 = vector.broadcast %1 : vector<1x1x8xf32> to vector<1x16x8xf32>
    %7 = arith.mulf %5, %6 : vector<1x16x8xf32>
    %8 = vector.broadcast %3 : vector<1x1x8xf32> to vector<1x16x8xf32>
    %9 = arith.addf %7, %8 : vector<1x16x8xf32>
    %cst = arith.constant 0.000000e+00 : f32
    %10 = vector.broadcast %cst : f32 to vector<1x16x8xf32>
    %11 = arith.maximumf %9, %10 : vector<1x16x8xf32>
    %c0_i32 = arith.constant 0 : i32
    %12 = arith.cmpi sgt, %arg1, %c0_i32 : i32
    %13 = arith.extui %12 : i1 to i32
    %14 = arith.sitofp %13 : i32 to f32
    %15 = vector.broadcast %14 : f32 to vector<1x16x8xf32>
    %16 = arith.mulf %11, %15 : vector<1x16x8xf32>
    %c0_7 = arith.constant 0 : index
    %c0_8 = arith.constant 0 : index
    %c0_9 = arith.constant 0 : index
    %c0_10 = arith.constant 0 : index
    %17 = vector.load %arg3[%c0_7, %c0_8, %c0_9, %c0_10] : memref<1x16x16x8xf32, #tpu.memory_space<vmem>>, vector<1x16x16x8xf32>
    %18 = vector.shape_cast %17 : vector<1x16x16x8xf32> to vector<16x16x8xf32>
    %19 = vector.broadcast %1 : vector<1x1x8xf32> to vector<16x16x8xf32>
    %20 = arith.mulf %18, %19 : vector<16x16x8xf32>
    %21 = vector.broadcast %3 : vector<1x1x8xf32> to vector<16x16x8xf32>
    %22 = arith.addf %20, %21 : vector<16x16x8xf32>
    %cst_11 = arith.constant 0.000000e+00 : f32
    %23 = vector.broadcast %cst_11 : f32 to vector<16x16x8xf32>
    %24 = arith.maximumf %22, %23 : vector<16x16x8xf32>
    %c0_12 = arith.constant 0 : index
    %c0_13 = arith.constant 0 : index
    %c0_14 = arith.constant 0 : index
    %c0_15 = arith.constant 0 : index
    %25 = vector.load %arg4[%c0_12, %c0_13, %c0_14, %c0_15] : memref<1x1x16x8xf32, #tpu.memory_space<vmem>>, vector<1x1x16x8xf32>
    %26 = vector.shape_cast %25 : vector<1x1x16x8xf32> to vector<1x16x8xf32>
    %27 = vector.broadcast %1 : vector<1x1x8xf32> to vector<1x16x8xf32>
    %28 = arith.mulf %26, %27 : vector<1x16x8xf32>
    %29 = vector.broadcast %3 : vector<1x1x8xf32> to vector<1x16x8xf32>
    %30 = arith.addf %28, %29 : vector<1x16x8xf32>
    %cst_16 = arith.constant 0.000000e+00 : f32
    %31 = vector.broadcast %cst_16 : f32 to vector<1x16x8xf32>
    %32 = arith.maximumf %30, %31 : vector<1x16x8xf32>
    %c0_i32_17 = arith.constant 0 : i32
    %33 = arith.cmpi slt, %arg1, %c0_i32_17 : i32
    %34 = arith.extui %33 : i1 to i32
    %35 = arith.sitofp %34 : i32 to f32
    %36 = vector.broadcast %35 : f32 to vector<1x16x8xf32>
    %37 = arith.mulf %32, %36 : vector<1x16x8xf32>
    %38 = tpu.concatenate %16, %24, %37 in 0 : vector<1x16x8xf32>, vector<16x16x8xf32>, vector<1x16x8xf32> -> vector<18x16x8xf32>
    %cst_18 = arith.constant 0.000000e+00 : f32
    %39 = vector.broadcast %cst_18 : f32 to vector<18x1x8xf32>
    %40 = tpu.concatenate %39, %38, %39 in 1 : vector<18x1x8xf32>, vector<18x16x8xf32>, vector<18x1x8xf32> -> vector<18x18x8xf32>
    %41 = vector.extract_strided_slice %40 {offsets = [0, 0, 0], sizes = [16, 16, 8], strides = [1, 1, 1]} : vector<18x18x8xf32> to vector<16x16x8xf32>
    %42 = vector.shape_cast %41 : vector<16x16x8xf32> to vector<256x8xf32>
    %43 = vector.extract_strided_slice %40 {offsets = [0, 1, 0], sizes = [16, 16, 8], strides = [1, 1, 1]} : vector<18x18x8xf32> to vector<16x16x8xf32>
    %44 = vector.shape_cast %43 : vector<16x16x8xf32> to vector<256x8xf32>
    %45 = vector.extract_strided_slice %40 {offsets = [0, 2, 0], sizes = [16, 16, 8], strides = [1, 1, 1]} : vector<18x18x8xf32> to vector<16x16x8xf32>
    %46 = vector.shape_cast %45 : vector<16x16x8xf32> to vector<256x8xf32>
    %47 = vector.extract_strided_slice %40 {offsets = [1, 0, 0], sizes = [16, 16, 8], strides = [1, 1, 1]} : vector<18x18x8xf32> to vector<16x16x8xf32>
    %48 = vector.shape_cast %47 : vector<16x16x8xf32> to vector<256x8xf32>
    %49 = vector.extract_strided_slice %40 {offsets = [1, 1, 0], sizes = [16, 16, 8], strides = [1, 1, 1]} : vector<18x18x8xf32> to vector<16x16x8xf32>
    %50 = vector.shape_cast %49 : vector<16x16x8xf32> to vector<256x8xf32>
    %51 = vector.extract_strided_slice %40 {offsets = [1, 2, 0], sizes = [16, 16, 8], strides = [1, 1, 1]} : vector<18x18x8xf32> to vector<16x16x8xf32>
    %52 = vector.shape_cast %51 : vector<16x16x8xf32> to vector<256x8xf32>
    %53 = vector.extract_strided_slice %40 {offsets = [2, 0, 0], sizes = [16, 16, 8], strides = [1, 1, 1]} : vector<18x18x8xf32> to vector<16x16x8xf32>
    %54 = vector.shape_cast %53 : vector<16x16x8xf32> to vector<256x8xf32>
    %55 = vector.extract_strided_slice %40 {offsets = [2, 1, 0], sizes = [16, 16, 8], strides = [1, 1, 1]} : vector<18x18x8xf32> to vector<16x16x8xf32>
    %56 = vector.shape_cast %55 : vector<16x16x8xf32> to vector<256x8xf32>
    %57 = vector.extract_strided_slice %40 {offsets = [2, 2, 0], sizes = [16, 16, 8], strides = [1, 1, 1]} : vector<18x18x8xf32> to vector<16x16x8xf32>
    %58 = vector.shape_cast %57 : vector<16x16x8xf32> to vector<256x8xf32>
    %59 = tpu.concatenate %42, %44, %46, %48, %50, %52, %54, %56, %58 in 1 : vector<256x8xf32>, vector<256x8xf32>, vector<256x8xf32>, vector<256x8xf32>, vector<256x8xf32>, vector<256x8xf32>, vector<256x8xf32>, vector<256x8xf32>, vector<256x8xf32> -> vector<256x72xf32>
    %60 = arith.truncf %59 : vector<256x72xf32> to vector<256x72xbf16>
    %c0_19 = arith.constant 0 : index
    %c0_20 = arith.constant 0 : index
    %61 = vector.load %arg7[%c0_19, %c0_20] : memref<72x8xbf16, #tpu.memory_space<vmem>>, vector<72x8xbf16>
    %cst_21 = arith.constant dense<0.000000e+00> : vector<256x8xf32>
    %62 = tpu.matmul %60, %61, %cst_21 {dimension_numbers = #tpu.dot_dimension_numbers<[1], [0], [0], [1], [0, 0, 1, 1], [], []>} : vector<256x72xbf16>, vector<72x8xbf16>, vector<256x8xf32> -> vector<256x8xf32>
    %63 = vector.shape_cast %62 : vector<256x8xf32> to vector<1x16x16x8xf32>
    %c0_22 = arith.constant 0 : index
    %c0_23 = arith.constant 0 : index
    %c0_24 = arith.constant 0 : index
    %c0_25 = arith.constant 0 : index
    %64 = vector.load %arg8[%c0_22, %c0_23, %c0_24, %c0_25] : memref<1x16x16x8xf32, #tpu.memory_space<vmem>>, vector<1x16x16x8xf32>
    tpu.vector_store %arg8[%c0_22, %c0_23, %c0_24, %c0_25], %63 {strides = array<i32>} : memref<1x16x16x8xf32, #tpu.memory_space<vmem>>, vector<1x16x16x8xf32>,
    %cst_26 = arith.constant dense<0.000000e+00> : vector<8xf32>
    %65 = vector.multi_reduction <add>, %62, %cst_26 [0] : vector<256x8xf32> to vector<8xf32>
    %66 = vector.shape_cast %65 : vector<8xf32> to vector<1x8xf32>
    %67 = arith.mulf %62, %62 : vector<256x8xf32>
    %cst_27 = arith.constant dense<0.000000e+00> : vector<8xf32>
    %68 = vector.multi_reduction <add>, %67, %cst_27 [0] : vector<256x8xf32> to vector<8xf32>
    %69 = vector.shape_cast %68 : vector<8xf32> to vector<1x8xf32>
    %70 = tpu.concatenate %66, %69 in 0 : vector<1x8xf32>, vector<1x8xf32> -> vector<2x8xf32>
    %71 = vector.shape_cast %70 : vector<2x8xf32> to vector<1x1x2x8xf32>
    %c0_28 = arith.constant 0 : index
    %c0_29 = arith.constant 0 : index
    %c0_30 = arith.constant 0 : index
    %c0_31 = arith.constant 0 : index
    %72 = vector.load %arg9[%c0_28, %c0_29, %c0_30, %c0_31] : memref<1x1x2x8xf32, #tpu.memory_space<vmem>>, vector<1x1x2x8xf32>
    tpu.vector_store %arg9[%c0_28, %c0_29, %c0_30, %c0_31], %71 {strides = array<i32>} : memref<1x1x2x8xf32, #tpu.memory_space<vmem>>, vector<1x1x2x8xf32>,
    return
  }
  func.func @transform_0(%arg0: i32, %arg1: i32) -> (i32, i32, i32, i32) {
    %c16_i32 = arith.constant 16 : i32
    %0 = arith.muli %arg1, %c16_i32 : i32
    %c1_i32 = arith.constant 1 : i32
    %1 = arith.subi %0, %c1_i32 : i32
    %c0_i32 = arith.constant 0 : i32
    %2 = arith.maxsi %1, %c0_i32 : i32
    %c0_i32_0 = arith.constant 0 : i32
    %c0_i32_1 = arith.constant 0 : i32
    %c0_i32_2 = arith.constant 0 : i32
    return %arg0, %2, %c0_i32_0, %c0_i32_1 : i32, i32, i32, i32
  }
  func.func @transform_1(%arg0: i32, %arg1: i32) -> (i32, i32, i32, i32) {
    %c0_i32 = arith.constant 0 : i32
    %c0_i32_0 = arith.constant 0 : i32
    %c0_i32_1 = arith.constant 0 : i32
    return %arg0, %arg1, %c0_i32, %c0_i32_0 : i32, i32, i32, i32
  }
  func.func @transform_2(%arg0: i32, %arg1: i32) -> (i32, i32, i32, i32) {
    %c1_i32 = arith.constant 1 : i32
    %0 = arith.addi %arg1, %c1_i32 : i32
    %c16_i32 = arith.constant 16 : i32
    %1 = arith.muli %0, %c16_i32 : i32
    %c15_i32 = arith.constant 15 : i32
    %2 = arith.minsi %1, %c15_i32 : i32
    %c0_i32 = arith.constant 0 : i32
    %c0_i32_0 = arith.constant 0 : i32
    %c0_i32_1 = arith.constant 0 : i32
    return %arg0, %2, %c0_i32, %c0_i32_0 : i32, i32, i32, i32
  }
  func.func @transform_3(%arg0: i32, %arg1: i32) -> (i32, i32) {
    %c0_i32 = arith.constant 0 : i32
    %c0_i32_0 = arith.constant 0 : i32
    %c0_i32_1 = arith.constant 0 : i32
    return %c0_i32, %c0_i32_0 : i32, i32
  }
  func.func @transform_4(%arg0: i32, %arg1: i32) -> (i32, i32) {
    %c0_i32 = arith.constant 0 : i32
    %c0_i32_0 = arith.constant 0 : i32
    %c0_i32_1 = arith.constant 0 : i32
    return %c0_i32, %c0_i32_0 : i32, i32
  }
  func.func @transform_5(%arg0: i32, %arg1: i32) -> (i32, i32) {
    %c0_i32 = arith.constant 0 : i32
    %c0_i32_0 = arith.constant 0 : i32
    %c0_i32_1 = arith.constant 0 : i32
    return %c0_i32, %c0_i32_0 : i32, i32
  }
  func.func @transform_6(%arg0: i32, %arg1: i32) -> (i32, i32, i32, i32) {
    %c0_i32 = arith.constant 0 : i32
    %c0_i32_0 = arith.constant 0 : i32
    %c0_i32_1 = arith.constant 0 : i32
    return %arg0, %arg1, %c0_i32, %c0_i32_0 : i32, i32, i32, i32
  }
  func.func @transform_7(%arg0: i32, %arg1: i32) -> (i32, i32, i32, i32) {
    %c0_i32 = arith.constant 0 : i32
    %c0_i32_0 = arith.constant 0 : i32
    %c0_i32_1 = arith.constant 0 : i32
    return %arg0, %arg1, %c0_i32, %c0_i32_0 : i32, i32, i32, i32
  }
}

module attributes {stable_mosaic.version = 11 : i64} {
  func.func @kernel(%arg0: i32, %arg1: i32, %arg2: memref<1x1x16x8xf32, #tpu.memory_space<vmem>>, %arg3: memref<1x16x16x8xf32, #tpu.memory_space<vmem>>, %arg4: memref<1x1x16x8xf32, #tpu.memory_space<vmem>>, %arg5: memref<72x8xbf16, #tpu.memory_space<vmem>>, %arg6: memref<1x16x16x8xf32, #tpu.memory_space<vmem>>, %arg7: memref<1x1x2x8xf32, #tpu.memory_space<vmem>>) attributes {dimension_semantics = [#tpu.dimension_semantics<parallel>, #tpu.dimension_semantics<parallel>], iteration_bounds = array<i64: 2, 1>, scalar_prefetch = 0 : i64, scratch_operands = 0 : i64, tpu.core_type = #tpu.core_type<tc>, window_params = [{transform_indices = @transform_0, window_bounds = array<i64: 1, 1, 16, 8>}, {transform_indices = @transform_1, window_bounds = array<i64: 1, 16, 16, 8>}, {transform_indices = @transform_2, window_bounds = array<i64: 1, 1, 16, 8>}, {pipeline_mode = #tpu.pipeline_mode<synchronous>, transform_indices = @transform_3, window_bounds = array<i64: 72, 8>}, {transform_indices = @transform_4, window_bounds = array<i64: 1, 16, 16, 8>}, {transform_indices = @transform_5, window_bounds = array<i64: 1, 1, 2, 8>}]} {
    %c0 = arith.constant 0 : index
    %c0_0 = arith.constant 0 : index
    %c0_1 = arith.constant 0 : index
    %c0_2 = arith.constant 0 : index
    %0 = vector.load %arg2[%c0, %c0_0, %c0_1, %c0_2] : memref<1x1x16x8xf32, #tpu.memory_space<vmem>>, vector<1x1x16x8xf32>
    %1 = vector.shape_cast %0 : vector<1x1x16x8xf32> to vector<1x16x8xf32>
    %c0_i32 = arith.constant 0 : i32
    %2 = arith.cmpi sgt, %arg1, %c0_i32 : i32
    %3 = arith.extui %2 : i1 to i32
    %4 = arith.sitofp %3 : i32 to f32
    %5 = vector.broadcast %4 : f32 to vector<1x16x8xf32>
    %6 = arith.mulf %1, %5 : vector<1x16x8xf32>
    %c0_3 = arith.constant 0 : index
    %c0_4 = arith.constant 0 : index
    %c0_5 = arith.constant 0 : index
    %c0_6 = arith.constant 0 : index
    %7 = vector.load %arg3[%c0_3, %c0_4, %c0_5, %c0_6] : memref<1x16x16x8xf32, #tpu.memory_space<vmem>>, vector<1x16x16x8xf32>
    %8 = vector.shape_cast %7 : vector<1x16x16x8xf32> to vector<16x16x8xf32>
    %c0_7 = arith.constant 0 : index
    %c0_8 = arith.constant 0 : index
    %c0_9 = arith.constant 0 : index
    %c0_10 = arith.constant 0 : index
    %9 = vector.load %arg4[%c0_7, %c0_8, %c0_9, %c0_10] : memref<1x1x16x8xf32, #tpu.memory_space<vmem>>, vector<1x1x16x8xf32>
    %10 = vector.shape_cast %9 : vector<1x1x16x8xf32> to vector<1x16x8xf32>
    %c0_i32_11 = arith.constant 0 : i32
    %11 = arith.cmpi slt, %arg1, %c0_i32_11 : i32
    %12 = arith.extui %11 : i1 to i32
    %13 = arith.sitofp %12 : i32 to f32
    %14 = vector.broadcast %13 : f32 to vector<1x16x8xf32>
    %15 = arith.mulf %10, %14 : vector<1x16x8xf32>
    %16 = tpu.concatenate %6, %8, %15 in 0 : vector<1x16x8xf32>, vector<16x16x8xf32>, vector<1x16x8xf32> -> vector<18x16x8xf32>
    %cst = arith.constant 0.000000e+00 : f32
    %17 = vector.broadcast %cst : f32 to vector<18x1x8xf32>
    %18 = tpu.concatenate %17, %16, %17 in 1 : vector<18x1x8xf32>, vector<18x16x8xf32>, vector<18x1x8xf32> -> vector<18x18x8xf32>
    %19 = vector.extract_strided_slice %18 {offsets = [0, 0, 0], sizes = [16, 16, 8], strides = [1, 1, 1]} : vector<18x18x8xf32> to vector<16x16x8xf32>
    %20 = vector.shape_cast %19 : vector<16x16x8xf32> to vector<256x8xf32>
    %21 = vector.extract_strided_slice %18 {offsets = [0, 1, 0], sizes = [16, 16, 8], strides = [1, 1, 1]} : vector<18x18x8xf32> to vector<16x16x8xf32>
    %22 = vector.shape_cast %21 : vector<16x16x8xf32> to vector<256x8xf32>
    %23 = vector.extract_strided_slice %18 {offsets = [0, 2, 0], sizes = [16, 16, 8], strides = [1, 1, 1]} : vector<18x18x8xf32> to vector<16x16x8xf32>
    %24 = vector.shape_cast %23 : vector<16x16x8xf32> to vector<256x8xf32>
    %25 = vector.extract_strided_slice %18 {offsets = [1, 0, 0], sizes = [16, 16, 8], strides = [1, 1, 1]} : vector<18x18x8xf32> to vector<16x16x8xf32>
    %26 = vector.shape_cast %25 : vector<16x16x8xf32> to vector<256x8xf32>
    %27 = vector.extract_strided_slice %18 {offsets = [1, 1, 0], sizes = [16, 16, 8], strides = [1, 1, 1]} : vector<18x18x8xf32> to vector<16x16x8xf32>
    %28 = vector.shape_cast %27 : vector<16x16x8xf32> to vector<256x8xf32>
    %29 = vector.extract_strided_slice %18 {offsets = [1, 2, 0], sizes = [16, 16, 8], strides = [1, 1, 1]} : vector<18x18x8xf32> to vector<16x16x8xf32>
    %30 = vector.shape_cast %29 : vector<16x16x8xf32> to vector<256x8xf32>
    %31 = vector.extract_strided_slice %18 {offsets = [2, 0, 0], sizes = [16, 16, 8], strides = [1, 1, 1]} : vector<18x18x8xf32> to vector<16x16x8xf32>
    %32 = vector.shape_cast %31 : vector<16x16x8xf32> to vector<256x8xf32>
    %33 = vector.extract_strided_slice %18 {offsets = [2, 1, 0], sizes = [16, 16, 8], strides = [1, 1, 1]} : vector<18x18x8xf32> to vector<16x16x8xf32>
    %34 = vector.shape_cast %33 : vector<16x16x8xf32> to vector<256x8xf32>
    %35 = vector.extract_strided_slice %18 {offsets = [2, 2, 0], sizes = [16, 16, 8], strides = [1, 1, 1]} : vector<18x18x8xf32> to vector<16x16x8xf32>
    %36 = vector.shape_cast %35 : vector<16x16x8xf32> to vector<256x8xf32>
    %37 = tpu.concatenate %20, %22, %24, %26, %28, %30, %32, %34, %36 in 1 : vector<256x8xf32>, vector<256x8xf32>, vector<256x8xf32>, vector<256x8xf32>, vector<256x8xf32>, vector<256x8xf32>, vector<256x8xf32>, vector<256x8xf32>, vector<256x8xf32> -> vector<256x72xf32>
    %38 = arith.truncf %37 : vector<256x72xf32> to vector<256x72xbf16>
    %c0_12 = arith.constant 0 : index
    %c0_13 = arith.constant 0 : index
    %39 = vector.load %arg5[%c0_12, %c0_13] : memref<72x8xbf16, #tpu.memory_space<vmem>>, vector<72x8xbf16>
    %cst_14 = arith.constant dense<0.000000e+00> : vector<256x8xf32>
    %40 = tpu.matmul %38, %39, %cst_14 {dimension_numbers = #tpu.dot_dimension_numbers<[1], [0], [0], [1], [0, 0, 1, 1], [], []>} : vector<256x72xbf16>, vector<72x8xbf16>, vector<256x8xf32> -> vector<256x8xf32>
    %41 = vector.shape_cast %40 : vector<256x8xf32> to vector<1x16x16x8xf32>
    %c0_15 = arith.constant 0 : index
    %c0_16 = arith.constant 0 : index
    %c0_17 = arith.constant 0 : index
    %c0_18 = arith.constant 0 : index
    %42 = vector.load %arg6[%c0_15, %c0_16, %c0_17, %c0_18] : memref<1x16x16x8xf32, #tpu.memory_space<vmem>>, vector<1x16x16x8xf32>
    tpu.vector_store %arg6[%c0_15, %c0_16, %c0_17, %c0_18], %41 {strides = array<i32>} : memref<1x16x16x8xf32, #tpu.memory_space<vmem>>, vector<1x16x16x8xf32>,
    %cst_19 = arith.constant dense<0.000000e+00> : vector<8xf32>
    %43 = vector.multi_reduction <add>, %40, %cst_19 [0] : vector<256x8xf32> to vector<8xf32>
    %44 = vector.shape_cast %43 : vector<8xf32> to vector<1x8xf32>
    %45 = arith.mulf %40, %40 : vector<256x8xf32>
    %cst_20 = arith.constant dense<0.000000e+00> : vector<8xf32>
    %46 = vector.multi_reduction <add>, %45, %cst_20 [0] : vector<256x8xf32> to vector<8xf32>
    %47 = vector.shape_cast %46 : vector<8xf32> to vector<1x8xf32>
    %48 = tpu.concatenate %44, %47 in 0 : vector<1x8xf32>, vector<1x8xf32> -> vector<2x8xf32>
    %49 = vector.shape_cast %48 : vector<2x8xf32> to vector<1x1x2x8xf32>
    %c0_21 = arith.constant 0 : index
    %c0_22 = arith.constant 0 : index
    %c0_23 = arith.constant 0 : index
    %c0_24 = arith.constant 0 : index
    %50 = vector.load %arg7[%c0_21, %c0_22, %c0_23, %c0_24] : memref<1x1x2x8xf32, #tpu.memory_space<vmem>>, vector<1x1x2x8xf32>
    tpu.vector_store %arg7[%c0_21, %c0_22, %c0_23, %c0_24], %49 {strides = array<i32>} : memref<1x1x2x8xf32, #tpu.memory_space<vmem>>, vector<1x1x2x8xf32>,
    return
  }
  func.func @transform_0(%arg0: i32, %arg1: i32) -> (i32, i32, i32, i32) {
    %c16_i32 = arith.constant 16 : i32
    %0 = arith.muli %arg1, %c16_i32 : i32
    %c1_i32 = arith.constant 1 : i32
    %1 = arith.subi %0, %c1_i32 : i32
    %c0_i32 = arith.constant 0 : i32
    %2 = arith.maxsi %1, %c0_i32 : i32
    %c0_i32_0 = arith.constant 0 : i32
    %c0_i32_1 = arith.constant 0 : i32
    %c0_i32_2 = arith.constant 0 : i32
    return %arg0, %2, %c0_i32_0, %c0_i32_1 : i32, i32, i32, i32
  }
  func.func @transform_1(%arg0: i32, %arg1: i32) -> (i32, i32, i32, i32) {
    %c0_i32 = arith.constant 0 : i32
    %c0_i32_0 = arith.constant 0 : i32
    %c0_i32_1 = arith.constant 0 : i32
    return %arg0, %arg1, %c0_i32, %c0_i32_0 : i32, i32, i32, i32
  }
  func.func @transform_2(%arg0: i32, %arg1: i32) -> (i32, i32, i32, i32) {
    %c1_i32 = arith.constant 1 : i32
    %0 = arith.addi %arg1, %c1_i32 : i32
    %c16_i32 = arith.constant 16 : i32
    %1 = arith.muli %0, %c16_i32 : i32
    %c15_i32 = arith.constant 15 : i32
    %2 = arith.minsi %1, %c15_i32 : i32
    %c0_i32 = arith.constant 0 : i32
    %c0_i32_0 = arith.constant 0 : i32
    %c0_i32_1 = arith.constant 0 : i32
    return %arg0, %2, %c0_i32, %c0_i32_0 : i32, i32, i32, i32
  }
  func.func @transform_3(%arg0: i32, %arg1: i32) -> (i32, i32) {
    %c0_i32 = arith.constant 0 : i32
    %c0_i32_0 = arith.constant 0 : i32
    %c0_i32_1 = arith.constant 0 : i32
    return %c0_i32, %c0_i32_0 : i32, i32
  }
  func.func @transform_4(%arg0: i32, %arg1: i32) -> (i32, i32, i32, i32) {
    %c0_i32 = arith.constant 0 : i32
    %c0_i32_0 = arith.constant 0 : i32
    %c0_i32_1 = arith.constant 0 : i32
    return %arg0, %arg1, %c0_i32, %c0_i32_0 : i32, i32, i32, i32
  }
  func.func @transform_5(%arg0: i32, %arg1: i32) -> (i32, i32, i32, i32) {
    %c0_i32 = arith.constant 0 : i32
    %c0_i32_0 = arith.constant 0 : i32
    %c0_i32_1 = arith.constant 0 : i32
    return %arg0, %arg1, %c0_i32, %c0_i32_0 : i32, i32, i32, i32
  }
}

module attributes {stable_mosaic.version = 11 : i64} {
  func.func @_bn_residual_kernel(%arg0: i32, %arg1: i32, %arg2: memref<1x16x16x8xf32, #tpu.memory_space<vmem>>, %arg3: memref<1x16x16x8xf32, #tpu.memory_space<vmem>>, %arg4: memref<1x8xf32, #tpu.memory_space<vmem>>, %arg5: memref<1x8xf32, #tpu.memory_space<vmem>>, %arg6: memref<1x16x16x8xf32, #tpu.memory_space<vmem>>) attributes {dimension_semantics = [#tpu.dimension_semantics<parallel>, #tpu.dimension_semantics<parallel>], iteration_bounds = array<i64: 2, 1>, scalar_prefetch = 0 : i64, scratch_operands = 0 : i64, tpu.core_type = #tpu.core_type<tc>, window_params = [{transform_indices = @transform_0, window_bounds = array<i64: 1, 16, 16, 8>}, {transform_indices = @transform_1, window_bounds = array<i64: 1, 16, 16, 8>}, {pipeline_mode = #tpu.pipeline_mode<synchronous>, transform_indices = @transform_2, window_bounds = array<i64: 1, 8>}, {pipeline_mode = #tpu.pipeline_mode<synchronous>, transform_indices = @transform_3, window_bounds = array<i64: 1, 8>}, {transform_indices = @transform_4, window_bounds = array<i64: 1, 16, 16, 8>}]} {
    %c0 = arith.constant 0 : index
    %c0_0 = arith.constant 0 : index
    %0 = vector.load %arg4[%c0, %c0_0] : memref<1x8xf32, #tpu.memory_space<vmem>>, vector<1x8xf32>
    %1 = vector.shape_cast %0 : vector<1x8xf32> to vector<1x1x1x8xf32>
    %c0_1 = arith.constant 0 : index
    %c0_2 = arith.constant 0 : index
    %2 = vector.load %arg5[%c0_1, %c0_2] : memref<1x8xf32, #tpu.memory_space<vmem>>, vector<1x8xf32>
    %3 = vector.shape_cast %2 : vector<1x8xf32> to vector<1x1x1x8xf32>
    %c0_3 = arith.constant 0 : index
    %c0_4 = arith.constant 0 : index
    %c0_5 = arith.constant 0 : index
    %c0_6 = arith.constant 0 : index
    %4 = vector.load %arg2[%c0_3, %c0_4, %c0_5, %c0_6] : memref<1x16x16x8xf32, #tpu.memory_space<vmem>>, vector<1x16x16x8xf32>
    %5 = vector.broadcast %1 : vector<1x1x1x8xf32> to vector<1x16x16x8xf32>
    %6 = arith.mulf %4, %5 : vector<1x16x16x8xf32>
    %7 = vector.broadcast %3 : vector<1x1x1x8xf32> to vector<1x16x16x8xf32>
    %8 = arith.addf %6, %7 : vector<1x16x16x8xf32>
    %c0_7 = arith.constant 0 : index
    %c0_8 = arith.constant 0 : index
    %c0_9 = arith.constant 0 : index
    %c0_10 = arith.constant 0 : index
    %9 = vector.load %arg3[%c0_7, %c0_8, %c0_9, %c0_10] : memref<1x16x16x8xf32, #tpu.memory_space<vmem>>, vector<1x16x16x8xf32>
    %10 = arith.addf %8, %9 : vector<1x16x16x8xf32>
    %c0_11 = arith.constant 0 : index
    %c0_12 = arith.constant 0 : index
    %c0_13 = arith.constant 0 : index
    %c0_14 = arith.constant 0 : index
    %11 = vector.load %arg6[%c0_11, %c0_12, %c0_13, %c0_14] : memref<1x16x16x8xf32, #tpu.memory_space<vmem>>, vector<1x16x16x8xf32>
    tpu.vector_store %arg6[%c0_11, %c0_12, %c0_13, %c0_14], %10 {strides = array<i32>} : memref<1x16x16x8xf32, #tpu.memory_space<vmem>>, vector<1x16x16x8xf32>,
    return
  }
  func.func @transform_0(%arg0: i32, %arg1: i32) -> (i32, i32, i32, i32) {
    %c0_i32 = arith.constant 0 : i32
    %c0_i32_0 = arith.constant 0 : i32
    %c0_i32_1 = arith.constant 0 : i32
    return %arg0, %arg1, %c0_i32, %c0_i32_0 : i32, i32, i32, i32
  }
  func.func @transform_1(%arg0: i32, %arg1: i32) -> (i32, i32, i32, i32) {
    %c0_i32 = arith.constant 0 : i32
    %c0_i32_0 = arith.constant 0 : i32
    %c0_i32_1 = arith.constant 0 : i32
    return %arg0, %arg1, %c0_i32, %c0_i32_0 : i32, i32, i32, i32
  }
  func.func @transform_2(%arg0: i32, %arg1: i32) -> (i32, i32) {
    %c0_i32 = arith.constant 0 : i32
    %c0_i32_0 = arith.constant 0 : i32
    %c0_i32_1 = arith.constant 0 : i32
    return %c0_i32, %c0_i32_0 : i32, i32
  }
  func.func @transform_3(%arg0: i32, %arg1: i32) -> (i32, i32) {
    %c0_i32 = arith.constant 0 : i32
    %c0_i32_0 = arith.constant 0 : i32
    %c0_i32_1 = arith.constant 0 : i32
    return %c0_i32, %c0_i32_0 : i32, i32
  }
  func.func @transform_4(%arg0: i32, %arg1: i32) -> (i32, i32, i32, i32) {
    %c0_i32 = arith.constant 0 : i32
    %c0_i32_0 = arith.constant 0 : i32
    %c0_i32_1 = arith.constant 0 : i32
    return %arg0, %arg1, %c0_i32, %c0_i32_0 : i32, i32, i32, i32
  }
}

</mosaic_0001>

<bundles_post_ra>
// kernel: residual_block_forward.5
= control target key start
LH: loop header
LB: loop body
LE: loop exit
PB: predicated region body
PF: predicated region fallthrough
CT: control target
= control target key end

     0   :  { %s690_s15 = smov 0   ;;  %s692_s16 = smov 0   ;;  %s981_s0 = inlined_call_operand.vmem [shape: f32[2,16,16,8], index: 0, kind: input, shape index: {}, may-alias: {0,4}]   ;;  %s982_s1 = inlined_call_operand.vmem [shape: f32[2,16,16,8], index: 1, kind: input, shape index: {}]   ;;  %s983_s2 = inlined_call_operand.vmem [shape: f32[1,8], index: 2, kind: input, shape index: {}]   ;;  %s984_s3 = inlined_call_operand.vmem [shape: f32[1,8], index: 3, kind: input, shape index: {}]   ;;  %s985_s4 = inlined_call_operand.vmem [shape: f32[2,16,16,8], index: 4, kind: output, shape index: {}, may-alias: {0,4}]  }
   0x1   :  { %s694_s17 = smov 0  }
   0x2 LB: > { %s26_s18 = sadd.s32 1, %s659_s16  ;;  %p603_p0 = scmp.ge.s32.totalorder %s663_s17, 1  ;;  %s663_s17 = sphi %s694_s17, %s14_s17   ;;  %s659_s16 = sphi %s692_s16, %s987_s16   ;;  %s655_s15 = sphi %s690_s15, %s986_s15  }
   0x3   : > { %p28_p1 = scmp.ge.s32.totalorder %s26_s18, 2  ;;  %p202_p2 = scmp.lt.s32.totalorder %s663_s17, 3 }
   0x5   : > { %s989_s18 = smov (%p28_p1, %s26_s18), 0  ;;  %p203_p3 = pnand %p603_p0, %p202_p2 }
   0x6   : > { %p249_p4 = scmp.lt.s32.totalorder (!%p203_p3), %s655_s15, 1 }
   0x7   : > { %206 = sbr.rel (%p203_p3) target bundleno = 60 (0x3c), region = 36 }
   0xc   : > { %s991_s15 = smov (!%p249_p4, %s655_s15), 1  ;;  %v719_v0 = vld [vmem:[%s983_s2] ss:$0 sm:$0xff]  ;;  %vm449_vm0 = vcmask 64512  }
   0xd   : > { %s708_s19 = sshll.u32 %s991_s15, 8  ;;  %v731_v8 = vld [vmem:[%s984_s3] ss:$0 sm:$0xff] }
   0xe   : > { %s714_s22 = scalar_lea.vmem %s981_s0, %s708_s19  ;;  %s745_s29 = scalar_lea.vmem %s982_s1, %s708_s19 }
   0xf   : > { %v283_v1 = vld [vmem:[%s714_s22] sm:$0xff]  ;;  %v284_v2 = vld [vmem:[%s714_s22 + $0x8] sm:$0xff]  ;;  %v285_v3 = vld [vmem:[%s714_s22 + $0x10] sm:$0xff]  ;;  %s764_s6 = scalar_lea.vmem %s985_s4, %s708_s19 }
  0x10   : > { %v286_v4 = vld [vmem:[%s714_s22 + $0x18] sm:$0xff]  ;;  %v287_v5 = vld [vmem:[%s714_s22 + $0x20] sm:$0xff]  ;;  %v288_v6 = vld [vmem:[%s714_s22 + $0x28] sm:$0xff]  ;;  %v318_v7 = vmul.f32 %v719_v0, %v283_v1  ;;  %v319_v11 = vmul.f32 %v719_v0, %v284_v2  ;;  %v320_v12 = vmul.f32 %v719_v0, %v285_v3 }
  0x11   : > { %v289_v9 = vld [vmem:[%s714_s22 + $0x30] sm:$0xff]  ;;  %v290_v10 = vld [vmem:[%s714_s22 + $0x38] sm:$0xff]  ;;  %v321_v13 = vmul.f32 %v719_v0, %v286_v4  ;;  %v322_v14 = vmul.f32 %v719_v0, %v287_v5  ;;  %v291_v15 = vld [vmem:[%s714_s22 + $0x40] sm:$0xff]  ;;  %v323_v16 = vmul.f32 %v719_v0, %v288_v6 }
  0x12   : > { %v292_v17 = vld [vmem:[%s714_s22 + $0x48] sm:$0xff]  ;;  %v353_v18 = vadd.f32 %v731_v8, %v318_v7  ;;  %v324_v19 = vmul.f32 %v719_v0, %v289_v9  ;;  %v325_v20 = vmul.f32 %v719_v0, %v290_v10  ;;  %v293_v21 = vld [vmem:[%s714_s22 + $0x50] sm:$0xff]  ;;  %v354_v22 = vadd.f32 %v731_v8, %v319_v11  ;;  %v294_v25 = vld [vmem:[%s714_s22 + $0x58] sm:$0xff] }
  0x13   : > { %v355_v23 = vadd.f32 %v731_v8, %v320_v12  ;;  %v356_v24 = vadd.f32 %v731_v8, %v321_v13  ;;  %v295_v26 = vld [vmem:[%s714_s22 + $0x60] sm:$0xff]  ;;  %v296_v27 = vld [vmem:[%s714_s22 + $0x68] sm:$0xff]  ;;  %v357_v28 = vadd.f32 %v731_v8, %v322_v14  ;;  %v326_v29 = vmul.f32 %v719_v0, %v291_v15  ;;  %v297_v30 = vld [vmem:[%s714_s22 + $0x70] sm:$0xff] }
  0x14   : > { %v298_v31 = vld [vmem:[%s714_s22 + $0x78] sm:$0xff]  ;;  %v299_v32 = vld [vmem:[%s714_s22 + $0x80] sm:$0xff]  ;;  %v300_v33 = vld [vmem:[%s714_s22 + $0x88] sm:$0xff]  ;;  %v358_v49 = vadd.f32 %v731_v8, %v323_v16  ;;  %v327_v50 = vmul.f32 %v719_v0, %v292_v17  ;;  %v359_v55 = vadd.f32 %v731_v8, %v324_v19  ;;  %v360_v56 = vadd.f32 %v731_v8, %v325_v20 }
  0x15   : > { %v771_v34 = vld [vmem:[%s714_s22 + $0x90] sm:$0xff]  ;;  %v774_v35 = vld [vmem:[%s714_s22 + $0x98] sm:$0xff]  ;;  %v777_v36 = vld [vmem:[%s714_s22 + $0xa0] sm:$0xff]  ;;  %v328_v57 = vmul.f32 %v719_v0, %v293_v21  ;;  %v329_v1 = vmul.f32 %v719_v0, %v294_v25  ;;  %v361_v4 = vadd.f32 %v731_v8, %v326_v29  ;;  %v330_v5 = vmul.f32 %v719_v0, %v295_v26 }
  0x16   : > { %v780_v37 = vld [vmem:[%s714_s22 + $0xa8] sm:$0xff]  ;;  %v783_v38 = vld [vmem:[%s714_s22 + $0xb0] sm:$0xff]  ;;  %v786_v39 = vld [vmem:[%s714_s22 + $0xb8] sm:$0xff]  ;;  %v362_v9 = vadd.f32 %v731_v8, %v327_v50  ;;  %v331_v10 = vmul.f32 %v719_v0, %v296_v27  ;;  %v332_v14 = vmul.f32 %v719_v0, %v297_v30  ;;  %v335_v26 = vmul.f32 %v719_v0, %v300_v33 }
  0x17   : > { %v789_v40 = vld [vmem:[%s714_s22 + $0xc0] sm:$0xff]  ;;  %v792_v41 = vld [vmem:[%s714_s22 + $0xc8] sm:$0xff]  ;;  %v795_v42 = vld [vmem:[%s714_s22 + $0xd0] sm:$0xff]  ;;  %v363_v13 = vadd.f32 %v731_v8, %v328_v57  ;;  %v364_v17 = vadd.f32 %v731_v8, %v329_v1  ;;  %v365_v21 = vadd.f32 %v731_v8, %v330_v5  ;;  %v336_v30 = vmul.f32 %v719_v0, %v771_v34 }
  0x18   : > { %v798_v43 = vld [vmem:[%s714_s22 + $0xd8] sm:$0xff]  ;;  %v801_v44 = vld [vmem:[%s714_s22 + $0xe0] sm:$0xff]  ;;  %v804_v45 = vld [vmem:[%s714_s22 + $0xe8] sm:$0xff]  ;;  %v366_v25 = vadd.f32 %v731_v8, %v331_v10  ;;  %v367_v29 = vadd.f32 %v731_v8, %v332_v14  ;;  %v337_v33 = vmul.f32 %v719_v0, %v774_v35  ;;  %v338_v34 = vmul.f32 %v719_v0, %v777_v36 }
  0x19   : > { %v807_v46 = vld [vmem:[%s714_s22 + $0xf0] sm:$0xff]  ;;  %v810_v47 = vld [vmem:[%s714_s22 + $0xf8] sm:$0xff]  ;;  %v385_v48 = vld [vmem:[%s745_s29] sm:$0xff]  ;;  %v339_v35 = vmul.f32 %v719_v0, %v780_v37  ;;  %v371_v57 = vadd.f32 %v731_v8, %v336_v30  ;;  %v340_v36 = vmul.f32 %v719_v0, %v783_v38  ;;  %v341_v37 = vmul.f32 %v719_v0, %v786_v39 }
  0x1a   : > { %v417_v51 = vadd.f32 %v385_v48, %v353_v18  ;;  %v386_v52 = vld [vmem:[%s745_s29 + $0x8] sm:$0xff]  ;;  %v387_v53 = vld [vmem:[%s745_s29 + $0x10] sm:$0xff]  ;;  %v388_v54 = vld [vmem:[%s745_s29 + $0x18] sm:$0xff]  ;;  %v333_v18 = vmul.f32 %v719_v0, %v298_v31  ;;  %v342_v38 = vmul.f32 %v719_v0, %v789_v40  ;;  %v343_v39 = vmul.f32 %v719_v0, %v792_v41 }
  0x1b   : > { %v418_v58 = vadd.f32 %v386_v52, %v354_v22  ;;  %v419_v59 = vadd.f32 %v387_v53, %v355_v23  ;;  %v420_v60 = vadd.f32 %v388_v54, %v356_v24  ;;  %v389_v61 = vld [vmem:[%s745_s29 + $0x20] sm:$0xff]  ;;  %v390_v62 = vld [vmem:[%s745_s29 + $0x28] sm:$0xff]  ;;  %v391_v63 = vld [vmem:[%s745_s29 + $0x30] sm:$0xff]  ;;  %v334_v22 = vmul.f32 %v719_v0, %v299_v32 }
  0x1c   : > { %450 = vst.msk [vmem:[%s764_s6] sm:$0xff] %vm449_vm0, %v417_v51  ;;  %v421_v2 = vadd.f32 %v389_v61, %v357_v28  ;;  %v392_v3 = vld [vmem:[%s745_s29 + $0x38] sm:$0xff]  ;;  %v422_v6 = vadd.f32 %v390_v62, %v358_v49  ;;  %v393_v7 = vld [vmem:[%s745_s29 + $0x40] sm:$0xff]  ;;  %v423_v11 = vadd.f32 %v391_v63, %v359_v55  ;;  %v394_v12 = vld [vmem:[%s745_s29 + $0x48] sm:$0xff]  ;;  %v368_v48 = vadd.f32 %v731_v8, %v333_v18 }
  0x1d   : > { %451 = vst.msk [vmem:[%s764_s6 + $0x8] sm:$0xff] %vm449_vm0, %v418_v58  ;;  %v424_v15 = vadd.f32 %v392_v3, %v360_v56  ;;  %v395_v16 = vld [vmem:[%s745_s29 + $0x50] sm:$0xff]  ;;  %v425_v19 = vadd.f32 %v393_v7, %v361_v4  ;;  %v396_v20 = vld [vmem:[%s745_s29 + $0x58] sm:$0xff]  ;;  %v426_v23 = vadd.f32 %v394_v12, %v362_v9  ;;  %v397_v24 = vld [vmem:[%s745_s29 + $0x60] sm:$0xff]  ;;  %v369_v51 = vadd.f32 %v731_v8, %v334_v22 }
  0x1e   : > { %452 = vst.msk [vmem:[%s764_s6 + $0x10] sm:$0xff] %vm449_vm0, %v419_v59  ;;  %v427_v27 = vadd.f32 %v395_v16, %v363_v13  ;;  %v398_v28 = vld [vmem:[%s745_s29 + $0x68] sm:$0xff]  ;;  %v428_v31 = vadd.f32 %v396_v20, %v364_v17  ;;  %v399_v32 = vld [vmem:[%s745_s29 + $0x70] sm:$0xff]  ;;  %v429_v49 = vadd.f32 %v397_v24, %v365_v21  ;;  %v400_v50 = vld [vmem:[%s745_s29 + $0x78] sm:$0xff]  ;;  %v370_v54 = vadd.f32 %v731_v8, %v335_v26 }
  0x1f   : > { %453 = vst.msk [vmem:[%s764_s6 + $0x18] sm:$0xff] %vm449_vm0, %v420_v60  ;;  %v430_v52 = vadd.f32 %v398_v28, %v366_v25  ;;  %v401_v53 = vld [vmem:[%s745_s29 + $0x80] sm:$0xff]  ;;  %v431_v55 = vadd.f32 %v399_v32, %v367_v29  ;;  %v402_v56 = vld [vmem:[%s745_s29 + $0x88] sm:$0xff]  ;;  %v432_v58 = vadd.f32 %v400_v50, %v368_v48  ;;  %v403_v59 = vld [vmem:[%s745_s29 + $0x90] sm:$0xff]  ;;  %v372_v60 = vadd.f32 %v731_v8, %v337_v33 }
  0x20   : > { %454 = vst.msk [vmem:[%s764_s6 + $0x20] sm:$0xff] %vm449_vm0, %v421_v2  ;;  %v433_v61 = vadd.f32 %v401_v53, %v369_v51  ;;  %v404_v62 = vld [vmem:[%s745_s29 + $0x98] sm:$0xff]  ;;  %v373_v63 = vadd.f32 %v731_v8, %v338_v34  ;;  %v434_v1 = vadd.f32 %v402_v56, %v370_v54  ;;  %v405_v2 = vld [vmem:[%s745_s29 + $0xa0] sm:$0xff]  ;;  %v374_v3 = vadd.f32 %v731_v8, %v339_v35  ;;  %v406_v5 = vld [vmem:[%s745_s29 + $0xa8] sm:$0xff] }
  0x21   : > { %455 = vst.msk [vmem:[%s764_s6 + $0x28] sm:$0xff] %vm449_vm0, %v422_v6  ;;  %v435_v4 = vadd.f32 %v403_v59, %v371_v57  ;;  %v375_v6 = vadd.f32 %v731_v8, %v340_v36  ;;  %v344_v40 = vmul.f32 %v719_v0, %v795_v42  ;;  %v436_v7 = vadd.f32 %v404_v62, %v372_v60  ;;  %v407_v9 = vld [vmem:[%s745_s29 + $0xb0] sm:$0xff]  ;;  %v408_v12 = vld [vmem:[%s745_s29 + $0xb8] sm:$0xff]  ;;  %v410_v18 = vld [vmem:[%s745_s29 + $0xc8] sm:$0xff] }
  0x22   : > { %456 = vst.msk [vmem:[%s764_s6 + $0x30] sm:$0xff] %vm449_vm0, %v423_v11  ;;  %v376_v10 = vadd.f32 %v731_v8, %v341_v37  ;;  %v345_v41 = vmul.f32 %v719_v0, %v798_v43  ;;  %v437_v11 = vadd.f32 %v405_v2, %v373_v63  ;;  %v377_v13 = vadd.f32 %v731_v8, %v342_v38  ;;  %v411_v21 = vld [vmem:[%s745_s29 + $0xd0] sm:$0xff]  ;;  %v412_v24 = vld [vmem:[%s745_s29 + $0xd8] sm:$0xff]  ;;  %v413_v26 = vld [vmem:[%s745_s29 + $0xe0] sm:$0xff] }
  0x23   : > { %457 = vst.msk [vmem:[%s764_s6 + $0x38] sm:$0xff] %vm449_vm0, %v424_v15  ;;  %v346_v42 = vmul.f32 %v719_v0, %v801_v44  ;;  %v438_v14 = vadd.f32 %v406_v5, %v374_v3  ;;  %v409_v15 = vld [vmem:[%s745_s29 + $0xc0] sm:$0xff]  ;;  %v378_v16 = vadd.f32 %v731_v8, %v343_v39  ;;  %v347_v43 = vmul.f32 %v719_v0, %v804_v45  ;;  %v415_v30 = vld [vmem:[%s745_s29 + $0xf0] sm:$0xff]  ;;  %v416_v48 = vld [vmem:[%s745_s29 + $0xf8] sm:$0xff] }
  0x24   : > { %458 = vst.msk [vmem:[%s764_s6 + $0x40] sm:$0xff] %vm449_vm0, %v425_v19  ;;  %v439_v17 = vadd.f32 %v407_v9, %v375_v6  ;;  %v379_v44 = vadd.f32 %v731_v8, %v344_v40  ;;  %v348_v19 = vmul.f32 %v719_v0, %v807_v46  ;;  %v440_v20 = vadd.f32 %v408_v12, %v376_v10 }
  0x25   : > { %459 = vst.msk [vmem:[%s764_s6 + $0x48] sm:$0xff] %vm449_vm0, %v426_v23  ;;  %v380_v22 = vadd.f32 %v731_v8, %v345_v41  ;;  %v349_v45 = vmul.f32 %v719_v0, %v810_v47  ;;  %v441_v23 = vadd.f32 %v409_v15, %v377_v13  ;;  %v381_v46 = vadd.f32 %v731_v8, %v346_v42  ;;  %v414_v47 = vld [vmem:[%s745_s29 + $0xe8] sm:$0xff] }
  0x26   : > { %460 = vst.msk [vmem:[%s764_s6 + $0x50] sm:$0xff] %vm449_vm0, %v427_v27  ;;  %v442_v25 = vadd.f32 %v410_v18, %v378_v16  ;;  %v382_v27 = vadd.f32 %v731_v8, %v347_v43  ;;  %v443_v0 = vadd.f32 %v411_v21, %v379_v44  ;;  %v383_v28 = vadd.f32 %v731_v8, %v348_v19 }
  0x27   : > { %461 = vst.msk [vmem:[%s764_s6 + $0x58] sm:$0xff] %vm449_vm0, %v428_v31  ;;  %v444_v29 = vadd.f32 %v412_v24, %v380_v22  ;;  %v384_v31 = vadd.f32 %v731_v8, %v349_v45  ;;  %v445_v32 = vadd.f32 %v413_v26, %v381_v46 }
  0x28   : > { %462 = vst.msk [vmem:[%s764_s6 + $0x60] sm:$0xff] %vm449_vm0, %v429_v49  ;;  %v446_v33 = vadd.f32 %v414_v47, %v382_v27  ;;  %v447_v49 = vadd.f32 %v415_v30, %v383_v28 }
  0x29   : > { %463 = vst.msk [vmem:[%s764_s6 + $0x68] sm:$0xff] %vm449_vm0, %v430_v52  ;;  %v448_v50 = vadd.f32 %v416_v48, %v384_v31 }
  0x2a   : > { %464 = vst.msk [vmem:[%s764_s6 + $0x70] sm:$0xff] %vm449_vm0, %v431_v55 }
  0x2b   : > { %465 = vst.msk [vmem:[%s764_s6 + $0x78] sm:$0xff] %vm449_vm0, %v432_v58 }
  0x2c   : > { %466 = vst.msk [vmem:[%s764_s6 + $0x80] sm:$0xff] %vm449_vm0, %v433_v61 }
  0x2d   : > { %467 = vst.msk [vmem:[%s764_s6 + $0x88] sm:$0xff] %vm449_vm0, %v434_v1 }
  0x2e   : > { %468 = vst.msk [vmem:[%s764_s6 + $0x90] sm:$0xff] %vm449_vm0, %v435_v4 }
  0x2f   : > { %469 = vst.msk [vmem:[%s764_s6 + $0x98] sm:$0xff] %vm449_vm0, %v436_v7 }
  0x30   : > { %470 = vst.msk [vmem:[%s764_s6 + $0xa0] sm:$0xff] %vm449_vm0, %v437_v11 }
  0x31   : > { %471 = vst.msk [vmem:[%s764_s6 + $0xa8] sm:$0xff] %vm449_vm0, %v438_v14 }
  0x32   : > { %472 = vst.msk [vmem:[%s764_s6 + $0xb0] sm:$0xff] %vm449_vm0, %v439_v17 }
  0x33   : > { %473 = vst.msk [vmem:[%s764_s6 + $0xb8] sm:$0xff] %vm449_vm0, %v440_v20 }
  0x34   : > { %474 = vst.msk [vmem:[%s764_s6 + $0xc0] sm:$0xff] %vm449_vm0, %v441_v23 }
  0x35   : > { %475 = vst.msk [vmem:[%s764_s6 + $0xc8] sm:$0xff] %vm449_vm0, %v442_v25 }
  0x36   : > { %476 = vst.msk [vmem:[%s764_s6 + $0xd0] sm:$0xff] %vm449_vm0, %v443_v0 }
  0x37   : > { %477 = vst.msk [vmem:[%s764_s6 + $0xd8] sm:$0xff] %vm449_vm0, %v444_v29 }
  0x38   : > { %478 = vst.msk [vmem:[%s764_s6 + $0xe0] sm:$0xff] %vm449_vm0, %v445_v32 }
  0x39   : > { %479 = vst.msk [vmem:[%s764_s6 + $0xe8] sm:$0xff] %vm449_vm0, %v446_v33 }
  0x3a   : > { %480 = vst.msk [vmem:[%s764_s6 + $0xf0] sm:$0xff] %vm449_vm0, %v447_v49 }
  0x3b   : > { %481 = vst.msk [vmem:[%s764_s6 + $0xf8] sm:$0xff] %vm449_vm0, %v448_v50 }
  0x3c PF: > { %s14_s17 = sadd.s32 1, %s663_s17   ;;  %s986_s15 = smov %s659_s16 }
  0x3d   : > { %p11_p5 = scmp.ge.s32.totalorder %s14_s17, 4   ;;  %s987_s16 = smov %s989_s18 }
  0x3f   :  { %13 = sbr.rel (!%p11_p5) target bundleno = 2 (0x2), region = 69 }

// kernel: residual_block_forward.3
= control target key start
LH: loop header
LB: loop body
LE: loop exit
PB: predicated region body
PF: predicated region fallthrough
CT: control target
= control target key end

     0   :  { %s3275_s18 = smov 0   ;;  %s3277_s19 = smov 0   ;;  %s4950_s0 = inlined_call_operand.vmem [shape: f32[2,16,16,8], index: 0, kind: input, shape index: {}, may-alias: {0,1,2}]   ;;  %s4951_s1 = inlined_call_operand.vmem [shape: f32[2,16,16,8], index: 1, kind: input, shape index: {}, may-alias: {0,1,2}]   ;;  %s4952_s2 = inlined_call_operand.vmem [shape: f32[2,16,16,8], index: 2, kind: input, shape index: {}, may-alias: {0,1,2}]   ;;  %s4953_s3 = inlined_call_operand.vmem [shape: bf16[72,8], index: 3, kind: input, shape index: {}]   ;;  %s4954_s4 = inlined_call_operand.vmem [shape: f32[2,16,16,8], index: 4, kind: output, shape index: {0}]   ;;  %s4955_s5 = inlined_call_operand.vmem [shape: f32[2,1,2,8], index: 5, kind: output, shape index: {1}]  }
   0x1   :  { %s3279_s20 = smov 0  }
   0x2 LB: > { %s28_s21 = sadd.s32 1, %s3231_s19  ;;  %p2472_p0 = scmp.ge.s32.totalorder %s3235_s20, 1  ;;  %s3235_s20 = sphi %s3279_s20, %s16_s20   ;;  %s3231_s19 = sphi %s3277_s19, %s5117_s19   ;;  %s3227_s18 = sphi %s3275_s18, %s5116_s18  }
   0x3   : > { %p30_p1 = scmp.ge.s32.totalorder %s28_s21, 2  ;;  %p278_p2 = scmp.lt.s32.totalorder %s3235_s20, 3 }
   0x5   : > { %s5119_s21 = smov (%p30_p1, %s28_s21), 0  ;;  %p279_p3 = pnand %p2472_p0, %p278_p2 }
   0x7   : > { %282 = sbr.rel (%p279_p3) target bundleno = 655 (0x28f), region = 36 }
   0xc   : > { %p353_p4 = scmp.lt.s32.totalorder %s3227_s18, 1  ;;  %vm497_vm0 = vcmask 1040384   ;;  %vm672_vm1 = vcmask 1046528   ;;  %s3237_s29 = smov 8   ;;  %vm753_vm2 = vcmask 1045504   ;;  %vm1626_vm3 = vcmask 64512  }
   0xd   : > { %s3238_s30 = smov 16   ;;  %s3239_s6 = smov 24   ;;  %vm1659_vm4 = vcmask 130048   ;;  %vm1692_vm5 = vcmask 195584   ;;  %vm1725_vm6 = vcmask 261120   ;;  %vm1758_vm7 = vcmask 326656  }
   0xe   : > { %s5121_s18 = smov (!%p353_p4, %s3227_s18), 1  ;;  %s3240_s7 = smov 32   ;;  %vm1991_vm8 = vcmask 1043456   ;;  %vm1791_vm9 = vcmask 392192   ;;  %vm1824_vm10 = vcmask 457728   ;;  %vm1857_vm11 = vcmask 523264  }
   0xf   : > { %s3296_s22 = sshll.u32 %s5121_s18, 8  ;;  %s3241_s8 = smov 40   ;;  %vm1942_vm12 = vcmask 588800   ;;  %vm2287_vm13 = vcmask 58368  }
  0x10   : > { %s3302_s25 = scalar_lea.vmem %s4951_s1, %s3296_s22  ;;  %s361_s28 = scalar_lea.vmem %s4950_s0, %s3296_s22 }
  0x11   : > { %v427_v0 = vld [vmem:[%s3302_s25 + $0x30] sm:$0xff]  ;;  %v428_v1 = vld [vmem:[%s3302_s25 + $0x38] sm:$0xff]  ;;  %v421_v7 = vld [vmem:[%s3302_s25] sm:$0xff]  ;;  %s3242_s9 = smov 48   ;;  %s3243_s10 = smov 64  }
  0x12   : > { %v423_v2 = vld [vmem:[%s3302_s25 + $0x10] sm:$0xff]  ;;  %v510_v3 = vrot.slane %v427_v0, 7  ;;  %v511_v4 = vrot.slane %v428_v1, 7  ;;  %v424_v5 = vld [vmem:[%s3302_s25 + $0x18] sm:$0xff]  ;;  %v422_v8 = vld [vmem:[%s3302_s25 + $0x8] sm:$0xff]  ;;  %v501_v10 = vrot.slane %v421_v7, 7 }
  0x13   : > { %v504_v6 = vrot.slane %v423_v2, 7  ;;  %v505_v9 = vrot.slane %v424_v5, 7  ;;  %v502_v11 = vrot.slane %v422_v8, 7  ;;  %v429_v27 = vld [vmem:[%s3302_s25 + $0x40] sm:$0xff]  ;;  %v430_v31 = vld [vmem:[%s3302_s25 + $0x48] sm:$0xff]  ;;  %v435_v59 = vld [vmem:[%s3302_s25 + $0x70] sm:$0xff] }
  0x14   : > { %v3311_v12 = vsel %vm497_vm0, %v510_v3, %v511_v4  ;;  %v3314_v13 = vsel %vm497_vm0, 0.0, %v510_v3  ;;  %v3317_v14 = vsel %vm497_vm0, %v511_v4, 0.0  ;;  %v3347_v29 = vsel %vm497_vm0, 0.0, %v501_v10  ;;  %v425_v32 = vld [vmem:[%s3302_s25 + $0x20] sm:$0xff]  ;;  %v426_v33 = vld [vmem:[%s3302_s25 + $0x28] sm:$0xff]  ;;  %v436_v0 = vld [vmem:[%s3302_s25 + $0x78] sm:$0xff] }
  0x15   : > { %v3320_v15 = vsel %vm497_vm0, 0.0, %v504_v6  ;;  %v693_v16 = vrot.slane %v3314_v13, 1  ;;  %v694_v17 = vrot.slane %v3311_v12, 1  ;;  %v696_v18 = vrot.slane %v3317_v14, 1  ;;  %v413_v38 = vld [vmem:[%s361_s28] sm:$0xff]  ;;  %v414_v39 = vld [vmem:[%s361_s28 + $0x8] sm:$0xff] }
  0x16   : > { %v3326_v19 = vsel %vm497_vm0, %v504_v6, %v505_v9  ;;  %v3329_v20 = vsel %vm497_vm0, %v505_v9, 0.0  ;;  %v683_v21 = vrot.slane %v3320_v15, 1  ;;  %v3333_v22 = vsel %vm497_vm0, %v501_v10, %v502_v11  ;;  %s3244_s11 = smov 56  }
  0x17   : > { %v695_v23 = vsel %vm672_vm1, %v693_v16, %v694_v17  ;;  %v697_v24 = vsel %vm672_vm1, %v694_v17, %v696_v18  ;;  %v684_v25 = vrot.slane %v3326_v19, 1  ;;  %v686_v26 = vrot.slane %v3329_v20, 1  ;;  %v433_v17 = vld [vmem:[%s3302_s25 + $0x60] sm:$0xff] }
  0x18   : > { %v3344_v28 = vpack.i.bf16 %v697_v24, %v695_v23  ;;  %v3350_v30 = vsel %vm497_vm0, %v502_v11, 0.0  ;;  %v678_v36 = vrot.slane %v3347_v29, 1  ;;  %v679_v37 = vrot.slane %v3333_v22, 1 }
  0x19   : > { %v685_v34 = vsel %vm672_vm1, %v683_v21, %v684_v25  ;;  %v687_v35 = vsel %vm672_vm1, %v684_v25, %v686_v26  ;;  %v681_v41 = vrot.slane %v3350_v30, 1  ;;  %v513_v43 = vrot.slane %v429_v27, 7  ;;  %v434_v25 = vld [vmem:[%s3302_s25 + $0x68] sm:$0xff]  ;;  %v431_v26 = vld [vmem:[%s3302_s25 + $0x50] sm:$0xff] }
  0x1a   : > { %5011 = vst [vmem:[#allocation2_spill] sm:$0xff] %v3344_v28  ;;  %2589 = vrot.lane.b32.xlu2 %v3344_v28, %s3237_s29  ;;  %v3361_v40 = vpack.i.bf16 %v687_v35, %v685_v34  ;;  %v680_v44 = vsel %vm672_vm1, %v678_v36, %v679_v37  ;;  %v514_v45 = vrot.slane %v430_v31, 7  ;;  %v507_v46 = vrot.slane %v425_v32, 7 }
  0x1b   : > { %v508_v47 = vrot.slane %v426_v33, 7  ;;  %v682_v48 = vsel %vm672_vm1, %v679_v37, %v681_v41  ;;  %v3370_v49 = vsel %vm497_vm0, 0.0, %v513_v43  ;;  %v419_v50 = vmul.f32 0.0, %v413_v38 }
  0x1c   : > { %5012 = vst [vmem:[#allocation3_spill] sm:$0xff] %v3361_v40  ;;  %2579 = vrot.lane.b32.xlu1 %v3361_v40, %s3237_s29  ;;  %v420_v51 = vmul.f32 0.0, %v414_v39  ;;  %v3372_v52 = vpack.i.bf16 %v682_v48, %v680_v44  ;;  %v3375_v53 = vsel %vm497_vm0, %v513_v43, %v514_v45  ;;  %v3378_v54 = vsel %vm497_vm0, %v514_v45, 0.0  ;;  %v432_v43 = vld [vmem:[%s3302_s25 + $0x58] sm:$0xff] }
  0x1d   : > { %v698_v55 = vrot.slane %v3370_v49, 1  ;;  %v699_v56 = vrot.slane %v3375_v53, 1  ;;  %v701_v57 = vrot.slane %v3378_v54, 1  ;;  %v3384_v58 = vsel %vm497_vm0, %v507_v46, %v508_v47 }
  0x1e   : > { %5013 = vst [vmem:[#allocation4_spill] sm:$0xff] %v3372_v52  ;;  %2574 = vrot.lane.b32.xlu0 %v3372_v52, %s3237_s29  ;;  %v3390_v60 = vsel %vm497_vm0, 0.0, %v507_v46  ;;  %v3393_v61 = vsel %vm497_vm0, %v508_v47, 0.0  ;;  %v689_v62 = vrot.slane %v3384_v58, 1  ;;  %v498_v63 = vrot.slane %v419_v50, 7  ;;  %v441_v50 = vld [vmem:[%s3302_s25 + $0xa0] sm:$0xff] }
  0x1f   : > { %v700_v1 = vsel %vm672_vm1, %v698_v55, %v699_v56  ;;  %v702_v2 = vsel %vm672_vm1, %v699_v56, %v701_v57  ;;  %v688_v3 = vrot.slane %v3390_v60, 1  ;;  %v691_v4 = vrot.slane %v3393_v61, 1  ;;  %v439_v55 = vld [vmem:[%s3302_s25 + $0x90] sm:$0xff] }
  0x20   : > { %v3401_v5 = vpack.i.bf16 %v702_v2, %v700_v1  ;;  %v499_v6 = vrot.slane %v420_v51, 7  ;;  %v3404_v7 = vsel %vm497_vm0, 0.0, %v498_v63  ;;  %v522_v8 = vrot.slane %v435_v59, 7  ;;  %v442_v51 = vld [vmem:[%s3302_s25 + $0xa8] sm:$0xff] }
  0x21   : > { %5015 = vst [vmem:[#allocation6_spill] sm:$0xff] %v3404_v7  ;;  %v690_v9 = vsel %vm672_vm1, %v688_v3, %v689_v62  ;;  %v692_v10 = vsel %vm672_vm1, %v689_v62, %v691_v4  ;;  %v673_v11 = vrot.slane %v3404_v7, 1  ;;  %v523_v16 = vrot.slane %v436_v0, 7 }
  0x22   : > { %5014 = vst [vmem:[#allocation5_spill] sm:$0xff] %v3401_v5  ;;  %2594 = vrot.lane.b32.xlu2 %v3401_v5, %s3237_s29  ;;  %v3412_v18 = vpack.i.bf16 %v692_v10, %v690_v9  ;;  %v3415_v21 = vsel %vm497_vm0, %v498_v63, %v499_v6  ;;  %v3418_v23 = vsel %vm497_vm0, %v499_v6, 0.0  ;;  %v3421_v24 = vsel %vm497_vm0, 0.0, %v522_v8 }
  0x23   : > { %5017 = vst [vmem:[#allocation8_spill] sm:$0xff] %v3415_v21  ;;  %v674_v27 = vrot.slane %v3415_v21, 1  ;;  %v676_v31 = vrot.slane %v3418_v23, 1  ;;  %v3428_v32 = vsel %vm497_vm0, %v522_v8, %v523_v16  ;;  %v3431_v33 = vsel %vm497_vm0, %v523_v16, 0.0  ;;  %v440_v8 = vld [vmem:[%s3302_s25 + $0x98] sm:$0xff] }
  0x24   : > { %5016 = vst [vmem:[#allocation7_spill] sm:$0xff] %v3412_v18  ;;  %2584 = vrot.lane.b32.xlu1 %v3412_v18, %s3237_s29  ;;  %v713_v34 = vrot.slane %v3421_v24, 1  ;;  %v714_v35 = vrot.slane %v3428_v32, 1  ;;  %v716_v36 = vrot.slane %v3431_v33, 1  ;;  %v519_v37 = vrot.slane %v433_v17, 7 }
  0x25   : > { %v675_v38 = vsel %vm672_vm1, %v673_v11, %v674_v27  ;;  %v677_v39 = vsel %vm672_vm1, %v674_v27, %v676_v31  ;;  %v520_v41 = vrot.slane %v434_v25, 7  ;;  %v516_v44 = vrot.slane %v431_v26, 7 }
  0x26   : > { %v2598_v45 = vpack.i.bf16 %v677_v39, %v675_v38  ;;  %v715_v46 = vsel %vm672_vm1, %v713_v34, %v714_v35  ;;  %v717_v47 = vsel %vm672_vm1, %v714_v35, %v716_v36  ;;  %v3444_v48 = vsel %vm497_vm0, 0.0, %v519_v37 }
  0x27   : > { %v3449_v56 = vpack.i.bf16 %v717_v47, %v715_v46  ;;  %v3452_v57 = vsel %vm497_vm0, %v519_v37, %v520_v41  ;;  %v3455_v59 = vsel %vm497_vm0, %v520_v41, 0.0  ;;  %v708_v62 = vrot.slane %v3444_v48, 1 }
  0x28   : > { %2599 = vrot.lane.b32.xlu0 %v2598_v45, %s3237_s29  ;;  %v709_v63 = vrot.slane %v3452_v57, 1  ;;  %v711_v0 = vrot.slane %v3455_v59, 1  ;;  %v517_v1 = vrot.slane %v432_v43, 7  ;;  %v3462_v2 = vsel %vm497_vm0, 0.0, %v516_v44  ;;  %v438_v45 = vld [vmem:[%s3302_s25 + $0x88] sm:$0xff] }
  0x29   : > { %5018 = vst [vmem:[#allocation9_spill] sm:$0xff] %v3449_v56  ;;  %v703_v3 = vrot.slane %v3462_v2, 1  ;;  %v531_v4 = vrot.slane %v441_v50, 7  ;;  %v532_v6 = vrot.slane %v442_v51, 7  ;;  %v528_v9 = vrot.slane %v439_v55, 7  ;;  %v447_v55 = vld [vmem:[%s3302_s25 + $0xd0] sm:$0xff] }
  0x2a   : > { %2614 = vrot.lane.b32.xlu2 %v3449_v56, %s3237_s29  ;;  %v710_v10 = vsel %vm672_vm1, %v708_v62, %v709_v63  ;;  %v712_v11 = vsel %vm672_vm1, %v709_v63, %v711_v0  ;;  %v3471_v16 = vsel %vm497_vm0, %v516_v44, %v517_v1  ;;  %v3474_v17 = vsel %vm497_vm0, %v517_v1, 0.0  ;;  %v437_v44 = vld [vmem:[%s3302_s25 + $0x80] sm:$0xff]  ;;  %v448_v62 = vld [vmem:[%s3302_s25 + $0xd8] sm:$0xff] }
  0x2b   : > { %v3476_v25 = vpack.i.bf16 %v712_v11, %v710_v10  ;;  %v704_v26 = vrot.slane %v3471_v16, 1  ;;  %v706_v27 = vrot.slane %v3474_v17, 1  ;;  %v3481_v31 = vsel %vm497_vm0, %v531_v4, %v532_v6  ;;  %v445_v63 = vld [vmem:[%s3302_s25 + $0xc0] sm:$0xff] }
  0x2c   : > { %v3484_v34 = vsel %vm497_vm0, 0.0, %v531_v4  ;;  %v3487_v35 = vsel %vm497_vm0, %v532_v6, 0.0  ;;  %v729_v36 = vrot.slane %v3481_v31, 1  ;;  %v529_v37 = vrot.slane %v440_v8, 7 }
  0x2d   : > { %5019 = vst [vmem:[#allocation10_spill] sm:$0xff] %v3476_v25  ;;  %2609 = vrot.lane.b32.xlu1 %v3476_v25, %s3237_s29  ;;  %v705_v38 = vsel %vm672_vm1, %v703_v3, %v704_v26  ;;  %v707_v39 = vsel %vm672_vm1, %v704_v26, %v706_v27  ;;  %v728_v41 = vrot.slane %v3484_v34, 1  ;;  %v731_v43 = vrot.slane %v3487_v35, 1 }
  0x2e   : > { %v3498_v46 = vpack.i.bf16 %v707_v39, %v705_v38  ;;  %v3501_v47 = vsel %vm497_vm0, %v528_v9, %v529_v37  ;;  %v3504_v50 = vsel %vm497_vm0, 0.0, %v528_v9  ;;  %v3507_v51 = vsel %vm497_vm0, %v529_v37, 0.0  ;;  %v446_v37 = vld [vmem:[%s3302_s25 + $0xc8] sm:$0xff] }
  0x2f   : > { %v730_v0 = vsel %vm672_vm1, %v728_v41, %v729_v36  ;;  %v732_v1 = vsel %vm672_vm1, %v729_v36, %v731_v43  ;;  %v723_v3 = vrot.slane %v3504_v50, 1  ;;  %v724_v4 = vrot.slane %v3501_v47, 1 }
  0x30   : > { %5020 = vst [vmem:[#allocation11_spill] sm:$0xff] %v3498_v46  ;;  %2604 = vrot.lane.b32.xlu0 %v3498_v46, %s3237_s29  ;;  %v3518_v6 = vpack.i.bf16 %v732_v1, %v730_v0  ;;  %v726_v8 = vrot.slane %v3507_v51, 1  ;;  %v525_v9 = vrot.slane %v437_v44, 7  ;;  %v526_v10 = vrot.slane %v438_v45, 7 }
  0x31   : > { %v725_v11 = vsel %vm672_vm1, %v723_v3, %v724_v4  ;;  %v540_v26 = vrot.slane %v447_v55, 7  ;;  %v541_v27 = vrot.slane %v448_v62, 7  ;;  %v537_v38 = vrot.slane %v445_v63, 7 }
  0x32   : > { %5021 = vst [vmem:[#allocation12_spill] sm:$0xff] %v3518_v6  ;;  %2629 = vrot.lane.b32.xlu2 %v3518_v6, %s3237_s29  ;;  %v727_v36 = vsel %vm672_vm1, %v724_v4, %v726_v8  ;;  %v3527_v39 = vsel %vm497_vm0, %v525_v9, %v526_v10  ;;  %v3530_v41 = vsel %vm497_vm0, 0.0, %v525_v9  ;;  %v3533_v43 = vsel %vm497_vm0, %v526_v10, 0.0 }
  0x33   : > { %v3535_v44 = vpack.i.bf16 %v727_v36, %v725_v11  ;;  %v718_v45 = vrot.slane %v3530_v41, 1  ;;  %v719_v55 = vrot.slane %v3527_v39, 1  ;;  %v721_v62 = vrot.slane %v3533_v43, 1  ;;  %v443_v11 = vld [vmem:[%s3302_s25 + $0xb0] sm:$0xff]  ;;  %v444_v36 = vld [vmem:[%s3302_s25 + $0xb8] sm:$0xff] }
  0x34   : > { %v3541_v63 = vsel %vm497_vm0, %v540_v26, %v541_v27  ;;  %v3544_v0 = vsel %vm497_vm0, 0.0, %v540_v26  ;;  %v3547_v1 = vsel %vm497_vm0, %v541_v27, 0.0  ;;  %v538_v3 = vrot.slane %v446_v37, 7 }
  0x35   : > { %5022 = vst [vmem:[#allocation13_spill] sm:$0xff] %v3535_v44  ;;  %2624 = vrot.lane.b32.xlu1 %v3535_v44, %s3237_s29  ;;  %v720_v4 = vsel %vm672_vm1, %v718_v45, %v719_v55  ;;  %v722_v8 = vsel %vm672_vm1, %v719_v55, %v721_v62  ;;  %v743_v9 = vrot.slane %v3544_v0, 1  ;;  %v744_v10 = vrot.slane %v3541_v63, 1 }
  0x36   : > { %5023 = vst [vmem:[#allocation14_spill] sm:$0xff] %v3541_v63  ;;  %v3557_v42 = vpack.i.bf16 %v722_v8, %v720_v4  ;;  %v746_v26 = vrot.slane %v3547_v1, 1  ;;  %v3561_v27 = vsel %vm497_vm0, %v537_v38, %v538_v3  ;;  %v3564_v37 = vsel %vm497_vm0, 0.0, %v537_v38 }
  0x37   : > { %5024 = vst [vmem:[#allocation15_spill] sm:$0xff] %v3544_v0  ;;  %v745_v45 = vsel %vm672_vm1, %v743_v9, %v744_v10  ;;  %v3568_v55 = vsel %vm497_vm0, %v538_v3, 0.0  ;;  %v738_v62 = vrot.slane %v3564_v37, 1  ;;  %v739_v4 = vrot.slane %v3561_v27, 1 }
  0x38   : > { %5025 = vst [vmem:[#allocation16_spill] sm:$0xff] %v3557_v42  ;;  %2619 = vrot.lane.b32.xlu0 %v3557_v42, %s3237_s29  ;;  %v747_v8 = vsel %vm672_vm1, %v744_v10, %v746_v26  ;;  %v741_v44 = vrot.slane %v3568_v55, 1  ;;  %v534_v38 = vrot.slane %v443_v11, 7  ;;  %v535_v6 = vrot.slane %v444_v36, 7  ;;  %v449_v11 = vld [vmem:[%s3302_s25 + $0xe0] sm:$0xff]  ;;  %v450_v36 = vld [vmem:[%s3302_s25 + $0xe8] sm:$0xff] }
  0x39   : > { %v3576_v25 = vpack.i.bf16 %v747_v8, %v745_v45  ;;  %v740_v3 = vsel %vm672_vm1, %v738_v62, %v739_v4  ;;  %v759_v9 = vrot.slane %v3347_v29, 2  ;;  %v754_v8 = vrot.slane %v3404_v7, 2 }
  0x3a   : > { %v742_v56 = vsel %vm672_vm1, %v739_v4, %v741_v44  ;;  %v3582_v28 = vsel %vm497_vm0, %v534_v38, %v535_v6  ;;  %v3585_v42 = vsel %vm497_vm0, 0.0, %v534_v38  ;;  %v3588_v10 = vsel %vm497_vm0, %v535_v6, 0.0 }
  0x3b   : > { %5026 = vst [vmem:[#allocation17_spill] sm:$0xff] %v3576_v25  ;;  %2644 = vrot.lane.b32.xlu2 %v3576_v25, %s3237_s29  ;;  %v3594_v26 = vpack.i.bf16 %v742_v56, %v740_v3  ;;  %v733_v45 = vrot.slane %v3585_v42, 1  ;;  %v734_v44 = vrot.slane %v3582_v28, 1  ;;  %v736_v62 = vrot.slane %v3588_v10, 1 }
  0x3c   : > { %v760_v4 = vrot.slane %v3333_v22, 2  ;;  %v755_v6 = vrot.slane %v3415_v21, 2  ;;  %v757_v38 = vrot.slane %v3418_v23, 2  ;;  %v543_v25 = vrot.slane %v449_v11, 7 }
  0x3d   : > { %5027 = vst [vmem:[#allocation18_spill] sm:$0xff] %v3594_v26  ;;  %2639 = vrot.lane.b32.xlu1 %v3594_v26, %s3237_s29  ;;  %v735_v56 = vsel %vm672_vm1, %v733_v45, %v734_v44  ;;  %v737_v3 = vsel %vm672_vm1, %v734_v44, %v736_v62  ;;  %v544_v5 = vrot.slane %v450_v36, 7  ;;  %v5029_v40 = vrot.slane %v3350_v30, 2 }
  0x3e   : > { %v3607_v46 = vpack.i.bf16 %v737_v3, %v735_v56  ;;  %v761_v52 = vsel %vm753_vm2, %v759_v9, %v760_v4  ;;  %v756_v21 = vsel %vm753_vm2, %v754_v8, %v755_v6  ;;  %v758_v26 = vsel %vm753_vm2, %v755_v6, %v757_v38 }
  0x3f   : > { %v763_v7 = vsel %vm753_vm2, %v760_v4, %v5029_v40  ;;  %v3618_v45 = vsel %vm497_vm0, %v543_v25, %v544_v5  ;;  %v3621_v11 = vsel %vm497_vm0, 0.0, %v543_v25  ;;  %v777_v36 = vrot.slane %v3317_v14, 2 }
  0x40   : > { %5028 = vst [vmem:[#allocation19_spill] sm:$0xff] %v3607_v46  ;;  %v3614_v23 = vpack.i.bf16 %v763_v7, %v761_v52  ;;  %2634 = vrot.lane.b32.xlu0 %v3607_v46, %s3237_s29  ;;  %v3627_v30 = vsel %vm497_vm0, %v544_v5, 0.0  ;;  %v748_v40 = vrot.slane %v3621_v11, 1  ;;  %v749_v52 = vrot.slane %v3618_v45, 1 }
  0x41   : > { %v2653_v7 = vpack.i.bf16 %v758_v26, %v756_v21  ;;  %v751_v9 = vrot.slane %v3627_v30, 1  ;;  %v774_v44 = vrot.slane %v3314_v13, 2  ;;  %v775_v25 = vrot.slane %v3311_v12, 2 }
  0x42   : > { %5030 = vst [vmem:[#allocation20_spill] sm:$0xff] %v3614_v23  ;;  %v750_v62 = vsel %vm672_vm1, %v748_v40, %v749_v52  ;;  %v769_v14 = vrot.slane %v3390_v60, 2  ;;  %v770_v4 = vrot.slane %v3384_v58, 2  ;;  %v772_v5 = vrot.slane %v3393_v61, 2 }
  0x43   : > { %2659 = vrot.lane.b32.xlu2 %v3614_v23, %s3238_s30  ;;  %v752_v21 = vsel %vm672_vm1, %v749_v52, %v751_v9  ;;  %v776_v8 = vsel %vm753_vm2, %v774_v44, %v775_v25  ;;  %v778_v6 = vsel %vm753_vm2, %v775_v25, %v777_v36  ;;  %v767_v38 = vrot.slane %v3329_v20, 2 }
  0x44   : > { %v3641_v26 = vpack.i.bf16 %v752_v21, %v750_v62  ;;  %v764_v56 = vrot.slane %v3320_v15, 2  ;;  %v765_v61 = vrot.slane %v3326_v19, 2  ;;  %v771_v3 = vsel %vm753_vm2, %v769_v14, %v770_v4 }
  0x45   : > { %2654 = vrot.lane.b32.xlu1 %v2653_v7, %s3238_s30  ;;  %v773_v40 = vsel %vm753_vm2, %v770_v4, %v772_v5  ;;  %v3651_v23 = vpack.i.bf16 %v778_v6, %v776_v8  ;;  %v789_v52 = vrot.slane %v3444_v48, 2  ;;  %v790_v36 = vrot.slane %v3452_v57, 2 }
  0x46   : > { %5031 = vst [vmem:[#allocation21_spill] sm:$0xff] %v3641_v26  ;;  %v792_v20 = vrot.slane %v3455_v59, 2  ;;  %v3658_v7 = vpack.i.bf16 %v773_v40, %v771_v3  ;;  %v766_v9 = vsel %vm753_vm2, %v764_v56, %v765_v61  ;;  %v768_v44 = vsel %vm753_vm2, %v765_v61, %v767_v38 }
  0x47   : > { %v784_v25 = vrot.slane %v3462_v2, 2  ;;  %v785_v62 = vrot.slane %v3471_v16, 2  ;;  %v787_v14 = vrot.slane %v3474_v17, 2  ;;  %v3667_v4 = vpack.i.bf16 %v768_v44, %v766_v9 }
  0x48   : > { %2649 = vrot.lane.b32.xlu0 %v3641_v26, %s3237_s29  ;;  %v791_v5 = vsel %vm753_vm2, %v789_v52, %v790_v36  ;;  %v793_v59 = vsel %vm753_vm2, %v790_v36, %v792_v20  ;;  %v779_v21 = vrot.slane %v3370_v49, 2  ;;  %v780_v8 = vrot.slane %v3375_v53, 2 }
  0x49   : > { %v782_v6 = vrot.slane %v3378_v54, 2  ;;  %v786_v17 = vsel %vm753_vm2, %v784_v25, %v785_v62  ;;  %v788_v38 = vsel %vm753_vm2, %v785_v62, %v787_v14  ;;  %v3678_v56 = vpack.i.bf16 %v793_v59, %v791_v5 }
  0x4a   : > { %v804_v61 = vrot.slane %v3504_v50, 2  ;;  %v805_v3 = vrot.slane %v3501_v47, 2  ;;  %v807_v40 = vrot.slane %v3507_v51, 2  ;;  %v3685_v52 = vpack.i.bf16 %v788_v38, %v786_v17 }
  0x4b   : > { %2674 = vrot.lane.b32.xlu2 %v3651_v23, %s3238_s30  ;;  %v781_v36 = vsel %vm753_vm2, %v779_v21, %v780_v8  ;;  %v783_v54 = vsel %vm753_vm2, %v780_v8, %v782_v6  ;;  %v799_v20 = vrot.slane %v3530_v41, 2  ;;  %v800_v9 = vrot.slane %v3527_v39, 2 }
  0x4c   : > { %v802_v44 = vrot.slane %v3533_v43, 2  ;;  %v3694_v25 = vpack.i.bf16 %v783_v54, %v781_v36  ;;  %v806_v62 = vsel %vm753_vm2, %v804_v61, %v805_v3  ;;  %v808_v51 = vsel %vm753_vm2, %v805_v3, %v807_v40 }
  0x4d   : > { %2669 = vrot.lane.b32.xlu1 %v3658_v7, %s3238_s30  ;;  %v794_v14 = vrot.slane %v3421_v24, 2  ;;  %v795_v5 = vrot.slane %v3428_v32, 2  ;;  %v797_v59 = vrot.slane %v3431_v33, 2  ;;  %v801_v43 = vsel %vm753_vm2, %v799_v20, %v800_v9 }
  0x4e   : > { %v803_v21 = vsel %vm753_vm2, %v800_v9, %v802_v44  ;;  %v3705_v8 = vpack.i.bf16 %v808_v51, %v806_v62  ;;  %v819_v6 = vrot.slane %v3564_v37, 2  ;;  %v820_v17 = vrot.slane %v3561_v27, 2 }
  0x4f   : > { %v822_v38 = vrot.slane %v3568_v55, 2  ;;  %v3712_v61 = vpack.i.bf16 %v803_v21, %v801_v43  ;;  %v796_v3 = vsel %vm753_vm2, %v794_v14, %v795_v5  ;;  %v798_v33 = vsel %vm753_vm2, %v795_v5, %v797_v59 }
  0x50   : > { %2664 = vrot.lane.b32.xlu0 %v3667_v4, %s3238_s30  ;;  %v814_v40 = vrot.slane %v3585_v42, 2  ;;  %v815_v36 = vrot.slane %v3582_v28, 2  ;;  %v817_v54 = vrot.slane %v3588_v10, 2  ;;  %v3721_v20 = vpack.i.bf16 %v798_v33, %v796_v3 }
  0x51   : > { %v821_v9 = vsel %vm753_vm2, %v819_v6, %v820_v17  ;;  %v823_v55 = vsel %vm753_vm2, %v820_v17, %v822_v38  ;;  %v809_v44 = vrot.slane %v3484_v34, 2  ;;  %v810_v62 = vrot.slane %v3481_v31, 2 }
  0x52   : > { %v812_v51 = vrot.slane %v3487_v35, 2  ;;  %v816_v10 = vsel %vm753_vm2, %v814_v40, %v815_v36  ;;  %v818_v14 = vsel %vm753_vm2, %v815_v36, %v817_v54  ;;  %v3732_v5 = vpack.i.bf16 %v823_v55, %v821_v9 }
  0x53   : > { %2689 = vrot.lane.b32.xlu2 %v3678_v56, %s3238_s30  ;;  %v3736_v59 = vpack.i.bf16 %v818_v14, %v816_v10  ;;  %v811_v43 = vsel %vm753_vm2, %v809_v44, %v810_v62  ;;  %v829_v6 = vrot.slane %v3621_v11, 2  ;;  %v830_v17 = vrot.slane %v3618_v45, 2 }
  0x54   : > { %5032 = vst [vmem:[#allocation22_spill] sm:$0xff] %v3732_v5  ;;  %v813_v21 = vsel %vm753_vm2, %v810_v62, %v812_v51  ;;  %v832_v35 = vrot.slane %v3627_v30, 2  ;;  %v824_v3 = vrot.slane %v3544_v0, 2  ;;  %v825_v33 = vrot.slane %v3541_v63, 2 }
  0x55   : > { %2684 = vrot.lane.b32.xlu1 %v3685_v52, %s3238_s30  ;;  %5033 = vst [vmem:[#allocation23_spill] sm:$0xff] %v3736_v59  ;;  %v3745_v38 = vpack.i.bf16 %v813_v21, %v811_v43  ;;  %v827_v40 = vrot.slane %v3547_v1, 2  ;;  %v831_v36 = vsel %vm753_vm2, %v829_v6, %v830_v17  ;;  %v2733_v30 = vpack.i.bf16 %v3333_v22, %v3347_v29 }
  0x56   : > { %v833_v54 = vsel %vm753_vm2, %v830_v17, %v832_v35  ;;  %v826_v55 = vsel %vm753_vm2, %v824_v3, %v825_v33  ;;  %v3769_v62 = vpack.i.bf16 %v3311_v12, %v3314_v13  ;;  %v3775_v51 = vpack.i.bf16 %v3384_v58, %v3390_v60 }
  0x57   : > { %v3758_v9 = vpack.i.bf16 %v833_v54, %v831_v36  ;;  %v828_v44 = vsel %vm753_vm2, %v825_v33, %v827_v40  ;;  %v3783_v14 = vpack.i.bf16 %v3326_v19, %v3320_v15  ;;  %v3789_v43 = vpack.i.bf16 %v3452_v57, %v3444_v48  ;;  %v451_v36 = vld [vmem:[%s3302_s25 + $0xf0] sm:$0xff]  ;;  %v3829_v54 = vld [vmem:[%s3302_s25 + $0xf8] sm:$0xff]  ;;  %s2519_s25 = sadd.s32 240, %s3296_s22 }
  0x58   : > { %2679 = vrot.lane.b32.xlu0 %v3694_v25, %s3238_s30  ;;  %v3763_v1 = vpack.i.bf16 %v828_v44, %v826_v55  ;;  %5036 = vst [vmem:[#allocation26_spill] sm:$0xff] %v3769_v62  ;;  %v3795_v21 = vpack.i.bf16 %v3471_v16, %v3462_v2  ;;  %v3801_v6 = vpack.i.bf16 %v3375_v53, %v3370_v49  ;;  %v546_v55 = vrot.slane %v451_v36, 7 }
  0x59   : > { %5034 = vst [vmem:[#allocation24_spill] sm:$0xff] %v3758_v9  ;;  %v3809_v35 = vpack.i.bf16 %v3501_v47, %v3504_v50  ;;  %v3815_v3 = vpack.i.bf16 %v3527_v39, %v3530_v41  ;;  %v3821_v33 = vpack.i.bf16 %v3428_v32, %v3421_v24  ;;  %v4989_v44 = vrot.slane %v3829_v54, 7 }
  0x5a   : > { %5035 = vst [vmem:[#allocation25_spill] sm:$0xff] %v3763_v1  ;;  %v3856_v36 = vsel %vm497_vm0, 0.0, %v546_v55 }
  0x5b   : > { %2704 = vrot.lane.b32.xlu2 %v3705_v8, %s3238_s30  ;;  %5037 = vst [vmem:[#allocation27_spill] sm:$0xff] %v3775_v51 }
  0x5c   : > { %5038 = vst [vmem:[#allocation28_spill] sm:$0xff] %v3783_v14 }
  0x5d   : > { %2699 = vrot.lane.b32.xlu1 %v3712_v61, %s3238_s30  ;;  %5039 = vst [vmem:[#allocation29_spill] sm:$0xff] %v3789_v43 }
  0x5e   : > { %5040 = vst [vmem:[#allocation30_spill] sm:$0xff] %v3795_v21 }
  0x5f   : > { %5041 = vst [vmem:[#allocation31_spill] sm:$0xff] %v3801_v6 }
  0x60   : > { %2694 = vrot.lane.b32.xlu0 %v3721_v20, %s3238_s30  ;;  %5042 = vst [vmem:[#allocation32_spill] sm:$0xff] %v3809_v35 }
  0x61   : > { %5043 = vst [vmem:[#allocation33_spill] sm:$0xff] %v3815_v3 }
  0x62   : > { %5044 = vst [vmem:[#allocation34_spill] sm:$0xff] %v3821_v33 }
  0x63   : > { %2719 = vrot.lane.b32.xlu2 %v3732_v5, %s3238_s30 }
  0x65   : > { %2714 = vrot.lane.b32.xlu1 %v3736_v59, %s3238_s30 }
  0x68   : > { %2709 = vrot.lane.b32.xlu0 %v3745_v38, %s3238_s30 }
  0x6b   : > { %2734 = vrot.lane.b32.xlu2 %v2733_v30, %s3239_s6  ;;  %v3833_v30 = vpack.i.bf16 %v3561_v27, %v3564_v37 }
  0x6d   : > { %2729 = vrot.lane.b32.xlu1 %v3758_v9, %s3238_s30  ;;  %5045 = vst [vmem:[#allocation35_spill] sm:$0xff] %v3833_v30 }
  0x70   : > { %2724 = vrot.lane.b32.xlu0 %v3763_v1, %s3238_s30  ;;  %s389_s30 = scalar_lea.vmem %s4952_s2, %s2519_s25 }
  0x73   : > { %2749 = vrot.lane.b32.xlu2 %v3769_v62, %s3239_s6 }
  0x74   : > { %v3779_v10 = vpop.permute.xlu2 %2589 }
  0x75   : > { %2744 = vrot.lane.b32.xlu1 %v3775_v51, %s3239_s6  ;;  %v2591_v1 = vunpack.i.l.bf16 %v3779_v10 }
  0x78   : > { %2739 = vrot.lane.b32.xlu0 %v3783_v14, %s3239_s6 }
  0x7b   : > { %2764 = vrot.lane.b32.xlu2 %v3789_v43, %s3239_s6 }
  0x7c   : > { %v3803_v17 = vpop.permute.xlu2 %2594 }
  0x7d   : > { %2759 = vrot.lane.b32.xlu1 %v3795_v21, %s3239_s6 }
  0x80   : > { %2754 = vrot.lane.b32.xlu0 %v3801_v6, %s3239_s6  ;;  %v3840_v6 = vpack.i.bf16 %v3582_v28, %v3585_v42 }
  0x82   : > { %5046 = vst [vmem:[#allocation36_spill] sm:$0xff] %v3840_v6 }
  0x83   : > { %2779 = vrot.lane.b32.xlu2 %v3809_v35, %s3239_s6 }
  0x84   : > { %v3823_v40 = vpop.permute.xlu2 %2614 }
  0x85   : > { %2774 = vrot.lane.b32.xlu1 %v3815_v3, %s3239_s6  ;;  %v3846_v3 = vpack.i.bf16 %v3481_v31, %v3484_v34 }
  0x87   : > { %5047 = vst [vmem:[#allocation37_spill] sm:$0xff] %v3846_v3 }
  0x88   : > { %2769 = vrot.lane.b32.xlu0 %v3821_v33, %s3239_s6  ;;  %v3853_v33 = vsel %vm497_vm0, %v546_v55, %v4989_v44  ;;  %v3870_v44 = vpack.i.bf16 %v3618_v45, %v3621_v11  ;;  %v3876_v55 = vpack.i.bf16 %v3541_v63, %v3544_v0 }
  0x8a   : > { %5049 = vst [vmem:[#allocation39_spill] sm:$0xff] %v3870_v44 }
  0x8b   : > { %2794 = vrot.lane.b32.xlu2 %v3833_v30, %s3239_s6  ;;  %v3864_v30 = vpack.i.bf16 %v3853_v33, %v3856_v36  ;;  %5050 = vst [vmem:[#allocation40_spill] sm:$0xff] %v3876_v55 }
  0x8c   : > { %v3848_v43 = vpop.permute.xlu2 %2629 }
  0x8d   : > { %2789 = vrot.lane.b32.xlu1 %v3840_v6, %s3239_s6  ;;  %5048 = vst [vmem:[#allocation38_spill] sm:$0xff] %v3864_v30 }
  0x8e   : > { %v3860_v62 = vpop.permute.xlu1 %2579 }
  0x90   : > { %2784 = vrot.lane.b32.xlu0 %v3846_v3, %s3239_s6  ;;  %v2575_v35 = vpop.permute.xlu0 %2574 }
  0x91   : > { %v2577_v51 = vunpack.i.h.bf16 %v2575_v35  ;;  %v2576_v9 = vunpack.i.l.bf16 %v2575_v35  ;;  %v5052_v35 = vld [vmem:[#allocation4_spill] sm:$0xff] }
  0x93   : > { %2809 = vrot.lane.b32.xlu2 %v3864_v30, %s3239_s6  ;;  %v5051_v30 = vld [vmem:[#allocation3_spill] sm:$0xff]  ;;  %v1630_v5 = vsel %vm1626_vm3, %v3333_v22, %v2577_v51 }
  0x94   : > { %v5055_v22 = vld [vmem:[#allocation11_spill] sm:$0xff] }
  0x95   : > { %2804 = vrot.lane.b32.xlu1 %v3870_v44, %s3239_s6  ;;  %v3880_v6 = vpop.permute.xlu2 %2644 }
  0x96   : > { %v3882_v21 = vpop.permute.xlu1 %2584 }
  0x98   : > { %2799 = vrot.lane.b32.xlu0 %v3876_v55, %s3239_s6  ;;  %v1629_v55 = vsel %vm1626_vm3, %v3347_v29, %v2576_v9  ;;  %v5056_v29 = vld [vmem:[#allocation5_spill] sm:$0xff] }
  0x9a   : > { %v3886_v3 = vpop.permute.xlu0 %2599 }
  0x9b   : > { %2824 = vrot.lane.b32.xlu2 %v3412_v18, %s3240_s7 }
  0x9d   : > { %2819 = vrot.lane.b32.xlu1 %v5051_v30, %s3240_s7  ;;  %v2660_v44 = vpop.permute.xlu2 %2659 }
  0x9e   : > { %v2662_v14 = vunpack.i.h.bf16 %v2660_v44  ;;  %v2661_v59 = vunpack.i.l.bf16 %v2660_v44  ;;  %v2592_v44 = vunpack.i.h.bf16 %v3779_v10 }
  0x9f   : > { %v2610_v0 = vpop.permute.xlu1 %2609 }
  0xa0   : > { %2814 = vrot.lane.b32.xlu0 %v5052_v35, %s3240_s7  ;;  %v3899_v18 = vsel %vm1659_vm4, %v1629_v55, %v2661_v59  ;;  %v3902_v63 = vsel %vm1659_vm4, %v1630_v5, %v2662_v14  ;;  %v1636_v59 = vsel %vm1626_vm3, %v3311_v12, %v2592_v44  ;;  %v1635_v5 = vsel %vm1626_vm3, %v3314_v13, %v2591_v1  ;;  %v5057_v55 = vld [vmem:[#allocation2_spill] sm:$0xff]  ;;  %v5060_v12 = vld [vmem:[#allocation9_spill] sm:$0xff] }
  0xa1   : > { %5053 = vst [vmem:[#allocation4_spill] sm:$0xff] %v3899_v18  ;;  %v2612_v18 = vunpack.i.h.bf16 %v2610_v0 }
  0xa2   : > { %5054 = vst [vmem:[#allocation41_spill] sm:$0xff] %v3902_v63  ;;  %v3904_v30 = vpop.permute.xlu0 %2604  ;;  %v5059_v63 = vld [vmem:[#allocation16_spill] sm:$0xff] }
  0xa3   : > { %2839 = vrot.lane.b32.xlu2 %v5055_v22, %s3240_s7 }
  0xa5   : > { %2834 = vrot.lane.b32.xlu1 %v5056_v29, %s3240_s7  ;;  %v2675_v9 = vpop.permute.xlu2 %2674 }
  0xa6   : > { %v2677_v51 = vunpack.i.h.bf16 %v2675_v9  ;;  %v2676_v35 = vunpack.i.l.bf16 %v2675_v9  ;;  %v2611_v9 = vunpack.i.l.bf16 %v2610_v0 }
  0xa7   : > { %v2625_v14 = vpop.permute.xlu1 %2624 }
  0xa8   : > { %2829 = vrot.lane.b32.xlu0 %v5057_v55, %s3240_s7  ;;  %v3919_v10 = vsel %vm1659_vm4, %v1636_v59, %v2677_v51  ;;  %v3922_v22 = vsel %vm1659_vm4, %v1635_v5, %v2676_v35  ;;  %v1642_v51 = vsel %vm1626_vm3, %v3452_v57, %v2612_v18  ;;  %v1641_v35 = vsel %vm1626_vm3, %v3444_v48, %v2611_v9  ;;  %v5061_v5 = vld [vmem:[#allocation10_spill] sm:$0xff]  ;;  %v5064_v57 = vld [vmem:[#allocation12_spill] sm:$0xff] }
  0xa9   : > { %5058 = vst [vmem:[#allocation42_spill] sm:$0xff] %v3922_v22  ;;  %v2627_v55 = vunpack.i.h.bf16 %v2625_v14  ;;  %v2602_v18 = vunpack.i.h.bf16 %v3886_v3  ;;  %v2601_v48 = vunpack.i.l.bf16 %v3886_v3  ;;  %v5069_v22 = vld [vmem:[#allocation6_spill] sm:$0xff] }
  0xaa   : > { %v3924_v29 = vpop.permute.xlu0 %2619 }
  0xab   : > { %2854 = vrot.lane.b32.xlu2 %v5059_v63, %s3240_s7 }
  0xad   : > { %2849 = vrot.lane.b32.xlu1 %v5060_v12, %s3240_s7  ;;  %v2690_v13 = vpop.permute.xlu2 %2689 }
  0xae   : > { %v2692_v1 = vunpack.i.h.bf16 %v2690_v13  ;;  %v2691_v44 = vunpack.i.l.bf16 %v2690_v13  ;;  %v2626_v13 = vunpack.i.l.bf16 %v2625_v14 }
  0xaf   : > { %v2640_v59 = vpop.permute.xlu1 %2639 }
  0xb0   : > { %2844 = vrot.lane.b32.xlu0 %v5061_v5, %s3240_s7  ;;  %v3937_v0 = vsel %vm1659_vm4, %v1642_v51, %v2692_v1  ;;  %v3940_v63 = vsel %vm1659_vm4, %v1641_v35, %v2691_v44  ;;  %v1648_v44 = vsel %vm1626_vm3, %v3501_v47, %v2627_v55  ;;  %v1647_v35 = vsel %vm1626_vm3, %v3504_v50, %v2626_v13  ;;  %v5065_v5 = vld [vmem:[#allocation13_spill] sm:$0xff] }
  0xb1   : > { %5062 = vst [vmem:[#allocation43_spill] sm:$0xff] %v3937_v0  ;;  %v5068_v0 = vld [vmem:[#allocation8_spill] sm:$0xff]  ;;  %v1627_v47 = vsel %vm1626_vm3, %v5069_v22, %v2601_v48  ;;  %v2586_v22 = vunpack.i.l.bf16 %v3882_v21 }
  0xb2   : > { %5063 = vst [vmem:[#allocation44_spill] sm:$0xff] %v3940_v63  ;;  %v3942_v12 = vpop.permute.xlu0 %2634 }
  0xb3   : > { %2869 = vrot.lane.b32.xlu2 %v3607_v46, %s3240_s7 }
  0xb5   : > { %2864 = vrot.lane.b32.xlu1 %v5064_v57, %s3240_s7  ;;  %v2705_v9 = vpop.permute.xlu2 %2704 }
  0xb6   : > { %v2707_v1 = vunpack.i.h.bf16 %v2705_v9  ;;  %v2706_v51 = vunpack.i.l.bf16 %v2705_v9  ;;  %v1628_v9 = vsel %vm1626_vm3, %v5068_v0, %v2602_v18  ;;  %v836_v18 = vrot.slane %v3856_v36, 1 }
  0xb7   : > { %v2655_v14 = vpop.permute.xlu1 %2654 }
  0xb8   : > { %2859 = vrot.lane.b32.xlu0 %v5065_v5, %s3240_s7  ;;  %v3957_v46 = vsel %vm1659_vm4, %v1648_v44, %v2707_v1  ;;  %v3960_v3 = vsel %vm1659_vm4, %v1647_v35, %v2706_v51  ;;  %v2657_v57 = vunpack.i.h.bf16 %v2655_v14  ;;  %v2656_v63 = vunpack.i.l.bf16 %v2655_v14  ;;  %v5072_v5 = vld [vmem:[#allocation18_spill] sm:$0xff] }
  0xb9   : > { %5066 = vst [vmem:[#allocation45_spill] sm:$0xff] %v3957_v46  ;;  %v5070_v1 = vrot.slane %v3829_v54, 7  ;;  %v2587_v51 = vunpack.i.h.bf16 %v3882_v21  ;;  %v2642_v35 = vunpack.i.h.bf16 %v2640_v59  ;;  %v2641_v14 = vunpack.i.l.bf16 %v2640_v59 }
  0xba   : > { %5067 = vst [vmem:[#allocation46_spill] sm:$0xff] %v3960_v3  ;;  %v1660_v50 = vsel %vm1659_vm4, %v1627_v47, %v2656_v63  ;;  %v1661_v55 = vsel %vm1659_vm4, %v1628_v9, %v2657_v57  ;;  %v3968_v13 = vpop.permute.xlu0 %2649  ;;  %v5071_v63 = vld [vmem:[#allocation17_spill] sm:$0xff]  ;;  %v837_v54 = vrot.slane %v3853_v33, 1  ;;  %v2582_v57 = vunpack.i.h.bf16 %v3860_v62 }
  0xbb   : > { %v3973_v44 = vsel %vm497_vm0, %v5070_v1, 0.0  ;;  %2884 = vrot.lane.b32.xlu2 %v3641_v26, %s3240_s7  ;;  %v2581_v9 = vunpack.i.l.bf16 %v3860_v62  ;;  %v1634_v1 = vsel %vm1626_vm3, %v3384_v58, %v2587_v51  ;;  %v1654_v21 = vsel %vm1626_vm3, %v3561_v27, %v2642_v35 }
  0xbc   : > { %v839_v48 = vrot.slane %v3973_v44, 1  ;;  %v1653_v26 = vsel %vm1626_vm3, %v3564_v37, %v2641_v14  ;;  %v1633_v58 = vsel %vm1626_vm3, %v3390_v60, %v2586_v22  ;;  %v838_v27 = vsel %vm672_vm1, %v836_v18, %v837_v54 }
  0xbd   : > { %2879 = vrot.lane.b32.xlu1 %v5071_v63, %s3240_s7  ;;  %v2720_v0 = vpop.permute.xlu2 %2719  ;;  %v1631_v60 = vsel %vm1626_vm3, %v3320_v15, %v2581_v9  ;;  %v2607_v22 = vunpack.i.h.bf16 %v3904_v30  ;;  %v2606_v18 = vunpack.i.l.bf16 %v3904_v30  ;;  %v2597_v15 = vunpack.i.h.bf16 %v3803_v17 }
  0xbe   : > { %v2722_v59 = vunpack.i.h.bf16 %v2720_v0  ;;  %v2721_v47 = vunpack.i.l.bf16 %v2720_v0  ;;  %v840_v51 = vsel %vm672_vm1, %v837_v54, %v839_v48  ;;  %v5073_v48 = vld [vmem:[#allocation20_spill] sm:$0xff]  ;;  %v2596_v9 = vunpack.i.l.bf16 %v3803_v17 }
  0xbf   : > { %v2670_v63 = vpop.permute.xlu1 %2669 }
  0xc0   : > { %2874 = vrot.lane.b32.xlu0 %v5072_v5, %s3240_s7  ;;  %v3995_v3 = vsel %vm1659_vm4, %v1654_v21, %v2722_v59  ;;  %v3998_v62 = vsel %vm1659_vm4, %v1653_v26, %v2721_v47  ;;  %v2672_v0 = vunpack.i.h.bf16 %v2670_v63  ;;  %v2671_v46 = vunpack.i.l.bf16 %v2670_v63 }
  0xc1   : > { %v1632_v26 = vsel %vm1626_vm3, %v3326_v19, %v2582_v57  ;;  %v4013_v63 = vpack.i.bf16 %v840_v51, %v838_v27  ;;  %v1639_v27 = vsel %vm1626_vm3, %v3462_v2, %v2606_v18  ;;  %v2621_v2 = vunpack.i.l.bf16 %v3924_v29 }
  0xc2   : > { %v1667_v37 = vsel %vm1659_vm4, %v1634_v1, %v2672_v0  ;;  %v1666_v35 = vsel %vm1659_vm4, %v1633_v58, %v2671_v46  ;;  %v2665_v14 = vpop.permute.xlu0 %2664  ;;  %v1640_v58 = vsel %vm1626_vm3, %v3471_v16, %v2607_v22  ;;  %v2622_v16 = vunpack.i.h.bf16 %v3924_v29 }
  0xc3   : > { %v2667_v5 = vunpack.i.h.bf16 %v2665_v14  ;;  %v2666_v59 = vunpack.i.l.bf16 %v2665_v14  ;;  %2899 = vrot.lane.b32.xlu2 %v3667_v4, %s3241_s8 }
  0xc5   : > { %v4017_v46 = vsel %vm1659_vm4, %v1632_v26, %v2667_v5  ;;  %v4020_v54 = vsel %vm1659_vm4, %v1631_v60, %v2666_v59  ;;  %2894 = vrot.lane.b32.xlu1 %v5073_v48, %s3241_s8  ;;  %v2735_v19 = vpop.permute.xlu2 %2734 }
  0xc6   : > { %v2737_v57 = vunpack.i.h.bf16 %v2735_v19  ;;  %v2736_v47 = vunpack.i.l.bf16 %v2735_v19 }
  0xc7   : > { %v2685_v1 = vpop.permute.xlu1 %2684 }
  0xc8   : > { %2889 = vrot.lane.b32.xlu0 %v4013_v63, %s3240_s7  ;;  %v4029_v30 = vsel %vm1692_vm5, %v1660_v50, %v2736_v47  ;;  %v4032_v5 = vsel %vm1692_vm5, %v1661_v55, %v2737_v57  ;;  %v2687_v21 = vunpack.i.h.bf16 %v2685_v1  ;;  %v2686_v0 = vunpack.i.l.bf16 %v2685_v1 }
  0xc9   : > { %v1638_v50 = vsel %vm1626_vm3, %v3375_v53, %v2597_v15  ;;  %v1637_v55 = vsel %vm1626_vm3, %v3370_v49, %v2596_v9  ;;  %v2617_v53 = vunpack.i.h.bf16 %v3823_v40  ;;  %v2616_v49 = vunpack.i.l.bf16 %v3823_v40 }
  0xca   : > { %v1672_v17 = vsel %vm1659_vm4, %v1639_v27, %v2686_v0  ;;  %v1673_v51 = vsel %vm1659_vm4, %v1640_v58, %v2687_v21  ;;  %v2680_v14 = vpop.permute.xlu0 %2679  ;;  %v1646_v1 = vsel %vm1626_vm3, %v3527_v39, %v2622_v16  ;;  %v1645_v21 = vsel %vm1626_vm3, %v3530_v41, %v2621_v2 }
  0xcb   : > { %v2682_v59 = vunpack.i.h.bf16 %v2680_v14  ;;  %v2681_v26 = vunpack.i.l.bf16 %v2680_v14  ;;  %2914 = vrot.lane.b32.xlu2 %v3694_v25, %s3241_s8  ;;  %v2637_v39 = vunpack.i.h.bf16 %v3942_v12  ;;  %v2636_v41 = vunpack.i.l.bf16 %v3942_v12 }
  0xcd   : > { %v4049_v60 = vsel %vm1659_vm4, %v1638_v50, %v2682_v59  ;;  %v4052_v22 = vsel %vm1659_vm4, %v1637_v55, %v2681_v26  ;;  %2909 = vrot.lane.b32.xlu1 %v3651_v23, %s3241_s8  ;;  %v2750_v18 = vpop.permute.xlu2 %2749 }
  0xce   : > { %v2752_v48 = vunpack.i.h.bf16 %v2750_v18  ;;  %v2751_v19 = vunpack.i.l.bf16 %v2750_v18 }
  0xcf   : > { %v2700_v57 = vpop.permute.xlu1 %2699 }
  0xd0   : > { %2904 = vrot.lane.b32.xlu0 %v3658_v7, %s3241_s8  ;;  %v4061_v29 = vsel %vm1692_vm5, %v1666_v35, %v2751_v19  ;;  %v4064_v47 = vsel %vm1692_vm5, %v1667_v37, %v2752_v48  ;;  %v2702_v15 = vunpack.i.h.bf16 %v2700_v57  ;;  %v2701_v9 = vunpack.i.l.bf16 %v2700_v57 }
  0xd1   : > { %v1644_v37 = vsel %vm1626_vm3, %v3428_v32, %v2617_v53  ;;  %v1643_v35 = vsel %vm1626_vm3, %v3421_v24, %v2616_v49  ;;  %v2632_v32 = vunpack.i.h.bf16 %v3848_v43  ;;  %v2631_v24 = vunpack.i.l.bf16 %v3848_v43 }
  0xd2   : > { %v1678_v40 = vsel %vm1659_vm4, %v1645_v21, %v2701_v9  ;;  %v1679_v0 = vsel %vm1659_vm4, %v1646_v1, %v2702_v15  ;;  %v2695_v58 = vpop.permute.xlu0 %2694  ;;  %v1652_v53 = vsel %vm1626_vm3, %v3582_v28, %v2637_v39  ;;  %v1651_v49 = vsel %vm1626_vm3, %v3585_v42, %v2636_v41 }
  0xd3   : > { %v2697_v27 = vunpack.i.h.bf16 %v2695_v58  ;;  %v2696_v14 = vunpack.i.l.bf16 %v2695_v58  ;;  %2929 = vrot.lane.b32.xlu2 %v3721_v20, %s3241_s8  ;;  %v2652_v28 = vunpack.i.h.bf16 %v3968_v13  ;;  %v2651_v42 = vunpack.i.l.bf16 %v3968_v13 }
  0xd5   : > { %v4081_v59 = vsel %vm1659_vm4, %v1644_v37, %v2697_v27  ;;  %v4084_v26 = vsel %vm1659_vm4, %v1643_v35, %v2696_v14  ;;  %2924 = vrot.lane.b32.xlu1 %v3678_v56, %s3241_s8  ;;  %v2765_v50 = vpop.permute.xlu2 %2764 }
  0xd6   : > { %v2767_v55 = vunpack.i.h.bf16 %v2765_v50  ;;  %v2766_v16 = vunpack.i.l.bf16 %v2765_v50 }
  0xd7   : > { %v2715_v2 = vpop.permute.xlu1 %2714 }
  0xd8   : > { %2919 = vrot.lane.b32.xlu0 %v3685_v52, %s3241_s8  ;;  %v4093_v12 = vsel %vm1692_vm5, %v1672_v17, %v2766_v16  ;;  %v4096_v18 = vsel %vm1692_vm5, %v1673_v51, %v2767_v55  ;;  %v2717_v48 = vunpack.i.h.bf16 %v2715_v2  ;;  %v2716_v19 = vunpack.i.l.bf16 %v2715_v2 }
  0xd9   : > { %v1650_v17 = vsel %vm1626_vm3, %v3481_v31, %v2632_v32  ;;  %v1649_v51 = vsel %vm1626_vm3, %v3484_v34, %v2631_v24  ;;  %v2647_v31 = vunpack.i.h.bf16 %v3880_v6  ;;  %v2646_v34 = vunpack.i.l.bf16 %v3880_v6 }
  0xda   : > { %v1684_v43 = vsel %vm1659_vm4, %v1651_v49, %v2716_v19  ;;  %v1685_v57 = vsel %vm1659_vm4, %v1652_v53, %v2717_v48  ;;  %v2710_v15 = vpop.permute.xlu0 %2709  ;;  %v1658_v55 = vsel %vm1626_vm3, %v3618_v45, %v2652_v28  ;;  %v1657_v16 = vsel %vm1626_vm3, %v3621_v11, %v2651_v42  ;;  %v5074_v53 = vld [vmem:[#allocation25_spill] sm:$0xff]  ;;  %v5075_v45 = vld [vmem:[#allocation14_spill] sm:$0xff]  ;;  %v5076_v11 = vld [vmem:[#allocation15_spill] sm:$0xff] }
  0xdb   : > { %v2712_v9 = vunpack.i.h.bf16 %v2710_v15  ;;  %v2711_v1 = vunpack.i.l.bf16 %v2710_v15  ;;  %2944 = vrot.lane.b32.xlu2 %v3745_v38, %s3241_s8  ;;  %v841_v6 = vrot.slane %v3856_v36, 2  ;;  %v1656_v49 = vsel %vm1626_vm3, %v5075_v45, %v2647_v31  ;;  %v5082_v45 = vld [vmem:[#allocation24_spill] sm:$0xff] }
  0xdc   : > { %v1655_v36 = vsel %vm1626_vm3, %v5076_v11, %v2646_v34 }
  0xdd   : > { %v4113_v21 = vsel %vm1659_vm4, %v1650_v17, %v2712_v9  ;;  %v4116_v58 = vsel %vm1659_vm4, %v1649_v51, %v2711_v1  ;;  %2939 = vrot.lane.b32.xlu1 %v3705_v8, %s3241_s8  ;;  %v2780_v27 = vpop.permute.xlu2 %2779 }
  0xde   : > { %v2782_v14 = vunpack.i.h.bf16 %v2780_v27  ;;  %v2781_v37 = vunpack.i.l.bf16 %v2780_v27  ;;  %v5078_v27 = vld [vmem:[#allocation23_spill] sm:$0xff] }
  0xdf   : > { %v2730_v35 = vpop.permute.xlu1 %2729 }
  0xe0   : > { %2934 = vrot.lane.b32.xlu0 %v3712_v61, %s3241_s8  ;;  %v4125_v13 = vsel %vm1692_vm5, %v1678_v40, %v2781_v37  ;;  %v4128_v39 = vsel %vm1692_vm5, %v1679_v0, %v2782_v14  ;;  %v2732_v41 = vunpack.i.h.bf16 %v2730_v35  ;;  %v2731_v50 = vunpack.i.l.bf16 %v2730_v35 }
  0xe1   : > { %v842_v40 = vrot.slane %v3853_v33, 2  ;;  %v844_v0 = vrot.slane %v3973_v44, 2  ;;  %v5077_v33 = vld [vmem:[#allocation22_spill] sm:$0xff] }
  0xe2   : > { %v1690_v32 = vsel %vm1659_vm4, %v1657_v16, %v2731_v50  ;;  %v1691_v24 = vsel %vm1659_vm4, %v1658_v55, %v2732_v41  ;;  %v2725_v2 = vpop.permute.xlu0 %2724 }
  0xe3   : > { %v2727_v48 = vunpack.i.h.bf16 %v2725_v2  ;;  %v2726_v19 = vunpack.i.l.bf16 %v2725_v2  ;;  %2959 = vrot.lane.b32.xlu2 %v5074_v53, %s3241_s8  ;;  %v843_v51 = vsel %vm753_vm2, %v841_v6, %v842_v40  ;;  %v845_v28 = vsel %vm753_vm2, %v842_v40, %v844_v0  ;;  %v5080_v2 = vld [vmem:[#allocation41_spill] sm:$0xff]  ;;  %v5081_v40 = vld [vmem:[#allocation4_spill] sm:$0xff] }
  0xe4   : > { %v4163_v35 = vpack.i.bf16 %v845_v28, %v843_v51 }
  0xe5   : > { %v4146_v15 = vsel %vm1659_vm4, %v1656_v49, %v2727_v48  ;;  %v4149_v9 = vsel %vm1659_vm4, %v1655_v36, %v2726_v19  ;;  %2954 = vrot.lane.b32.xlu1 %v5077_v33, %s3241_s8  ;;  %v2795_v44 = vpop.permute.xlu2 %2794 }
  0xe6   : > { %v2797_v1 = vunpack.i.h.bf16 %v2795_v44  ;;  %v2796_v17 = vunpack.i.l.bf16 %v2795_v44 }
  0xe7   : > { %v2745_v42 = vpop.permute.xlu1 %2744 }
  0xe8   : > { %2949 = vrot.lane.b32.xlu0 %v5078_v27, %s3241_s8  ;;  %v4158_v14 = vsel %vm1692_vm5, %v1684_v43, %v2796_v17  ;;  %v4161_v37 = vsel %vm1692_vm5, %v1685_v57, %v2797_v1  ;;  %v2747_v31 = vunpack.i.h.bf16 %v2745_v42  ;;  %v2746_v34 = vunpack.i.l.bf16 %v2745_v42  ;;  %v5079_v43 = vld [vmem:[#allocation28_spill] sm:$0xff] }
  0xea   : > { %v1697_v41 = vsel %vm1692_vm5, %v4020_v54, %v2746_v34  ;;  %v1698_v50 = vsel %vm1692_vm5, %v4017_v46, %v2747_v31  ;;  %v2740_v55 = vpop.permute.xlu0 %2739  ;;  %v5083_v31 = vld [vmem:[#allocation27_spill] sm:$0xff] }
  0xeb   : > { %v2742_v16 = vunpack.i.h.bf16 %v2740_v55  ;;  %v2741_v6 = vunpack.i.l.bf16 %v2740_v55  ;;  %2974 = vrot.lane.b32.xlu2 %v5079_v43, %s3242_s9 }
  0xed   : > { %v4173_v57 = vsel %vm1692_vm5, %v5080_v2, %v2742_v16  ;;  %v4177_v0 = vsel %vm1692_vm5, %v5081_v40, %v2741_v6  ;;  %2969 = vrot.lane.b32.xlu1 %v4163_v35, %s3241_s8  ;;  %v2810_v54 = vpop.permute.xlu2 %2809  ;;  %v5085_v6 = vld [vmem:[#allocation3_spill] sm:$0xff] }
  0xee   : > { %v2812_v46 = vunpack.i.h.bf16 %v2810_v54  ;;  %v2811_v48 = vunpack.i.l.bf16 %v2810_v54 }
  0xef   : > { %v2760_v19 = vpop.permute.xlu1 %2759 }
  0xf0   : > { %2964 = vrot.lane.b32.xlu0 %v5082_v45, %s3241_s8  ;;  %v4184_v49 = vsel %vm1692_vm5, %v1690_v32, %v2811_v48  ;;  %v4187_v11 = vsel %vm1692_vm5, %v1691_v24, %v2812_v46  ;;  %v2762_v36 = vunpack.i.h.bf16 %v2760_v19  ;;  %v2761_v44 = vunpack.i.l.bf16 %v2760_v19  ;;  %v5084_v24 = vld [vmem:[#allocation42_spill] sm:$0xff]  ;;  %s4745_s8 = scalar_lea.vmem %s4954_s4, %s3296_s22  ;;  %s2481_s22 = sshll.u32 %s5121_s18, 1 }
  0xf2   : > { %v1703_v1 = vsel %vm1692_vm5, %v4052_v22, %v2761_v44  ;;  %v1704_v17 = vsel %vm1692_vm5, %v4049_v60, %v2762_v36  ;;  %v2755_v51 = vpop.permute.xlu0 %2754  ;;  %v5086_v36 = vld [vmem:[#allocation11_spill] sm:$0xff] }
  0xf3   : > { %v2757_v28 = vunpack.i.h.bf16 %v2755_v51  ;;  %v2756_v42 = vunpack.i.l.bf16 %v2755_v51  ;;  %2989 = vrot.lane.b32.xlu2 %v5083_v31, %s3242_s9  ;;  %v5087_v44 = vld [vmem:[#allocation43_spill] sm:$0xff] }
  0xf5   : > { %v4197_v32 = vsel %vm1692_vm5, %v3919_v10, %v2757_v28  ;;  %v4201_v34 = vsel %vm1692_vm5, %v5084_v24, %v2756_v42  ;;  %2984 = vrot.lane.b32.xlu1 %v3667_v4, %s3243_s10  ;;  %v2825_v60 = vpop.permute.xlu2 %2824  ;;  %v5089_v28 = vld [vmem:[#allocation7_spill] sm:$0xff]  ;;  %v5090_v24 = vld [vmem:[#allocation30_spill] sm:$0xff] }
  0xf6   : > { %v2827_v22 = vunpack.i.h.bf16 %v2825_v60  ;;  %v2826_v55 = vunpack.i.l.bf16 %v2825_v60 }
  0xf7   : > { %v2775_v16 = vpop.permute.xlu1 %2774 }
  0xf8   : > { %2979 = vrot.lane.b32.xlu0 %v5085_v6, %s3244_s11  ;;  %v4208_v10 = vsel %vm1725_vm6, %v1697_v41, %v2826_v55  ;;  %v4211_v43 = vsel %vm1725_vm6, %v1698_v50, %v2827_v22  ;;  %v2777_v2 = vunpack.i.h.bf16 %v2775_v16  ;;  %v2776_v40 = vunpack.i.l.bf16 %v2775_v16  ;;  %v5088_v50 = vld [vmem:[#allocation44_spill] sm:$0xff] }
  0xfa   : > { %v1709_v4 = vsel %vm1692_vm5, %v4084_v26, %v2776_v40  ;;  %v1710_v54 = vsel %vm1692_vm5, %v4081_v59, %v2777_v2  ;;  %v2770_v46 = vpop.permute.xlu0 %2769 }
  0xfb   : > { %v2772_v48 = vunpack.i.h.bf16 %v2770_v46  ;;  %v2771_v19 = vunpack.i.l.bf16 %v2770_v46  ;;  %3004 = vrot.lane.b32.xlu2 %v5086_v36, %s3244_s11  ;;  %v5092_v36 = vld [vmem:[#allocation45_spill] sm:$0xff] }
  0xfd   : > { %v4221_v41 = vsel %vm1692_vm5, %v5087_v44, %v2772_v48  ;;  %v4225_v51 = vsel %vm1692_vm5, %v5088_v50, %v2771_v19  ;;  %2999 = vrot.lane.b32.xlu1 %v5089_v28, %s3244_s11  ;;  %v2840_v26 = vpop.permute.xlu2 %2839  ;;  %v5091_v19 = vld [vmem:[#allocation32_spill] sm:$0xff] }
  0xfe   : > { %v2842_v42 = vunpack.i.h.bf16 %v2840_v26  ;;  %v2841_v59 = vunpack.i.l.bf16 %v2840_v26 }
  0xff   : > { %v2790_v31 = vpop.permute.xlu1 %2789 }
 0x100   : > { %2994 = vrot.lane.b32.xlu0 %v5090_v24, %s3242_s9  ;;  %v4232_v60 = vsel %vm1725_vm6, %v1703_v1, %v2841_v59  ;;  %v4235_v22 = vsel %vm1725_vm6, %v1704_v17, %v2842_v42  ;;  %v2792_v55 = vunpack.i.h.bf16 %v2790_v31  ;;  %v2791_v16 = vunpack.i.l.bf16 %v2790_v31  ;;  %v5093_v17 = vld [vmem:[#allocation46_spill] sm:$0xff] }
 0x102   : > { %v1715_v6 = vsel %vm1692_vm5, %v4116_v58, %v2791_v16  ;;  %v1716_v2 = vsel %vm1692_vm5, %v4113_v21, %v2792_v55  ;;  %v2785_v40 = vpop.permute.xlu0 %2784 }
 0x103   : > { %v2787_v46 = vunpack.i.h.bf16 %v2785_v40  ;;  %v2786_v48 = vunpack.i.l.bf16 %v2785_v40  ;;  %3019 = vrot.lane.b32.xlu2 %v5091_v19, %s3242_s9  ;;  %v5095_v19 = vld [vmem:[#allocation13_spill] sm:$0xff] }
 0x105   : > { %v4245_v1 = vsel %vm1692_vm5, %v5092_v36, %v2787_v46  ;;  %v4249_v44 = vsel %vm1692_vm5, %v5093_v17, %v2786_v48  ;;  %3014 = vrot.lane.b32.xlu1 %v3685_v52, %s3243_s10  ;;  %v2855_v58 = vpop.permute.xlu2 %2854  ;;  %v5094_v46 = vld [vmem:[#allocation26_spill] sm:$0xff] }
 0x106   : > { %v2857_v50 = vunpack.i.h.bf16 %v2855_v58  ;;  %v2856_v21 = vunpack.i.l.bf16 %v2855_v58 }
 0x107   : > { %v2805_v28 = vpop.permute.xlu1 %2804 }
 0x108   : > { %3009 = vrot.lane.b32.xlu0 %v3658_v7, %s3243_s10  ;;  %v4256_v26 = vsel %vm1725_vm6, %v1709_v4, %v2856_v21  ;;  %v4259_v42 = vsel %vm1725_vm6, %v1710_v54, %v2857_v50  ;;  %v2807_v59 = vunpack.i.h.bf16 %v2805_v28  ;;  %v2806_v31 = vunpack.i.l.bf16 %v2805_v28 }
 0x10a   : > { %v1721_v24 = vsel %vm1692_vm5, %v4149_v9, %v2806_v31  ;;  %v1722_v52 = vsel %vm1692_vm5, %v4146_v15, %v2807_v59  ;;  %v2800_v55 = vpop.permute.xlu0 %2799  ;;  %v5096_v59 = vld [vmem:[#allocation10_spill] sm:$0xff] }
 0x10b   : > { %v2802_v16 = vunpack.i.h.bf16 %v2800_v55  ;;  %v2801_v40 = vunpack.i.l.bf16 %v2800_v55  ;;  %3034 = vrot.lane.b32.xlu2 %v5094_v46, %s3242_s9 }
 0x10d   : > { %v4269_v7 = vsel %vm1692_vm5, %v3995_v3, %v2802_v16  ;;  %v4273_v4 = vsel %vm1692_vm5, %v3998_v62, %v2801_v40  ;;  %3029 = vrot.lane.b32.xlu1 %v3705_v8, %s3243_s10  ;;  %v2870_v9 = vpop.permute.xlu2 %2869  ;;  %v5098_v40 = vld [vmem:[#allocation29_spill] sm:$0xff] }
 0x10e   : > { %v2872_v54 = vunpack.i.h.bf16 %v2870_v9  ;;  %v2871_v15 = vunpack.i.l.bf16 %v2870_v9 }
 0x10f   : > { %v2820_v48 = vpop.permute.xlu1 %2819 }
 0x110   : > { %3024 = vrot.lane.b32.xlu0 %v5095_v19, %s3244_s11  ;;  %v4280_v36 = vsel %vm1725_vm6, %v1715_v6, %v2871_v15  ;;  %v4283_v3 = vsel %vm1725_vm6, %v1716_v2, %v2872_v54  ;;  %v2822_v17 = vunpack.i.h.bf16 %v2820_v48  ;;  %v2821_v58 = vunpack.i.l.bf16 %v2820_v48 }
 0x112   : > { %v4287_v62 = vsel %vm1725_vm6, %v4177_v0, %v2821_v58  ;;  %v4291_v8 = vsel %vm1725_vm6, %v4173_v57, %v2822_v17  ;;  %v2815_v50 = vpop.permute.xlu0 %2814  ;;  %v5097_v0 = vld [vmem:[#allocation2_spill] sm:$0xff]  ;;  %v5099_v58 = vld [vmem:[#allocation37_spill] sm:$0xff] }
 0x113   : > { %v2817_v21 = vunpack.i.h.bf16 %v2815_v50  ;;  %v2816_v28 = vunpack.i.l.bf16 %v2815_v50  ;;  %3049 = vrot.lane.b32.xlu2 %v5096_v59, %s3244_s11 }
 0x115   : > { %v4297_v6 = vsel %vm1725_vm6, %v4029_v30, %v2816_v28  ;;  %v4301_v2 = vsel %vm1725_vm6, %v4032_v5, %v2817_v21  ;;  %3044 = vrot.lane.b32.xlu1 %v5097_v0, %s3244_s11  ;;  %v2885_v31 = vpop.permute.xlu2 %2884 }
 0x116   : > { %v2887_v57 = vunpack.i.h.bf16 %v2885_v31  ;;  %v2886_v55 = vunpack.i.l.bf16 %v2885_v31  ;;  %v5100_v31 = vld [vmem:[#allocation17_spill] sm:$0xff] }
 0x117   : > { %v2835_v16 = vpop.permute.xlu1 %2834 }
 0x118   : > { %3039 = vrot.lane.b32.xlu0 %v5098_v40, %s3242_s9  ;;  %v4308_v46 = vsel %vm1725_vm6, %v1721_v24, %v2886_v55  ;;  %v4311_v30 = vsel %vm1725_vm6, %v1722_v52, %v2887_v57  ;;  %v2837_v9 = vunpack.i.h.bf16 %v2835_v16  ;;  %v2836_v54 = vunpack.i.l.bf16 %v2835_v16  ;;  %v5101_v57 = vld [vmem:[#allocation12_spill] sm:$0xff] }
 0x119   : > { %v5102_v55 = vld [vmem:[#allocation40_spill] sm:$0xff] }
 0x11a   : > { %v4315_v5 = vsel %vm1725_vm6, %v4201_v34, %v2836_v54  ;;  %v4319_v15 = vsel %vm1725_vm6, %v4197_v32, %v2837_v9  ;;  %v2830_v48 = vpop.permute.xlu0 %2829 }
 0x11b   : > { %v2832_v19 = vunpack.i.h.bf16 %v2830_v48  ;;  %v2831_v17 = vunpack.i.l.bf16 %v2830_v48  ;;  %3064 = vrot.lane.b32.xlu2 %v5099_v58, %s3242_s9 }
 0x11d   : > { %v4325_v24 = vsel %vm1725_vm6, %v4064_v47, %v2832_v19  ;;  %v4329_v52 = vsel %vm1725_vm6, %v4061_v29, %v2831_v17  ;;  %3059 = vrot.lane.b32.xlu1 %v3678_v56, %s3243_s10  ;;  %v4333_v34 = vpop.permute.xlu2 %2899  ;;  %v5103_v19 = vld [vmem:[#allocation31_spill] sm:$0xff] }
 0x11f   : > { %v2850_v32 = vpop.permute.xlu1 %2849 }
 0x120   : > { %3054 = vrot.lane.b32.xlu0 %v3651_v23, %s3243_s10  ;;  %v2852_v50 = vunpack.i.h.bf16 %v2850_v32  ;;  %v2851_v21 = vunpack.i.l.bf16 %v2850_v32 }
 0x122   : > { %v1740_v28 = vsel %vm1725_vm6, %v4225_v51, %v2851_v21  ;;  %v1741_v47 = vsel %vm1725_vm6, %v4221_v41, %v2852_v50  ;;  %v2845_v59 = vpop.permute.xlu0 %2844 }
 0x123   : > { %v2847_v29 = vunpack.i.h.bf16 %v2845_v59  ;;  %v2846_v0 = vunpack.i.l.bf16 %v2845_v59  ;;  %3079 = vrot.lane.b32.xlu2 %v5100_v31, %s3244_s11 }
 0x125   : > { %v4345_v56 = vsel %vm1725_vm6, %v4093_v12, %v2846_v0  ;;  %v4349_v23 = vsel %vm1725_vm6, %v4096_v18, %v2847_v29  ;;  %3074 = vrot.lane.b32.xlu1 %v5101_v57, %s3244_s11  ;;  %v4353_v51 = vpop.permute.xlu2 %2914 }
 0x127   : > { %v2865_v41 = vpop.permute.xlu1 %2864 }
 0x128   : > { %3069 = vrot.lane.b32.xlu0 %v5102_v55, %s3242_s9  ;;  %v2867_v16 = vunpack.i.h.bf16 %v2865_v41  ;;  %v2866_v40 = vunpack.i.l.bf16 %v2865_v41  ;;  %v5104_v41 = vld [vmem:[#allocation9_spill] sm:$0xff] }
 0x12a   : > { %v1746_v9 = vsel %vm1725_vm6, %v4249_v44, %v2866_v40  ;;  %v1747_v12 = vsel %vm1725_vm6, %v4245_v1, %v2867_v16  ;;  %v2860_v54 = vpop.permute.xlu0 %2859  ;;  %v5106_v40 = vld [vmem:[#allocation34_spill] sm:$0xff] }
 0x12b   : > { %v2862_v18 = vunpack.i.h.bf16 %v2860_v54  ;;  %v2861_v48 = vunpack.i.l.bf16 %v2860_v54  ;;  %3094 = vrot.lane.b32.xlu2 %v5103_v19, %s3242_s9 }
 0x12d   : > { %v4365_v17 = vsel %vm1725_vm6, %v4125_v13, %v2861_v48  ;;  %v4369_v58 = vsel %vm1725_vm6, %v4128_v39, %v2862_v18  ;;  %3089 = vrot.lane.b32.xlu1 %v5074_v53, %s3243_s10  ;;  %v2930_v44 = vpop.permute.xlu2 %2929 }
 0x12e   : > { %v2932_v32 = vunpack.i.h.bf16 %v2930_v44  ;;  %v2931_v1 = vunpack.i.l.bf16 %v2930_v44 }
 0x12f   : > { %v2880_v50 = vpop.permute.xlu1 %2879 }
 0x130   : > { %3084 = vrot.lane.b32.xlu0 %v3745_v38, %s3243_s10  ;;  %v4376_v21 = vsel %vm1758_vm7, %v1740_v28, %v2931_v1  ;;  %v4379_v13 = vsel %vm1758_vm7, %v1741_v47, %v2932_v32  ;;  %v2882_v59 = vunpack.i.h.bf16 %v2880_v50  ;;  %v2881_v39 = vunpack.i.l.bf16 %v2880_v50  ;;  %v5105_v47 = vld [vmem:[#allocation5_spill] sm:$0xff]  ;;  %v5107_v32 = vld [vmem:[#allocation36_spill] sm:$0xff] }
 0x132   : > { %v1752_v29 = vsel %vm1725_vm6, %v4273_v4, %v2881_v39  ;;  %v1753_v53 = vsel %vm1725_vm6, %v4269_v7, %v2882_v59  ;;  %v2875_v0 = vpop.permute.xlu0 %2874 }
 0x133   : > { %v2877_v31 = vunpack.i.h.bf16 %v2875_v0  ;;  %v2876_v57 = vunpack.i.l.bf16 %v2875_v0  ;;  %3109 = vrot.lane.b32.xlu2 %v5104_v41, %s3244_s11  ;;  %v2524_v41 = vld [vmem:[%s4953_s3 + $0x18] sm:$0xff] }
 0x135   : > { %v4389_v38 = vsel %vm1725_vm6, %v4158_v14, %v2876_v57  ;;  %v4393_v28 = vsel %vm1725_vm6, %v4161_v37, %v2877_v31  ;;  %3104 = vrot.lane.b32.xlu1 %v5105_v47, %s3244_s11  ;;  %v2945_v4 = vpop.permute.xlu2 %2944  ;;  %v1914_v37 = vld [vmem:[%s4953_s3 + $0x20] sm:$0xf] }
 0x136   : > { %v2947_v55 = vunpack.i.h.bf16 %v2945_v4  ;;  %v2946_v7 = vunpack.i.l.bf16 %v2945_v4  ;;  %v1932_v18 = vunpack.c.l.b16 %v1914_v37 }
 0x137   : > { %v4397_v16 = vpop.permute.xlu1 %2894 }
 0x138   : > { %3099 = vrot.lane.b32.xlu0 %v5106_v40, %s3242_s9  ;;  %v4402_v54 = vsel %vm1758_vm7, %v1746_v9, %v2946_v7  ;;  %v4405_v14 = vsel %vm1758_vm7, %v1747_v12, %v2947_v55  ;;  %v1937_v1 = vpack.c.b16 %v1932_v18, %v1932_v18  ;;  %v5108_v55 = vld [vmem:[#allocation21_spill] sm:$0xff]  ;;  %v2523_v7 = vld [vmem:[%s4953_s3 + $0x10] sm:$0xff]  ;;  %v5109_v40 = vld [vmem:[#allocation19_spill] sm:$0xff] }
 0x13a   : > { %v2890_v48 = vpop.permute.xlu0 %2889  ;;  %v1993_v59 = vsel %vm1991_vm8, %v1937_v1, 0 }
 0x13b   : > { %v2892_v19 = vunpack.i.h.bf16 %v2890_v48  ;;  %v2891_v44 = vunpack.i.l.bf16 %v2890_v48  ;;  %3124 = vrot.lane.b32.xlu2 %v5107_v32, %s3242_s9  ;;  %1998 = vmatpush.bf16.msra.mxu0 %v1993_v59  ;;  %v5110_v48 = vld [vmem:[#allocation39_spill] sm:$0xff] }
 0x13c   : > { %2526 = vmatpush.bf16.msra.mxu1 %v1993_v59  ;;  %2527 = vmatpush.bf16.msra.mxu2 %v1993_v59 }
 0x13d   : > { %v4414_v9 = vsel %vm1725_vm6, %v4184_v49, %v2891_v44  ;;  %v4418_v12 = vsel %vm1725_vm6, %v4187_v11, %v2892_v19  ;;  %3119 = vrot.lane.b32.xlu1 %v3721_v20, %s3243_s10  ;;  %v2960_v50 = vpop.permute.xlu2 %2959  ;;  %2528 = vmatpush.bf16.msra.mxu3 %v1993_v59 }
 0x13e   : > { %v2962_v39 = vunpack.i.h.bf16 %v2960_v50  ;;  %v2961_v0 = vunpack.i.l.bf16 %v2960_v50 }
 0x13f   : > { %v2910_v31 = vpop.permute.xlu1 %2909  ;;  %1999 = vmatpush.bf16.msra.mxu0 %v2524_v41 }
 0x140   : > { %3114 = vrot.lane.b32.xlu0 %v3694_v25, %s3243_s10  ;;  %v4425_v49 = vsel %vm1758_vm7, %v1752_v29, %v2961_v0  ;;  %v4428_v11 = vsel %vm1758_vm7, %v1753_v53, %v2962_v39  ;;  %v2912_v57 = vunpack.i.h.bf16 %v2910_v31  ;;  %v2911_v20 = vunpack.i.l.bf16 %v2910_v31  ;;  %2529 = vmatpush.bf16.msra.mxu1 %v2524_v41  ;;  %v5111_v39 = vld [vmem:[#allocation33_spill] sm:$0xff]  ;;  %v2521_v0 = vld [vmem:[%s4953_s3] sm:$0xff] }
 0x141   : > { %2530 = vmatpush.bf16.msra.mxu2 %v2524_v41  ;;  %2531 = vmatpush.bf16.msra.mxu3 %v2524_v41  ;;  %v454_v41 = vld [vmem:[%s389_s30 + $0x8] sm:$0xff] }
 0x142   : > { %v4435_v47 = vsel %vm1758_vm7, %v4329_v52, %v2911_v20  ;;  %v4439_v4 = vsel %vm1758_vm7, %v4325_v24, %v2912_v57  ;;  %v2905_v25 = vpop.permute.xlu0 %2904 }
 0x143   : > { %v2907_v29 = vunpack.i.h.bf16 %v2905_v25  ;;  %v2906_v53 = vunpack.i.l.bf16 %v2905_v25  ;;  %3139 = vrot.lane.b32.xlu2 %v5108_v55, %s3244_s11  ;;  %2000 = vmatpush.bf16.msra.mxu0 %v2523_v7  ;;  %v460_v55 = vmul.f32 0.0, %v454_v41 }
 0x144   : > { %2532 = vmatpush.bf16.msra.mxu1 %v2523_v7 }
 0x145   : > { %v4448_v52 = vsel %vm1758_vm7, %v4208_v10, %v2906_v53  ;;  %v4452_v24 = vsel %vm1758_vm7, %v4211_v43, %v2907_v29  ;;  %3134 = vrot.lane.b32.xlu1 %v5109_v40, %s3244_s11  ;;  %v4456_v37 = vpop.permute.xlu2 %2974  ;;  %2533 = vmatpush.bf16.msra.mxu2 %v2523_v7  ;;  %v2522_v43 = vld [vmem:[%s4953_s3 + $0x8] sm:$0xff]  ;;  %v5113_v40 = vld [vmem:[#allocation16_spill] sm:$0xff] }
 0x146   : > { %2534 = vmatpush.bf16.msra.mxu3 %v2523_v7  ;;  %v5112_v53 = vld [vmem:[#allocation35_spill] sm:$0xff] }
 0x147   : > { %v2925_v18 = vpop.permute.xlu1 %2924  ;;  %2001 = vmatpush.bf16.msra.mxu0 %v2522_v43 }
 0x148   : > { %3129 = vrot.lane.b32.xlu0 %v5110_v48, %s3242_s9  ;;  %v2927_v19 = vunpack.i.h.bf16 %v2925_v18  ;;  %v2926_v10 = vunpack.i.l.bf16 %v2925_v18  ;;  %2535 = vmatpush.bf16.msra.mxu1 %v2522_v43 }
 0x149   : > { %2536 = vmatpush.bf16.msra.mxu2 %v2522_v43 }
 0x14a   : > { %v4465_v44 = vsel %vm1758_vm7, %v4345_v56, %v2926_v10  ;;  %v4469_v32 = vsel %vm1758_vm7, %v4349_v23, %v2927_v19  ;;  %v2920_v1 = vpop.permute.xlu0 %2919  ;;  %2537 = vmatpush.bf16.msra.mxu3 %v2522_v43  ;;  %v550_v19 = vrot.slane %v460_v55, 7 }
 0x14b   : > { %v2922_v50 = vunpack.i.h.bf16 %v2920_v1  ;;  %v2921_v59 = vunpack.i.l.bf16 %v2920_v1  ;;  %3154 = vrot.lane.b32.xlu2 %v5111_v39, %s3242_s9  ;;  %2002 = vmatpush.bf16.msra.mxu0 %v2521_v0 }
 0x14c   : > { %2538 = vmatpush.bf16.msra.mxu1 %v2521_v0 }
 0x14d   : > { %v4479_v56 = vsel %vm1758_vm7, %v4232_v60, %v2921_v59  ;;  %v4483_v23 = vsel %vm1758_vm7, %v4235_v22, %v2922_v50  ;;  %3149 = vrot.lane.b32.xlu1 %v5082_v45, %s3243_s10  ;;  %2539 = vmatpush.bf16.msra.mxu2 %v2521_v0  ;;  %v4492_v20 = vpop.permute.xlu2 %2989  ;;  %v453_v22 = vld [vmem:[%s389_s30] sm:$0xff] }
 0x14e   : > { %2540 = vmatpush.bf16.msra.mxu3 %v2521_v0  ;;  %v5114_v0 = vld [vmem:[#allocation18_spill] sm:$0xff] }
 0x14f   : > { %v2940_v31 = vpop.permute.xlu1 %2939 }
 0x150   : > { %3144 = vrot.lane.b32.xlu0 %v5078_v27, %s3243_s10  ;;  %v2942_v60 = vunpack.i.h.bf16 %v2940_v31  ;;  %v2941_v57 = vunpack.i.l.bf16 %v2940_v31  ;;  %v459_v27 = vmul.f32 0.0, %v453_v22 }
 0x152   : > { %v4496_v45 = vsel %vm1758_vm7, %v4365_v17, %v2941_v57  ;;  %v4500_v25 = vsel %vm1758_vm7, %v4369_v58, %v2942_v60  ;;  %v4502_v29 = vpop.permute.xlu0 %2934  ;;  %v549_v48 = vrot.slane %v459_v27, 7  ;;  %v639_v57 = vsel %vm497_vm0, %v550_v19, 0.0 }
 0x153   : > { %3169 = vrot.lane.b32.xlu2 %v5112_v53, %s3242_s9 }
 0x154   : > { %v551_v59 = vsel %vm497_vm0, %v549_v48, %v550_v19  ;;  %v621_v39 = vsel %vm497_vm0, 0.0, %v549_v48 }
 0x155   : > { %3164 = vrot.lane.b32.xlu1 %v3712_v61, %s3243_s10  ;;  %v4518_v1 = vpop.permute.xlu2 %3004  ;;  %v3198_v60 = vpack.i.bf16 %v551_v59, %v621_v39  ;;  %v853_v53 = vrot.slane %v621_v39, 2  ;;  %v854_v55 = vrot.slane %v551_v59, 2 }
 0x157   : > { %v2955_v7 = vpop.permute.xlu1 %2954 }
 0x158   : > { %3159 = vrot.lane.b32.xlu0 %v5113_v40, %s3244_s11  ;;  %v2957_v17 = vunpack.i.h.bf16 %v2955_v7  ;;  %v2956_v18 = vunpack.i.l.bf16 %v2955_v7  ;;  %v856_v7 = vrot.slane %v639_v57, 2 }
 0x15a   : > { %v4512_v58 = vsel %vm1758_vm7, %v4389_v38, %v2956_v18  ;;  %v4516_v10 = vsel %vm1758_vm7, %v4393_v28, %v2957_v17  ;;  %v2950_v43 = vpop.permute.xlu0 %2949  ;;  %v848_v18 = vrot.slane %v621_v39, 1  ;;  %v857_v39 = vsel %vm753_vm2, %v854_v55, %v856_v7 }
 0x15b   : > { %v2952_v61 = vunpack.i.h.bf16 %v2950_v43  ;;  %v2951_v50 = vunpack.i.l.bf16 %v2950_v43  ;;  %3184 = vrot.lane.b32.xlu2 %v4013_v63, %s3244_s11  ;;  %v5115_v63 = vld [vmem:[#allocation38_spill] sm:$0xff]  ;;  %v851_v43 = vrot.slane %v639_v57, 1 }
 0x15d   : > { %v4526_v38 = vsel %vm1758_vm7, %v4280_v36, %v2951_v50  ;;  %v4530_v28 = vsel %vm1758_vm7, %v4283_v3, %v2952_v61  ;;  %3179 = vrot.lane.b32.xlu1 %v5114_v0, %s3244_s11  ;;  %v4546_v48 = vpop.permute.xlu2 %3019  ;;  %v2896_v61 = vunpack.i.l.bf16 %v4397_v16  ;;  %v855_v50 = vsel %vm753_vm2, %v853_v53, %v854_v55 }
 0x15e   : > { %v2897_v0 = vunpack.i.h.bf16 %v4397_v16 }
 0x15f   : > { %v2970_v31 = vpop.permute.xlu1 %2969  ;;  %v1759_v57 = vsel %vm1758_vm7, %v4297_v6, %v2896_v61  ;;  %v2916_v61 = vunpack.i.l.bf16 %v4353_v51 }
 0x160   : > { %3174 = vrot.lane.b32.xlu0 %v5115_v63, %s3242_s9  ;;  %v2972_v22 = vunpack.i.h.bf16 %v2970_v31  ;;  %v2971_v41 = vunpack.i.l.bf16 %v2970_v31 }
 0x162   : > { %v4539_v36 = vsel %vm1758_vm7, %v4414_v9, %v2971_v41  ;;  %v4543_v3 = vsel %vm1758_vm7, %v4418_v12, %v2972_v22  ;;  %v2965_v27 = vpop.permute.xlu0 %2964  ;;  %v849_v12 = vrot.slane %v551_v59, 1  ;;  %v3208_v59 = vpack.i.bf16 %v857_v39, %v855_v50 }
 0x163   : > { %v2967_v40 = vunpack.i.h.bf16 %v2965_v27  ;;  %v2966_v17 = vunpack.i.l.bf16 %v2965_v27  ;;  %3199 = vrot.lane.b32.xlu2 %v3198_v60, %s3242_s9  ;;  %v2976_v60 = vunpack.i.l.bf16 %v4456_v37  ;;  %v1760_v41 = vsel %vm1758_vm7, %v4301_v2, %v2897_v0 }
 0x165   : > { %v4550_v19 = vsel %vm1758_vm7, %v4308_v46, %v2966_v17  ;;  %v4554_v9 = vsel %vm1758_vm7, %v4311_v30, %v2967_v40  ;;  %3194 = vrot.lane.b32.xlu1 %v4163_v35, %s3243_s10  ;;  %v2977_v46 = vunpack.i.h.bf16 %v4456_v37  ;;  %v850_v35 = vsel %vm672_vm1, %v848_v18, %v849_v12  ;;  %v4579_v2 = vpop.permute.xlu2 %3034 }
 0x166   : > { %v852_v30 = vsel %vm672_vm1, %v849_v12, %v851_v43  ;;  %v2917_v43 = vunpack.i.h.bf16 %v4353_v51  ;;  %v2991_v51 = vunpack.i.l.bf16 %v4492_v20 }
 0x167   : > { %v2985_v31 = vpop.permute.xlu1 %2984  ;;  %v1793_v27 = vsel %vm1791_vm9, %v1760_v41, %v2977_v46  ;;  %v3203_v55 = vpack.i.bf16 %v852_v30, %v850_v35  ;;  %v1767_v46 = vsel %vm1758_vm7, %v4315_v5, %v2916_v61  ;;  %v3007_v35 = vunpack.i.h.bf16 %v4518_v1 }
 0x168   : > { %3189 = vrot.lane.b32.xlu0 %v5077_v33, %s3243_s10  ;;  %v2987_v63 = vunpack.i.h.bf16 %v2985_v31  ;;  %v2986_v22 = vunpack.i.l.bf16 %v2985_v31  ;;  %v1792_v33 = vsel %vm1791_vm9, %v1759_v57, %v2976_v60  ;;  %v2901_v31 = vunpack.i.l.bf16 %v4333_v34 }
 0x169   : > { %v1768_v60 = vsel %vm1758_vm7, %v4319_v15, %v2917_v43  ;;  %v3006_v30 = vunpack.i.l.bf16 %v4518_v1 }
 0x16a   : > { %v2980_v16 = vpop.permute.xlu0 %2979  ;;  %v1761_v15 = vsel %vm1758_vm7, %v4287_v62, %v2901_v31 }
 0x16b   : > { %v2982_v37 = vunpack.i.h.bf16 %v2980_v16  ;;  %v2981_v53 = vunpack.i.l.bf16 %v2980_v16 }
 0x16d   : > { %v1825_v7 = vsel %vm1824_vm10, %v1792_v33, %v2981_v53  ;;  %v1826_v40 = vsel %vm1824_vm10, %v1793_v27, %v2982_v37  ;;  %3209 = vrot.lane.b32.xlu1 %v3208_v59, %s3243_s10  ;;  %v2902_v59 = vunpack.i.h.bf16 %v4333_v34  ;;  %v3050_v33 = vpop.permute.xlu2 %3049 }
 0x16e   : > { %v1858_v6 = vsel %vm1857_vm11, %v1825_v7, %v2986_v22  ;;  %v1859_v17 = vsel %vm1857_vm11, %v1826_v40, %v2987_v63  ;;  %v2992_v22 = vunpack.i.h.bf16 %v4492_v20 }
 0x16f   : > { %v1890_v18 = vpack.c.bf16 %v1859_v17, %v1858_v6  ;;  %v3000_v12 = vpop.permute.xlu1 %2999  ;;  %v1762_v27 = vsel %vm1758_vm7, %v4291_v8, %v2902_v59 }
 0x170   : > { %3204 = vrot.lane.b32.xlu0 %v3203_v55, %s3244_s11  ;;  %v3002_v41 = vunpack.i.h.bf16 %v3000_v12  ;;  %v3001_v5 = vunpack.i.l.bf16 %v3000_v12  ;;  %v1794_v55 = vsel %vm1791_vm9, %v1761_v15, %v2991_v51  ;;  %v1795_v6 = vsel %vm1791_vm9, %v1762_v27, %v2992_v22  ;;  %s411_s11 = scalar_lea.vmem %s4955_s5, %s2481_s22 }
 0x171   : > { %2498 = vmatmul.msk.bf16.vlgmr.msra.gmra.mxu0 %vm1942_vm12, %v1890_v18  ;;  %v3052_v27 = vunpack.i.h.bf16 %v3050_v33 }
 0x172   : > { %v2995_v50 = vpop.permute.xlu0 %2994  ;;  %v1827_v12 = vsel %vm1824_vm10, %v1794_v55, %v3001_v5  ;;  %v1828_v43 = vsel %vm1824_vm10, %v1795_v6, %v3002_v41  ;;  %v3051_v55 = vunpack.i.l.bf16 %v3050_v33 }
 0x173   : > { %v2997_v39 = vunpack.i.h.bf16 %v2995_v50  ;;  %v2996_v0 = vunpack.i.l.bf16 %v2995_v50 }
 0x175   : > { %v1800_v57 = vsel %vm1791_vm9, %v1767_v46, %v2996_v0  ;;  %v1801_v63 = vsel %vm1791_vm9, %v1768_v60, %v2997_v39  ;;  %v2937_v39 = vunpack.i.h.bf16 %v4502_v29  ;;  %v2936_v0 = vunpack.i.l.bf16 %v4502_v29 }
 0x176   : > { %v1833_v1 = vsel %vm1824_vm10, %v1800_v57, %v3006_v30  ;;  %v1834_v34 = vsel %vm1824_vm10, %v1801_v63, %v3007_v35  ;;  %v3022_v46 = vunpack.i.h.bf16 %v4546_v48  ;;  %v3021_v60 = vunpack.i.l.bf16 %v4546_v48  ;;  %v4621_v63 = vpop.permute.xlu2 %3064 }
 0x177   : > { %v3015_v16 = vpop.permute.xlu1 %3014  ;;  %v1775_v51 = vsel %vm1758_vm7, %v4256_v26, %v2936_v0  ;;  %v1776_v57 = vsel %vm1758_vm7, %v4259_v42, %v2937_v39 }
 0x178   : > { %v3017_v37 = vunpack.i.h.bf16 %v3015_v16  ;;  %v3016_v53 = vunpack.i.l.bf16 %v3015_v16  ;;  %v1808_v16 = vsel %vm1791_vm9, %v1775_v51, %v3021_v60  ;;  %v1809_v41 = vsel %vm1791_vm9, %v1776_v57, %v3022_v46 }
 0x17a   : > { %v3010_v7 = vpop.permute.xlu0 %3009  ;;  %v1866_v20 = vsel %vm1857_vm11, %v1833_v1, %v3016_v53  ;;  %v1867_v40 = vsel %vm1857_vm11, %v1834_v34, %v3017_v37 }
 0x17b   : > { %v3012_v17 = vunpack.i.h.bf16 %v3010_v7  ;;  %v3011_v18 = vunpack.i.l.bf16 %v3010_v7  ;;  %v1894_v62 = vpack.c.bf16 %v1867_v40, %v1866_v20  ;;  %v3036_v20 = vunpack.i.l.bf16 %v4579_v2 }
 0x17d   : > { %2502 = vmatmul.msk.bf16.vlgmr.msra.gmra.mxu1 %vm1942_vm12, %v1894_v62  ;;  %v1860_v8 = vsel %vm1857_vm11, %v1827_v12, %v3011_v18  ;;  %v1861_v61 = vsel %vm1857_vm11, %v1828_v43, %v3012_v17  ;;  %v3037_v17 = vunpack.i.h.bf16 %v4579_v2 }
 0x17e   : > { %v1891_v50 = vpack.c.bf16 %v1861_v61, %v1860_v8  ;;  %v3080_v7 = vpop.permute.xlu2 %3079 }
 0x17f   : > { %v3030_v31 = vpop.permute.xlu1 %3029 }
 0x180   : > { %v3032_v35 = vunpack.i.h.bf16 %v3030_v31  ;;  %v3031_v30 = vunpack.i.l.bf16 %v3030_v31 }
 0x181   : > { %2499 = vmatmul.msk.bf16.gmra.mxu0 %vm1942_vm12, %v1891_v50  ;;  %v1796_v50 = vsel %vm1791_vm9, %v4448_v52, %v3036_v20 }
 0x182   : > { %v3025_v59 = vpop.permute.xlu0 %3024 }
 0x183   : > { %v3027_v22 = vunpack.i.h.bf16 %v3025_v59  ;;  %v3026_v29 = vunpack.i.l.bf16 %v3025_v59 }
 0x185   : > { %v1841_v48 = vsel %vm1824_vm10, %v1808_v16, %v3026_v29  ;;  %v1842_v5 = vsel %vm1824_vm10, %v1809_v41, %v3027_v22  ;;  %v3082_v16 = vunpack.i.h.bf16 %v3080_v7  ;;  %v3081_v41 = vunpack.i.l.bf16 %v3080_v7 }
 0x186   : > { %v1874_v37 = vsel %vm1857_vm11, %v1841_v48, %v3031_v30  ;;  %v1875_v53 = vsel %vm1857_vm11, %v1842_v5, %v3032_v35  ;;  %v3095_v51 = vpop.permute.xlu2 %3094  ;;  %v3066_v48 = vunpack.i.l.bf16 %v4621_v63 }
 0x187   : > { %v1898_v26 = vpack.c.bf16 %v1875_v53, %v1874_v37  ;;  %v3045_v15 = vpop.permute.xlu1 %3044  ;;  %v3067_v53 = vunpack.i.h.bf16 %v4621_v63 }
 0x188   : > { %v3047_v62 = vunpack.i.h.bf16 %v3045_v15  ;;  %v3046_v12 = vunpack.i.l.bf16 %v3045_v15  ;;  %v1810_v20 = vsel %vm1791_vm9, %v4496_v45, %v3066_v48 }
 0x189   : > { %2506 = vmatmul.msk.bf16.vlgmr.msra.gmra.mxu2 %vm1942_vm12, %v1898_v26  ;;  %v1811_v63 = vsel %vm1791_vm9, %v4500_v25, %v3067_v53 }
 0x18a   : > { %v3040_v42 = vpop.permute.xlu0 %3039  ;;  %v1829_v60 = vsel %vm1824_vm10, %v1796_v50, %v3046_v12 }
 0x18b   : > { %v3042_v1 = vunpack.i.h.bf16 %v3040_v42  ;;  %v3041_v34 = vunpack.i.l.bf16 %v3040_v42 }
 0x18d   : > { %v1802_v40 = vsel %vm1791_vm9, %v4479_v56, %v3041_v34  ;;  %v1803_v6 = vsel %vm1791_vm9, %v4483_v23, %v3042_v1  ;;  %v1797_v23 = vsel %vm1791_vm9, %v4452_v24, %v3037_v17 }
 0x18e   : > { %v1835_v61 = vsel %vm1824_vm10, %v1802_v40, %v3051_v55  ;;  %v1836_v33 = vsel %vm1824_vm10, %v1803_v6, %v3052_v27  ;;  %v1830_v35 = vsel %vm1824_vm10, %v1797_v23, %v3047_v62  ;;  %v3110_v27 = vpop.permute.xlu2 %3109  ;;  %v3096_v23 = vunpack.i.l.bf16 %v3095_v51 }
 0x18f   : > { %v3060_v18 = vpop.permute.xlu1 %3059 }
 0x190   : > { %v3062_v43 = vunpack.i.h.bf16 %v3060_v18  ;;  %v3061_v8 = vunpack.i.l.bf16 %v3060_v18 }
 0x192   : > { %v3055_v39 = vpop.permute.xlu0 %3054  ;;  %v1868_v56 = vsel %vm1857_vm11, %v1835_v61, %v3061_v8  ;;  %v1869_v0 = vsel %vm1857_vm11, %v1836_v33, %v3062_v43 }
 0x193   : > { %v3057_v2 = vunpack.i.h.bf16 %v3055_v39  ;;  %v3056_v31 = vunpack.i.l.bf16 %v3055_v39  ;;  %v1895_v46 = vpack.c.bf16 %v1869_v0, %v1868_v56  ;;  %v3112_v56 = vunpack.i.h.bf16 %v3110_v27 }
 0x194   : > { %v3111_v0 = vunpack.i.l.bf16 %v3110_v27 }
 0x195   : > { %v1862_v30 = vsel %vm1857_vm11, %v1829_v60, %v3056_v31  ;;  %v1863_v59 = vsel %vm1857_vm11, %v1830_v35, %v3057_v2  ;;  %2503 = vmatmul.msk.bf16.gmra.mxu1 %vm1942_vm12, %v1895_v46  ;;  %v3097_v46 = vunpack.i.h.bf16 %v3095_v51 }
 0x196   : > { %v1892_v52 = vpack.c.bf16 %v1863_v59, %v1862_v30  ;;  %v3125_v50 = vpop.permute.xlu2 %3124 }
 0x197   : > { %v3075_v57 = vpop.permute.xlu1 %3074 }
 0x198   : > { %2500 = vmatmul.msk.bf16.gmra.mxu0 %vm1942_vm12, %v1892_v52  ;;  %v3077_v15 = vunpack.i.h.bf16 %v3075_v57  ;;  %v3076_v42 = vunpack.i.l.bf16 %v3075_v57 }
 0x19a   : > { %v3070_v22 = vpop.permute.xlu0 %3069  ;;  %v1843_v62 = vsel %vm1824_vm10, %v1810_v20, %v3076_v42  ;;  %v1844_v12 = vsel %vm1824_vm10, %v1811_v63, %v3077_v15 }
 0x19b   : > { %v3072_v24 = vunpack.i.h.bf16 %v3070_v22  ;;  %v3071_v29 = vunpack.i.l.bf16 %v3070_v22 }
 0x19d   : > { %v1816_v5 = vsel %vm1791_vm9, %v4512_v58, %v3071_v29  ;;  %v1817_v37 = vsel %vm1791_vm9, %v4516_v10, %v3072_v24  ;;  %v1798_v24 = vsel %vm1791_vm9, %v4435_v47, %v3096_v23 }
 0x19e   : > { %v1849_v55 = vsel %vm1824_vm10, %v1816_v5, %v3081_v41  ;;  %v1850_v7 = vsel %vm1824_vm10, %v1817_v37, %v3082_v16  ;;  %v3140_v53 = vpop.permute.xlu2 %3139 }
 0x19f   : > { %v3090_v26 = vpop.permute.xlu1 %3089  ;;  %v3142_v27 = vunpack.i.h.bf16 %v3140_v53 }
 0x1a0   : > { %v3092_v1 = vunpack.i.h.bf16 %v3090_v26  ;;  %v3091_v34 = vunpack.i.l.bf16 %v3090_v26 }
 0x1a2   : > { %v3085_v40 = vpop.permute.xlu0 %3084  ;;  %v1882_v58 = vsel %vm1857_vm11, %v1849_v55, %v3091_v34  ;;  %v1883_v10 = vsel %vm1857_vm11, %v1850_v7, %v3092_v1  ;;  %v3141_v55 = vunpack.i.l.bf16 %v3140_v53  ;;  %v3126_v7 = vunpack.i.l.bf16 %v3125_v50 }
 0x1a3   : > { %v3087_v6 = vunpack.i.h.bf16 %v3085_v40  ;;  %v3086_v17 = vunpack.i.l.bf16 %v3085_v40  ;;  %v1902_v18 = vpack.c.bf16 %v1883_v10, %v1882_v58  ;;  %v3127_v58 = vunpack.i.h.bf16 %v3125_v50 }
 0x1a5   : > { %v1876_v43 = vsel %vm1857_vm11, %v1843_v62, %v3086_v17  ;;  %v1877_v8 = vsel %vm1857_vm11, %v1844_v12, %v3087_v6  ;;  %2510 = vmatmul.msk.bf16.vlgmr.msra.gmra.mxu3 %vm1942_vm12, %v1902_v18 }
 0x1a6   : > { %v1899_v45 = vpack.c.bf16 %v1877_v8, %v1876_v43  ;;  %v3155_v10 = vpop.permute.xlu2 %3154  ;;  %v1812_v8 = vsel %vm1791_vm9, %v4402_v54, %v3126_v7 }
 0x1a7   : > { %v3105_v61 = vpop.permute.xlu1 %3104 }
 0x1a8   : > { %2507 = vmatmul.msk.bf16.gmra.mxu2 %vm1942_vm12, %v1899_v45  ;;  %v3107_v35 = vunpack.i.h.bf16 %v3105_v61  ;;  %v3106_v30 = vunpack.i.l.bf16 %v3105_v61 }
 0x1aa   : > { %v3100_v33 = vpop.permute.xlu0 %3099  ;;  %v1831_v5 = vsel %vm1824_vm10, %v1798_v24, %v3106_v30 }
 0x1ab   : > { %v3102_v25 = vunpack.i.h.bf16 %v3100_v33  ;;  %v3101_v39 = vunpack.i.l.bf16 %v3100_v33 }
 0x1ad   : > { %v1804_v2 = vsel %vm1791_vm9, %v4465_v44, %v3101_v39  ;;  %v1805_v31 = vsel %vm1791_vm9, %v4469_v32, %v3102_v25  ;;  %v1799_v32 = vsel %vm1791_vm9, %v4439_v4, %v3097_v46  ;;  %v3156_v46 = vunpack.i.l.bf16 %v3155_v10 }
 0x1ae   : > { %v1837_v57 = vsel %vm1824_vm10, %v1804_v2, %v3111_v0  ;;  %v1838_v22 = vsel %vm1824_vm10, %v1805_v31, %v3112_v56  ;;  %v1832_v37 = vsel %vm1824_vm10, %v1799_v32, %v3107_v35  ;;  %v3157_v31 = vunpack.i.h.bf16 %v3155_v10 }
 0x1af   : > { %v3120_v60 = vpop.permute.xlu1 %3119 }
 0x1b0   : > { %v3122_v59 = vunpack.i.h.bf16 %v3120_v60  ;;  %v3121_v52 = vunpack.i.l.bf16 %v3120_v60 }
 0x1b2   : > { %v3115_v29 = vpop.permute.xlu0 %3114  ;;  %v1870_v16 = vsel %vm1857_vm11, %v1837_v57, %v3121_v52  ;;  %v1871_v44 = vsel %vm1857_vm11, %v1838_v22, %v3122_v59  ;;  %v1806_v57 = vsel %vm1791_vm9, %v4376_v21, %v3156_v46  ;;  %v1807_v22 = vsel %vm1791_vm9, %v4379_v13, %v3157_v31 }
 0x1b3   : > { %v3117_v51 = vunpack.i.h.bf16 %v3115_v29  ;;  %v3116_v41 = vunpack.i.l.bf16 %v3115_v29  ;;  %v1896_v48 = vpack.c.bf16 %v1871_v44, %v1870_v16 }
 0x1b5   : > { %v1864_v26 = vsel %vm1857_vm11, %v1831_v5, %v3116_v41  ;;  %v1865_v47 = vsel %vm1857_vm11, %v1832_v37, %v3117_v51  ;;  %2504 = vmatmul.msk.bf16.gmra.mxu1 %vm1942_vm12, %v1896_v48 }
 0x1b6   : > { %v1893_v15 = vpack.c.bf16 %v1865_v47, %v1864_v26 }
 0x1b7   : > { %v3135_v42 = vpop.permute.xlu1 %3134 }
 0x1b8   : > { %2501 = vmatmul.msk.bf16.gmra.mxu0 %vm1942_vm12, %v1893_v15  ;;  %v3137_v6 = vunpack.i.h.bf16 %v3135_v42  ;;  %v3136_v17 = vunpack.i.l.bf16 %v3135_v42 }
 0x1ba   : > { %v3130_v1 = vpop.permute.xlu0 %3129  ;;  %v1845_v39 = vsel %vm1824_vm10, %v1812_v8, %v3136_v17 }
 0x1bb   : > { %v3132_v4 = vunpack.i.h.bf16 %v3130_v1  ;;  %v3131_v34 = vunpack.i.l.bf16 %v3130_v1 }
 0x1bd   : > { %v1818_v20 = vsel %vm1791_vm9, %v4425_v49, %v3131_v34  ;;  %v1819_v40 = vsel %vm1791_vm9, %v4428_v11, %v3132_v4  ;;  %v1813_v11 = vsel %vm1791_vm9, %v4405_v14, %v3127_v58  ;;  %v3170_v14 = vpop.permute.xlu2 %3169 }
 0x1be   : > { %v1851_v12 = vsel %vm1824_vm10, %v1818_v20, %v3141_v55  ;;  %v1852_v43 = vsel %vm1824_vm10, %v1819_v40, %v3142_v27  ;;  %v1846_v56 = vsel %vm1824_vm10, %v1813_v11, %v3137_v6  ;;  %v3171_v26 = vunpack.i.l.bf16 %v3170_v14 }
 0x1bf   : > { %v3150_v63 = vpop.permute.xlu1 %3149  ;;  %v3172_v15 = vunpack.i.h.bf16 %v3170_v14 }
 0x1c0   : > { %v3152_v18 = vunpack.i.h.bf16 %v3150_v63  ;;  %v3151_v62 = vunpack.i.l.bf16 %v3150_v63  ;;  %v1814_v20 = vsel %vm1791_vm9, %v4526_v38, %v3171_v26 }
 0x1c2   : > { %v3145_v45 = vpop.permute.xlu0 %3144  ;;  %v1884_v49 = vsel %vm1857_vm11, %v1851_v12, %v3151_v62  ;;  %v1885_v61 = vsel %vm1857_vm11, %v1852_v43, %v3152_v18 }
 0x1c3   : > { %v3147_v33 = vunpack.i.h.bf16 %v3145_v45  ;;  %v3146_v50 = vunpack.i.l.bf16 %v3145_v45  ;;  %v1903_v25 = vpack.c.bf16 %v1885_v61, %v1884_v49 }
 0x1c5   : > { %v1878_v0 = vsel %vm1857_vm11, %v1845_v39, %v3146_v50  ;;  %v1879_v23 = vsel %vm1857_vm11, %v1846_v56, %v3147_v33  ;;  %2511 = vmatmul.msk.bf16.gmra.mxu3 %vm1942_vm12, %v1903_v25  ;;  %v3185_v48 = vpop.permute.xlu2 %3184 }
 0x1c6   : > { %v1900_v54 = vpack.c.bf16 %v1879_v23, %v1878_v0  ;;  %v3187_v21 = vunpack.i.h.bf16 %v3185_v48  ;;  %v3186_v53 = vunpack.i.l.bf16 %v3185_v48 }
 0x1c7   : > { %v3165_v2 = vpop.permute.xlu1 %3164 }
 0x1c8   : > { %2508 = vmatmul.msk.bf16.gmra.mxu2 %vm1942_vm12, %v1900_v54  ;;  %v3167_v60 = vunpack.i.h.bf16 %v3165_v2  ;;  %v3166_v35 = vunpack.i.l.bf16 %v3165_v2 }
 0x1ca   : > { %v3160_v30 = vpop.permute.xlu0 %3159 }
 0x1cb   : > { %v3162_v59 = vunpack.i.h.bf16 %v3160_v30  ;;  %v3161_v52 = vunpack.i.l.bf16 %v3160_v30 }
 0x1cd   : > { %v1839_v24 = vsel %vm1824_vm10, %v1806_v57, %v3161_v52  ;;  %v1840_v29 = vsel %vm1824_vm10, %v1807_v22, %v3162_v59  ;;  %v3200_v62 = vpop.permute.xlu2 %3199 }
 0x1ce   : > { %v1872_v16 = vsel %vm1857_vm11, %v1839_v24, %v3166_v35  ;;  %v1873_v44 = vsel %vm1857_vm11, %v1840_v29, %v3167_v60  ;;  %v3202_v45 = vunpack.i.h.bf16 %v3200_v62  ;;  %v3201_v49 = vunpack.i.l.bf16 %v3200_v62 }
 0x1cf   : > { %v1897_v32 = vpack.c.bf16 %v1873_v44, %v1872_v16  ;;  %v3180_v51 = vpop.permute.xlu1 %3179 }
 0x1d0   : > { %v3182_v1 = vunpack.i.h.bf16 %v3180_v51  ;;  %v3181_v4 = vunpack.i.l.bf16 %v3180_v51  ;;  %v1822_v25 = vsel %vm1791_vm9, %v4539_v36, %v3201_v49  ;;  %v1823_v39 = vsel %vm1791_vm9, %v4543_v3, %v3202_v45 }
 0x1d1   : > { %2505 = vmatmul.msk.bf16.gmra.mxu1 %vm1942_vm12, %v1897_v32 }
 0x1d2   : > { %v3175_v41 = vpop.permute.xlu0 %3174  ;;  %v1847_v17 = vsel %vm1824_vm10, %v1814_v20, %v3181_v4 }
 0x1d3   : > { %v3177_v5 = vunpack.i.h.bf16 %v3175_v41  ;;  %v3176_v37 = vunpack.i.l.bf16 %v3175_v41 }
 0x1d5   : > { %v1820_v13 = vsel %vm1791_vm9, %v4550_v19, %v3176_v37  ;;  %v1821_v47 = vsel %vm1791_vm9, %v4554_v9, %v3177_v5  ;;  %v1815_v9 = vsel %vm1791_vm9, %v4530_v28, %v3172_v15 }
 0x1d6   : > { %v1853_v55 = vsel %vm1824_vm10, %v1820_v13, %v3186_v53  ;;  %v1854_v7 = vsel %vm1824_vm10, %v1821_v47, %v3187_v21  ;;  %v1848_v18 = vsel %vm1824_vm10, %v1815_v9, %v3182_v1 }
 0x1d7   : > { %v3195_v42 = vpop.permute.xlu1 %3194 }
 0x1d8   : > { %v3197_v34 = vunpack.i.h.bf16 %v3195_v42  ;;  %v3196_v27 = vunpack.i.l.bf16 %v3195_v42 }
 0x1da   : > { %v3190_v40 = vpop.permute.xlu0 %3189  ;;  %v1886_v58 = vsel %vm1857_vm11, %v1853_v55, %v3196_v27  ;;  %v1887_v19 = vsel %vm1857_vm11, %v1854_v7, %v3197_v34 }
 0x1db   : > { %v3192_v10 = vunpack.i.h.bf16 %v3190_v40  ;;  %v3191_v63 = vunpack.i.l.bf16 %v3190_v40  ;;  %v1904_v6 = vpack.c.bf16 %v1887_v19, %v1886_v58 }
 0x1dd   : > { %v1880_v12 = vsel %vm1857_vm11, %v1847_v17, %v3191_v63  ;;  %v1881_v38 = vsel %vm1857_vm11, %v1848_v18, %v3192_v10  ;;  %2512 = vmatmul.msk.bf16.gmra.mxu3 %vm1942_vm12, %v1904_v6 }
 0x1de   : > { %v1901_v43 = vpack.c.bf16 %v1881_v38, %v1880_v12 }
 0x1df   : > { %v3210_v8 = vpop.permute.xlu1 %3209 }
 0x1e0   : > { %2509 = vmatmul.msk.bf16.gmra.mxu2 %vm1942_vm12, %v1901_v43  ;;  %v3212_v61 = vunpack.i.h.bf16 %v3210_v8  ;;  %v3211_v11 = vunpack.i.l.bf16 %v3210_v8 }
 0x1e2   : > { %v3205_v28 = vpop.permute.xlu0 %3204 }
 0x1e3   : > { %v3207_v33 = vunpack.i.h.bf16 %v3205_v28  ;;  %v3206_v50 = vunpack.i.l.bf16 %v3205_v28 }
 0x1e5   : > { %v1855_v56 = vsel %vm1824_vm10, %v1822_v25, %v3206_v50  ;;  %v1856_v0 = vsel %vm1824_vm10, %v1823_v39, %v3207_v33 }
 0x1e6   : > { %v1888_v23 = vsel %vm1857_vm11, %v1855_v56, %v3211_v11  ;;  %v1889_v54 = vsel %vm1857_vm11, %v1856_v0, %v3212_v61 }
 0x1e7   : > { %v1905_v2 = vpack.c.bf16 %v1889_v54, %v1888_v23 }
 0x1ed   : > { %2513 = vmatmul.msk.bf16.gmra.mxu3 %vm1942_vm12, %v1905_v2 }
 0x1ee   : > { %v2004_v36 = vpop.f32.mrf.mxu0 }
 0x1ef   : > { %2084 = vst.msk [vmem:[%s4745_s8] sm:$0xff] %vm1626_vm3, %v2004_v36  ;;  %v2185_v3 = vmul.f32 %v2004_v36, %v2004_v36  ;;  %v2116_v46 = vsel %vm1626_vm3, %v2004_v36, 0.0 }
 0x1f1   : > { %v2217_v30 = vsel %vm1626_vm3, %v2185_v3, 0.0 }
 0x1f6   : > { %v2006_v31 = vpop.f32.mrf.mxu0 }
 0x1f7   : > { %2085 = vst.msk [vmem:[%s4745_s8 + $0x8] sm:$0xff] %vm1626_vm3, %v2006_v31  ;;  %v2117_v14 = vsel %vm1626_vm3, %v2006_v31, 0.0  ;;  %v2186_v60 = vmul.f32 %v2006_v31, %v2006_v31 }
 0x1f8   : > { %v2118_v35 = vadd.f32 %v2117_v14, %v2116_v46 }
 0x1f9   : > { %v2218_v59 = vsel %vm1626_vm3, %v2186_v60, 0.0 }
 0x1fa   : > { %v2219_v52 = vadd.f32 %v2218_v59, %v2217_v30  ;;  %v4756_v57 = vpop.f32.mrf.mxu1 }
 0x1fb   : > { %2092 = vst.msk [vmem:[%s4745_s8 + $0x40] sm:$0xff] %vm1626_vm3, %v4756_v57  ;;  %v2193_v28 = vmul.f32 %v4756_v57, %v4756_v57  ;;  %v2131_v25 = vsel %vm1626_vm3, %v4756_v57, 0.0 }
 0x1fd   : > { %v2232_v54 = vsel %vm1626_vm3, %v2193_v28, 0.0 }
 0x1fe   : > { %v2009_v22 = vpop.f32.mrf.mxu0 }
 0x1ff   : > { %2086 = vst.msk [vmem:[%s4745_s8 + $0x10] sm:$0xff] %vm1626_vm3, %v2009_v22  ;;  %v2119_v24 = vsel %vm1626_vm3, %v2009_v22, 0.0  ;;  %v2187_v29 = vmul.f32 %v2009_v22, %v2009_v22 }
 0x200   : > { %v2120_v16 = vadd.f32 %v2119_v24, %v2118_v35 }
 0x201   : > { %v2220_v44 = vsel %vm1626_vm3, %v2187_v29, 0.0 }
 0x202   : > { %v2221_v32 = vadd.f32 %v2220_v44, %v2219_v52  ;;  %v2026_v51 = vpop.f32.mrf.mxu1 }
 0x203   : > { %2093 = vst.msk [vmem:[%s4745_s8 + $0x48] sm:$0xff] %vm1626_vm3, %v2026_v51  ;;  %v2194_v39 = vmul.f32 %v2026_v51, %v2026_v51  ;;  %v2133_v2 = vsel %vm1626_vm3, %v2026_v51, 0.0 }
 0x205   : > { %v2234_v31 = vsel %vm1626_vm3, %v2194_v39, 0.0 }
 0x206   : > { %v2011_v41 = vpop.f32.mrf.mxu0 }
 0x207   : > { %2087 = vst.msk [vmem:[%s4745_s8 + $0x18] sm:$0xff] %vm1626_vm3, %v2011_v41  ;;  %v2188_v42 = vmul.f32 %v2011_v41, %v2011_v41  ;;  %v2121_v34 = vsel %vm1626_vm3, %v2011_v41, 0.0 }
 0x208   : > { %v2122_v58 = vadd.f32 %v2121_v34, %v2120_v16 }
 0x209   : > { %v2222_v7 = vsel %vm1626_vm3, %v2188_v42, 0.0 }
 0x20a   : > { %v2223_v63 = vadd.f32 %v2222_v7, %v2221_v32 }
 0x20c   : > { %v4769_v48 = vpop.f32.mrf.mxu2 }
 0x20d   : > { %2100 = vst.msk [vmem:[%s4745_s8 + $0x80] sm:$0xff] %vm1626_vm3, %v4769_v48 }
 0x212   : > { %v2029_v5 = vpop.f32.mrf.mxu1 }
 0x213   : > { %2094 = vst.msk [vmem:[%s4745_s8 + $0x50] sm:$0xff] %vm1626_vm3, %v2029_v5  ;;  %v2135_v46 = vsel %vm1626_vm3, %v2029_v5, 0.0  ;;  %v2195_v14 = vmul.f32 %v2029_v5, %v2029_v5 }
 0x214   : > { %v4776_v37 = vpop.f32.mrf.mxu2 }
 0x215   : > { %2101 = vst.msk [vmem:[%s4745_s8 + $0x88] sm:$0xff] %vm1626_vm3, %v4776_v37  ;;  %v2014_v21 = vpop.f32.mrf.mxu0  ;;  %v2236_v59 = vsel %vm1626_vm3, %v2195_v14, 0.0 }
 0x216   : > { %2088 = vst.msk [vmem:[%s4745_s8 + $0x20] sm:$0xff] %vm1626_vm3, %v2014_v21  ;;  %v2189_v27 = vmul.f32 %v2014_v21, %v2014_v21  ;;  %v2123_v20 = vsel %vm1626_vm3, %v2014_v21, 0.0 }
 0x217   : > { %v2124_v6 = vadd.f32 %v2123_v20, %v2122_v58 }
 0x218   : > { %v2224_v19 = vsel %vm1626_vm3, %v2189_v27, 0.0 }
 0x219   : > { %v2225_v12 = vadd.f32 %v2224_v19, %v2223_v63 }
 0x21a   : > { %v4783_v53 = vpop.f32.mrf.mxu1 }
 0x21b   : > { %2095 = vst.msk [vmem:[%s4745_s8 + $0x58] sm:$0xff] %vm1626_vm3, %v4783_v53  ;;  %v2196_v52 = vmul.f32 %v4783_v53, %v4783_v53  ;;  %v2137_v22 = vsel %vm1626_vm3, %v4783_v53, 0.0 }
 0x21d   : > { %v2016_v26 = vpop.f32.mrf.mxu0  ;;  %v2238_v16 = vsel %vm1626_vm3, %v2196_v52, 0.0 }
 0x21e   : > { %2089 = vst.msk [vmem:[%s4745_s8 + $0x28] sm:$0xff] %vm1626_vm3, %v2016_v26  ;;  %v2190_v40 = vmul.f32 %v2016_v26, %v2016_v26  ;;  %v2125_v9 = vsel %vm1626_vm3, %v2016_v26, 0.0 }
 0x21f   : > { %v2126_v38 = vadd.f32 %v2125_v9, %v2124_v6 }
 0x220   : > { %v2226_v17 = vsel %vm1626_vm3, %v2190_v40, 0.0 }
 0x221   : > { %v2227_v8 = vadd.f32 %v2226_v17, %v2225_v12  ;;  %v2202_v12 = vmul.f32 %v4776_v37, %v4776_v37 }
 0x228   : > { %v4790_v13 = vpop.f32.mrf.mxu3 }
 0x229   : > { %2108 = vst.msk [vmem:[%s4745_s8 + $0xc0] sm:$0xff] %vm1626_vm3, %v4790_v13 }
 0x22b   : > { %v4795_v47 = vpop.f32.mrf.mxu2 }
 0x22c   : > { %2102 = vst.msk [vmem:[%s4745_s8 + $0x90] sm:$0xff] %vm1626_vm3, %v4795_v47  ;;  %v2203_v28 = vmul.f32 %v4795_v47, %v4795_v47 }
 0x230   : > { %v4800_v15 = vpop.f32.mrf.mxu3 }
 0x231   : > { %2109 = vst.msk [vmem:[%s4745_s8 + $0xc8] sm:$0xff] %vm1626_vm3, %v4800_v15 }
 0x232   : > { %v2034_v1 = vpop.f32.mrf.mxu1 }
 0x233   : > { %v4805_v4 = vpop.f32.mrf.mxu2  ;;  %2096 = vst.msk [vmem:[%s4745_s8 + $0x60] sm:$0xff] %vm1626_vm3, %v2034_v1  ;;  %v2197_v44 = vmul.f32 %v2034_v1, %v2034_v1  ;;  %v2139_v41 = vsel %vm1626_vm3, %v2034_v1, 0.0 }
 0x234   : > { %2103 = vst.msk [vmem:[%s4745_s8 + $0x98] sm:$0xff] %vm1626_vm3, %v4805_v4 }
 0x235   : > { %v2019_v55 = vpop.f32.mrf.mxu0  ;;  %v2240_v26 = vsel %vm1626_vm3, %v2197_v44, 0.0 }
 0x236   : > { %2090 = vst.msk [vmem:[%s4745_s8 + $0x30] sm:$0xff] %vm1626_vm3, %v2019_v55  ;;  %v2191_v10 = vmul.f32 %v2019_v55, %v2019_v55  ;;  %v2127_v18 = vsel %vm1626_vm3, %v2019_v55, 0.0 }
 0x237   : > { %v2128_v45 = vadd.f32 %v2127_v18, %v2126_v38 }
 0x238   : > { %v2228_v43 = vsel %vm1626_vm3, %v2191_v10, 0.0  ;;  %v2201_v10 = vmul.f32 %v4769_v48, %v4769_v48 }
 0x239   : > { %v2229_v33 = vadd.f32 %v2228_v43, %v2227_v8 }
 0x23a   : > { %v2036_v62 = vpop.f32.mrf.mxu1 }
 0x23b   : > { %2097 = vst.msk [vmem:[%s4745_s8 + $0x68] sm:$0xff] %vm1626_vm3, %v2036_v62  ;;  %v2198_v53 = vmul.f32 %v2036_v62, %v2036_v62  ;;  %v2141_v27 = vsel %vm1626_vm3, %v2036_v62, 0.0  ;;  %v2147_v62 = vsel %vm1626_vm3, %v4769_v48, 0.0  ;;  %v2250_v48 = vsel %vm1626_vm3, %v2202_v12, 0.0 }
 0x23d   : > { %v2021_v49 = vpop.f32.mrf.mxu0  ;;  %v2242_v20 = vsel %vm1626_vm3, %v2198_v53, 0.0 }
 0x23e   : > { %2091 = vst.msk [vmem:[%s4745_s8 + $0x38] sm:$0xff] %vm1626_vm3, %v2021_v49  ;;  %v2129_v61 = vsel %vm1626_vm3, %v2021_v49, 0.0  ;;  %v2192_v11 = vmul.f32 %v2021_v49, %v2021_v49  ;;  %v2149_v49 = vsel %vm1626_vm3, %v4776_v37, 0.0  ;;  %v2153_v37 = vsel %vm1626_vm3, %v4805_v4, 0.0 }
 0x23f   : > { %v2130_v50 = vadd.f32 %v2129_v61, %v2128_v45  ;;  %v2248_v45 = vsel %vm1626_vm3, %v2201_v10, 0.0 }
 0x240   : > { %v2230_v56 = vsel %vm1626_vm3, %v2192_v11, 0.0 }
 0x241   : > { %v2132_v0 = vadd.f32 %v2131_v25, %v2130_v50  ;;  %v2231_v23 = vadd.f32 %v2230_v56, %v2229_v33  ;;  %v2151_v33 = vsel %vm1626_vm3, %v4795_v47, 0.0  ;;  %v2204_v50 = vmul.f32 %v4805_v4, %v4805_v4 }
 0x242   : > { %v2252_v56 = vsel %vm1626_vm3, %v2203_v28, 0.0 }
 0x243   : > { %v2134_v36 = vadd.f32 %v2133_v2, %v2132_v0  ;;  %v2233_v3 = vadd.f32 %v2232_v54, %v2231_v23 }
 0x245   : > { %v2136_v60 = vadd.f32 %v2135_v46, %v2134_v36  ;;  %v2235_v35 = vadd.f32 %v2234_v31, %v2233_v3  ;;  %v2254_v36 = vsel %vm1626_vm3, %v2204_v50, 0.0 }
 0x247   : > { %v2237_v57 = vadd.f32 %v2236_v59, %v2235_v35  ;;  %v2138_v29 = vadd.f32 %v2137_v22, %v2136_v60 }
 0x248   : > { %v4836_v30 = vpop.f32.mrf.mxu3 }
 0x249   : > { %2110 = vst.msk [vmem:[%s4745_s8 + $0xd0] sm:$0xff] %vm1626_vm3, %v4836_v30  ;;  %v2239_v32 = vadd.f32 %v2238_v16, %v2237_v57  ;;  %v2140_v5 = vadd.f32 %v2139_v41, %v2138_v29  ;;  %v2167_v10 = vsel %vm1626_vm3, %v4836_v30, 0.0 }
 0x24b   : > { %v2054_v24 = vpop.f32.mrf.mxu2  ;;  %v2241_v34 = vadd.f32 %v2240_v26, %v2239_v32  ;;  %v2142_v1 = vadd.f32 %v2141_v27, %v2140_v5 }
 0x24c   : > { %2104 = vst.msk [vmem:[%s4745_s8 + $0xa0] sm:$0xff] %vm1626_vm3, %v2054_v24  ;;  %v2205_v0 = vmul.f32 %v2054_v24, %v2054_v24  ;;  %v2155_v47 = vsel %vm1626_vm3, %v2054_v24, 0.0 }
 0x24d   : > { %v2243_v58 = vadd.f32 %v2242_v20, %v2241_v34  ;;  %v2210_v34 = vmul.f32 %v4800_v15, %v4800_v15  ;;  %v2165_v20 = vsel %vm1626_vm3, %v4800_v15, 0.0 }
 0x24e   : > { %v2039_v51 = vpop.f32.mrf.mxu1  ;;  %v2256_v14 = vsel %vm1626_vm3, %v2205_v0, 0.0 }
 0x24f   : > { %2098 = vst.msk [vmem:[%s4745_s8 + $0x70] sm:$0xff] %vm1626_vm3, %v2039_v51  ;;  %v2199_v42 = vmul.f32 %v2039_v51, %v2039_v51  ;;  %v2143_v55 = vsel %vm1626_vm3, %v2039_v51, 0.0  ;;  %v2209_v51 = vmul.f32 %v4790_v13, %v4790_v13 }
 0x250   : > { %v4852_v21 = vpop.f32.mrf.mxu3  ;;  %v2144_v19 = vadd.f32 %v2143_v55, %v2142_v1 }
 0x251   : > { %2111 = vst.msk [vmem:[%s4745_s8 + $0xd8] sm:$0xff] %vm1626_vm3, %v4852_v21  ;;  %v2244_v40 = vsel %vm1626_vm3, %v2199_v42, 0.0  ;;  %v2163_v42 = vsel %vm1626_vm3, %v4790_v13, 0.0  ;;  %v2264_v1 = vsel %vm1626_vm3, %v2209_v51, 0.0  ;;  %v2266_v13 = vsel %vm1626_vm3, %v2210_v34, 0.0 }
 0x252   : > { %v2245_v17 = vadd.f32 %v2244_v40, %v2243_v58  ;;  %v2211_v40 = vmul.f32 %v4836_v30, %v4836_v30 }
 0x253   : > { %v2056_v7 = vpop.f32.mrf.mxu2 }
 0x254   : > { %2105 = vst.msk [vmem:[%s4745_s8 + $0xa8] sm:$0xff] %vm1626_vm3, %v2056_v7  ;;  %v2206_v60 = vmul.f32 %v2056_v7, %v2056_v7  ;;  %v2157_v35 = vsel %vm1626_vm3, %v2056_v7, 0.0  ;;  %v2268_v15 = vsel %vm1626_vm3, %v2211_v40, 0.0 }
 0x256   : > { %v2041_v9 = vpop.f32.mrf.mxu1  ;;  %v2258_v57 = vsel %vm1626_vm3, %v2206_v60, 0.0 }
 0x257   : > { %2099 = vst.msk [vmem:[%s4745_s8 + $0x78] sm:$0xff] %vm1626_vm3, %v2041_v9  ;;  %v2145_v63 = vsel %vm1626_vm3, %v2041_v9, 0.0  ;;  %v2200_v6 = vmul.f32 %v2041_v9, %v2041_v9 }
 0x258   : > { %v2146_v18 = vadd.f32 %v2145_v63, %v2144_v19  ;;  %v2212_v63 = vmul.f32 %v4852_v21, %v4852_v21 }
 0x259   : > { %v2246_v38 = vsel %vm1626_vm3, %v2200_v6, 0.0 }
 0x25a   : > { %v2148_v43 = vadd.f32 %v2147_v62, %v2146_v18  ;;  %v2247_v8 = vadd.f32 %v2246_v38, %v2245_v17  ;;  %v2169_v18 = vsel %vm1626_vm3, %v4852_v21, 0.0 }
 0x25c   : > { %v2150_v61 = vadd.f32 %v2149_v49, %v2148_v43  ;;  %v2249_v11 = vadd.f32 %v2248_v45, %v2247_v8  ;;  %v2270_v43 = vsel %vm1626_vm3, %v2212_v63, 0.0 }
 0x25e   : > { %v2152_v25 = vadd.f32 %v2151_v33, %v2150_v61  ;;  %v2251_v39 = vadd.f32 %v2250_v48, %v2249_v11 }
 0x260   : > { %v2253_v23 = vadd.f32 %v2252_v56, %v2251_v39  ;;  %v2154_v54 = vadd.f32 %v2153_v37, %v2152_v25  ;;  %v2074_v2 = vpop.f32.mrf.mxu3 }
 0x261   : > { %2112 = vst.msk [vmem:[%s4745_s8 + $0xe0] sm:$0xff] %vm1626_vm3, %v2074_v2  ;;  %v2213_v62 = vmul.f32 %v2074_v2, %v2074_v2  ;;  %v2171_v8 = vsel %vm1626_vm3, %v2074_v2, 0.0 }
 0x262   : > { %v2255_v3 = vadd.f32 %v2254_v36, %v2253_v23  ;;  %v2156_v46 = vadd.f32 %v2155_v47, %v2154_v54 }
 0x263   : > { %v2059_v31 = vpop.f32.mrf.mxu2  ;;  %v2272_v28 = vsel %vm1626_vm3, %v2213_v62, 0.0 }
 0x264   : > { %2106 = vst.msk [vmem:[%s4745_s8 + $0xb0] sm:$0xff] %vm1626_vm3, %v2059_v31  ;;  %v2257_v4 = vadd.f32 %v2256_v14, %v2255_v3  ;;  %v2207_v59 = vmul.f32 %v2059_v31, %v2059_v31  ;;  %v2158_v52 = vadd.f32 %v2157_v35, %v2156_v46  ;;  %v2159_v22 = vsel %vm1626_vm3, %v2059_v31, 0.0 }
 0x266   : > { %v2259_v24 = vadd.f32 %v2258_v57, %v2257_v4  ;;  %v2260_v16 = vsel %vm1626_vm3, %v2207_v59, 0.0  ;;  %v2160_v44 = vadd.f32 %v2159_v22, %v2158_v52 }
 0x268   : > { %v2076_v29 = vpop.f32.mrf.mxu3  ;;  %v2261_v26 = vadd.f32 %v2260_v16, %v2259_v24 }
 0x269   : > { %2113 = vst.msk [vmem:[%s4745_s8 + $0xe8] sm:$0xff] %vm1626_vm3, %v2076_v29  ;;  %v2214_v45 = vmul.f32 %v2076_v29, %v2076_v29  ;;  %v2173_v61 = vsel %vm1626_vm3, %v2076_v29, 0.0 }
 0x26b   : > { %v2061_v32 = vpop.f32.mrf.mxu2  ;;  %v2274_v25 = vsel %vm1626_vm3, %v2214_v45, 0.0 }
 0x26c   : > { %2107 = vst.msk [vmem:[%s4745_s8 + $0xb8] sm:$0xff] %vm1626_vm3, %v2061_v32  ;;  %v2161_v41 = vsel %vm1626_vm3, %v2061_v32, 0.0  ;;  %v2208_v5 = vmul.f32 %v2061_v32, %v2061_v32 }
 0x26d   : > { %v2162_v53 = vadd.f32 %v2161_v41, %v2160_v44 }
 0x26e   : > { %v2262_v27 = vsel %vm1626_vm3, %v2208_v5, 0.0 }
 0x26f   : > { %v2164_v55 = vadd.f32 %v2163_v42, %v2162_v53  ;;  %v2263_v7 = vadd.f32 %v2262_v27, %v2261_v26 }
 0x270   : > { %v2079_v58 = vpop.f32.mrf.mxu3 }
 0x271   : > { %v2166_v19 = vadd.f32 %v2165_v20, %v2164_v55  ;;  %v2265_v9 = vadd.f32 %v2264_v1, %v2263_v7  ;;  %2114 = vst.msk [vmem:[%s4745_s8 + $0xf0] sm:$0xff] %vm1626_vm3, %v2079_v58  ;;  %v2215_v11 = vmul.f32 %v2079_v58, %v2079_v58  ;;  %v2175_v39 = vsel %vm1626_vm3, %v2079_v58, 0.0 }
 0x273   : > { %v2168_v6 = vadd.f32 %v2167_v10, %v2166_v19  ;;  %v2267_v17 = vadd.f32 %v2266_v13, %v2265_v9  ;;  %v2276_v23 = vsel %vm1626_vm3, %v2215_v11, 0.0 }
 0x275   : > { %v2269_v12 = vadd.f32 %v2268_v15, %v2267_v17  ;;  %v2170_v38 = vadd.f32 %v2169_v18, %v2168_v6 }
 0x277   : > { %v2172_v30 = vadd.f32 %v2171_v8, %v2170_v38  ;;  %v2271_v49 = vadd.f32 %v2270_v43, %v2269_v12 }
 0x278   : > { %v2081_v48 = vpop.f32.mrf.mxu3 }
 0x279   : > { %v2174_v33 = vadd.f32 %v2173_v61, %v2172_v30  ;;  %v2273_v50 = vadd.f32 %v2272_v28, %v2271_v49  ;;  %2115 = vst.msk [vmem:[%s4745_s8 + $0xf8] sm:$0xff] %vm1626_vm3, %v2081_v48  ;;  %v2216_v21 = vmul.f32 %v2081_v48, %v2081_v48  ;;  %v2177_v56 = vsel %vm1626_vm3, %v2081_v48, 0.0 }
 0x27b   : > { %v2275_v37 = vadd.f32 %v2274_v25, %v2273_v50  ;;  %v2176_v0 = vadd.f32 %v2175_v39, %v2174_v33  ;;  %v2278_v54 = vsel %vm1626_vm3, %v2216_v21, 0.0 }
 0x27d   : > { %v2277_v2 = vadd.f32 %v2276_v23, %v2275_v37  ;;  %v2178_v36 = vadd.f32 %v2177_v56, %v2176_v0 }
 0x27f   : > { %v2179_v47 = vrot.slane %v2178_v36, 4  ;;  %v2279_v3 = vadd.f32 %v2278_v54, %v2277_v2 }
 0x281   : > { %v2180_v31 = vadd.f32 %v2179_v47, %v2178_v36  ;;  %v2280_v46 = vrot.slane %v2279_v3, 4 }
 0x283   : > { %v2181_v14 = vrot.slane %v2180_v31, 2  ;;  %v2281_v60 = vadd.f32 %v2280_v46, %v2279_v3 }
 0x285   : > { %v2182_v4 = vadd.f32 %v2181_v14, %v2180_v31  ;;  %v2282_v35 = vrot.slane %v2281_v60, 2 }
 0x287   : > { %v2183_v59 = vrot.slane %v2182_v4, 1  ;;  %v2283_v52 = vadd.f32 %v2282_v35, %v2281_v60 }
 0x289   : > { %v2284_v57 = vrot.slane %v2283_v52, 1  ;;  %v2184_v22 = vadd.f32 %v2183_v59, %v2182_v4 }
 0x28b   : > { %v2285_v29 = vadd.f32 %v2284_v57, %v2283_v52 }
 0x28d   : > { %v2286_v24 = vsel %vm497_vm0, %v2184_v22, %v2285_v29 }
 0x28e   : > { %2288 = vst.msk [vmem:[%s411_s11] sm:$0x3] %vm2287_vm13, %v2286_v24 }
 0x28f PF: > { %s16_s20 = sadd.s32 1, %s3235_s20   ;;  %s5116_s18 = smov %s3231_s19 }
 0x290   : > { %p13_p5 = scmp.ge.s32.totalorder %s16_s20, 4   ;;  %s5117_s19 = smov %s5119_s21 }
 0x292   :  { %15 = sbr.rel (!%p13_p5) target bundleno = 2 (0x2), region = 84 }

// kernel: residual_block_forward.4
= control target key start
LH: loop header
LB: loop body
LE: loop exit
PB: predicated region body
PF: predicated region fallthrough
CT: control target
= control target key end

     0   :  { %s3459_s24 = smov 0   ;;  %s3461_s25 = smov 0   ;;  %s5225_s0 = inlined_call_operand.vmem [shape: f32[2,16,16,8], index: 0, kind: input, shape index: {}, may-alias: {0,1,2}]   ;;  %s5226_s1 = inlined_call_operand.vmem [shape: f32[2,16,16,8], index: 1, kind: input, shape index: {}, may-alias: {0,1,2}]   ;;  %s5227_s2 = inlined_call_operand.vmem [shape: f32[2,16,16,8], index: 2, kind: input, shape index: {}, may-alias: {0,1,2}]   ;;  %s5228_s3 = inlined_call_operand.vmem [shape: f32[1,8], index: 3, kind: input, shape index: {}]   ;;  %s5229_s4 = inlined_call_operand.vmem [shape: f32[1,8], index: 4, kind: input, shape index: {}]   ;;  %s5230_s5 = inlined_call_operand.vmem [shape: bf16[72,8], index: 5, kind: input, shape index: {}]   ;;  %s5231_s6 = inlined_call_operand.vmem [shape: f32[2,16,16,8], index: 6, kind: output, shape index: {0}]   ;;  %s5232_s7 = inlined_call_operand.vmem [shape: f32[2,1,2,8], index: 7, kind: output, shape index: {1}]  }
   0x1   :  { %s3463_s26 = smov 0  }
   0x2 LB: > { %s30_s27 = sadd.s32 1, %s3405_s25  ;;  %p2642_p0 = scmp.ge.s32.totalorder %s3409_s26, 1  ;;  %s3409_s26 = sphi %s3463_s26, %s18_s26   ;;  %s3405_s25 = sphi %s3461_s25, %s5389_s25   ;;  %s3401_s24 = sphi %s3459_s24, %s5388_s24  }
   0x3   : > { %p32_p1 = scmp.ge.s32.totalorder %s30_s27, 2  ;;  %p328_p2 = scmp.lt.s32.totalorder %s3409_s26, 3 }
   0x5   : > { %s5391_s27 = smov (%p32_p1, %s30_s27), 0  ;;  %p329_p3 = pnand %p2642_p0, %p328_p2 }
   0x7   : > { %332 = sbr.rel (%p329_p3) target bundleno = 683 (0x2ab), region = 44 }
   0xc   : > { %p407_p4 = scmp.lt.s32.totalorder %s3401_s24, 1  ;;  %v3482_v0 = vld [vmem:[%s5228_s3] ss:$0 sm:$0xff]  ;;  %vm667_vm0 = vcmask 1040384   ;;  %vm842_vm1 = vcmask 1046528   ;;  %s3411_s13 = smov 8  }
   0xd   : > { %v3496_v1 = vld [vmem:[%s5229_s4] ss:$0 sm:$0xff]  ;;  %vm923_vm2 = vcmask 1045504   ;;  %s3412_s17 = smov 16   ;;  %s3413_s18 = smov 24   ;;  %vm1796_vm3 = vcmask 64512  }
   0xe   : > { %s5393_s24 = smov (!%p407_p4, %s3401_s24), 1  ;;  %s3414_s19 = smov 32   ;;  %vm1829_vm4 = vcmask 130048   ;;  %vm1862_vm5 = vcmask 195584   ;;  %vm1895_vm6 = vcmask 261120   ;;  %vm1928_vm7 = vcmask 326656  }
   0xf   : > { %s3485_s30 = sshll.u32 %s5393_s24, 8  ;;  %s3415_s20 = smov 40   ;;  %vm2161_vm8 = vcmask 1043456   ;;  %vm1961_vm9 = vcmask 392192   ;;  %vm1994_vm10 = vcmask 457728   ;;  %vm2027_vm11 = vcmask 523264  }
  0x10   : > { %s3491_s10 = scalar_lea.vmem %s5226_s1, %s3485_s30  ;;  %s415_s16 = scalar_lea.vmem %s5225_s0, %s3485_s30  ;;  %vm2112_vm12 = vcmask 588800   ;;  %vm2457_vm13 = vcmask 58368  }
  0x11   : > { %v495_v2 = vld [vmem:[%s3491_s10 + $0x30] sm:$0xff]  ;;  %v496_v3 = vld [vmem:[%s3491_s10 + $0x38] sm:$0xff]  ;;  %v489_v9 = vld [vmem:[%s3491_s10] sm:$0xff]  ;;  %s3416_s21 = smov 48   ;;  %s3417_s22 = smov 64  }
  0x12   : > { %v491_v4 = vld [vmem:[%s3491_s10 + $0x10] sm:$0xff]  ;;  %v527_v5 = vmul.f32 %v3482_v0, %v495_v2  ;;  %v528_v6 = vmul.f32 %v3482_v0, %v496_v3  ;;  %v492_v7 = vld [vmem:[%s3491_s10 + $0x18] sm:$0xff]  ;;  %v490_v10 = vld [vmem:[%s3491_s10 + $0x8] sm:$0xff]  ;;  %v521_v12 = vmul.f32 %v3482_v0, %v489_v9  ;;  %s3418_s23 = smov 56   ;;  %s2689_s8 = sadd.s32 240, %s3485_s30 }
  0x13   : > { %v523_v8 = vmul.f32 %v3482_v0, %v491_v4  ;;  %v524_v11 = vmul.f32 %v3482_v0, %v492_v7  ;;  %v522_v13 = vmul.f32 %v3482_v0, %v490_v10  ;;  %v497_v14 = vld [vmem:[%s3491_s10 + $0x40] sm:$0xff]  ;;  %v498_v15 = vld [vmem:[%s3491_s10 + $0x48] sm:$0xff]  ;;  %v499_v2 = vld [vmem:[%s3491_s10 + $0x50] sm:$0xff]  ;;  %s443_s11 = scalar_lea.vmem %s5227_s2, %s2689_s8 }
  0x14   : > { %v559_v16 = vadd.f32 %v3496_v1, %v527_v5  ;;  %v560_v17 = vadd.f32 %v3496_v1, %v528_v6  ;;  %v529_v19 = vmul.f32 %v3482_v0, %v497_v14  ;;  %v553_v21 = vadd.f32 %v3496_v1, %v521_v12  ;;  %v493_v58 = vld [vmem:[%s3491_s10 + $0x20] sm:$0xff]  ;;  %v494_v59 = vld [vmem:[%s3491_s10 + $0x28] sm:$0xff]  ;;  %v500_v3 = vld [vmem:[%s3491_s10 + $0x58] sm:$0xff] }
  0x15   : > { %v555_v18 = vadd.f32 %v3496_v1, %v523_v8  ;;  %v556_v20 = vadd.f32 %v3496_v1, %v524_v11  ;;  %v554_v22 = vadd.f32 %v3496_v1, %v522_v13  ;;  %v530_v23 = vmul.f32 %v3482_v0, %v498_v15  ;;  %v511_v6 = vld [vmem:[%s3491_s10 + $0xb0] sm:$0xff] }
  0x16   : > { %v591_v24 = vmax.f32 %v559_v16, 0.0  ;;  %v592_v25 = vmax.f32 %v560_v17, 0.0  ;;  %v561_v27 = vadd.f32 %v3496_v1, %v529_v19  ;;  %v585_v29 = vmax.f32 %v553_v21, 0.0  ;;  %v503_v16 = vld [vmem:[%s3491_s10 + $0x70] sm:$0xff] }
  0x17   : > { %v587_v26 = vmax.f32 %v555_v18, 0.0  ;;  %v588_v28 = vmax.f32 %v556_v20, 0.0  ;;  %v586_v30 = vmax.f32 %v554_v22, 0.0  ;;  %v562_v31 = vadd.f32 %v3496_v1, %v530_v23  ;;  %v504_v20 = vld [vmem:[%s3491_s10 + $0x78] sm:$0xff] }
  0x18   : > { %v680_v32 = vrot.slane %v591_v24, 7  ;;  %v681_v33 = vrot.slane %v592_v25, 7  ;;  %v671_v36 = vrot.slane %v585_v29, 7  ;;  %v593_v38 = vmax.f32 %v561_v27, 0.0  ;;  %v501_v29 = vld [vmem:[%s3491_s10 + $0x60] sm:$0xff] }
  0x19   : > { %v674_v34 = vrot.slane %v587_v26, 7  ;;  %v675_v35 = vrot.slane %v588_v28, 7  ;;  %v672_v37 = vrot.slane %v586_v30, 7  ;;  %v594_v46 = vmax.f32 %v562_v31, 0.0 }
  0x1a   : > { %v3523_v39 = vsel %vm667_vm0, %v680_v32, %v681_v33  ;;  %v3526_v40 = vsel %vm667_vm0, 0.0, %v680_v32  ;;  %v3529_v41 = vsel %vm667_vm0, %v681_v33, 0.0  ;;  %v3554_v56 = vsel %vm667_vm0, 0.0, %v671_v36 }
  0x1b   : > { %v3532_v42 = vsel %vm667_vm0, 0.0, %v674_v34  ;;  %v863_v43 = vrot.slane %v3526_v40, 1  ;;  %v864_v44 = vrot.slane %v3523_v39, 1  ;;  %v866_v45 = vrot.slane %v3529_v41, 1 }
  0x1c   : > { %v3538_v47 = vsel %vm667_vm0, %v674_v34, %v675_v35  ;;  %v3541_v48 = vsel %vm667_vm0, %v675_v35, 0.0  ;;  %v853_v49 = vrot.slane %v3532_v42, 1  ;;  %v3545_v50 = vsel %vm667_vm0, %v671_v36, %v672_v37  ;;  %v502_v34 = vld [vmem:[%s3491_s10 + $0x68] sm:$0xff] }
  0x1d   : > { %v865_v51 = vsel %vm842_vm1, %v863_v43, %v864_v44  ;;  %v867_v52 = vsel %vm842_vm1, %v864_v44, %v866_v45  ;;  %v854_v53 = vrot.slane %v3538_v47, 1  ;;  %v856_v54 = vrot.slane %v3541_v48, 1 }
  0x1e   : > { %v3551_v55 = vpack.i.bf16 %v867_v52, %v865_v51  ;;  %v3557_v57 = vsel %vm667_vm0, %v672_v37, 0.0  ;;  %v848_v62 = vrot.slane %v3554_v56, 1  ;;  %v849_v63 = vrot.slane %v3545_v50, 1 }
  0x1f   : > { %v855_v60 = vsel %vm842_vm1, %v853_v49, %v854_v53  ;;  %v857_v61 = vsel %vm842_vm1, %v854_v53, %v856_v54  ;;  %v851_v5 = vrot.slane %v3557_v57, 1  ;;  %v683_v7 = vrot.slane %v593_v38, 7 }
  0x20   : > { %5288 = vst [vmem:[#allocation2_spill] sm:$0xff] %v3551_v55  ;;  %2759 = vrot.lane.b32.xlu2 %v3551_v55, %s3411_s13  ;;  %v3569_v4 = vpack.i.bf16 %v857_v61, %v855_v60  ;;  %v850_v8 = vsel %vm842_vm1, %v848_v62, %v849_v63  ;;  %v684_v9 = vrot.slane %v594_v46, 7  ;;  %v525_v10 = vmul.f32 %v3482_v0, %v493_v58 }
  0x21   : > { %v526_v11 = vmul.f32 %v3482_v0, %v494_v59  ;;  %v852_v12 = vsel %vm842_vm1, %v849_v63, %v851_v5  ;;  %v3580_v13 = vsel %vm667_vm0, 0.0, %v683_v7  ;;  %v531_v14 = vmul.f32 %v3482_v0, %v499_v2 }
  0x22   : > { %5289 = vst [vmem:[#allocation3_spill] sm:$0xff] %v3569_v4  ;;  %2749 = vrot.lane.b32.xlu1 %v3569_v4, %s3411_s13  ;;  %v532_v15 = vmul.f32 %v3482_v0, %v500_v3  ;;  %v3585_v17 = vpack.i.bf16 %v852_v12, %v850_v8  ;;  %v3588_v18 = vsel %vm667_vm0, %v683_v7, %v684_v9  ;;  %v3591_v19 = vsel %vm667_vm0, %v684_v9, 0.0 }
  0x23   : > { %v868_v21 = vrot.slane %v3580_v13, 1  ;;  %v869_v22 = vrot.slane %v3588_v18, 1  ;;  %v871_v23 = vrot.slane %v3591_v19, 1  ;;  %v557_v24 = vadd.f32 %v3496_v1, %v525_v10 }
  0x24   : > { %5290 = vst [vmem:[#allocation4_spill] sm:$0xff] %v3585_v17  ;;  %2744 = vrot.lane.b32.xlu0 %v3585_v17, %s3411_s13  ;;  %v558_v25 = vadd.f32 %v3496_v1, %v526_v11  ;;  %v563_v26 = vadd.f32 %v3496_v1, %v531_v14  ;;  %v564_v27 = vadd.f32 %v3496_v1, %v532_v15 }
  0x25   : > { %v535_v28 = vmul.f32 %v3482_v0, %v503_v16  ;;  %v870_v30 = vsel %vm842_vm1, %v868_v21, %v869_v22  ;;  %v872_v31 = vsel %vm842_vm1, %v869_v22, %v871_v23  ;;  %v589_v32 = vmax.f32 %v557_v24, 0.0  ;;  %v469_v21 = vld [vmem:[%s415_s16] sm:$0xff] }
  0x26   : > { %v536_v33 = vmul.f32 %v3482_v0, %v504_v20  ;;  %v3609_v35 = vpack.i.bf16 %v872_v31, %v870_v30  ;;  %v590_v36 = vmax.f32 %v558_v25, 0.0  ;;  %v595_v37 = vmax.f32 %v563_v26, 0.0  ;;  %v470_v26 = vld [vmem:[%s415_s16 + $0x8] sm:$0xff] }
  0x27   : > { %v596_v38 = vmax.f32 %v564_v27, 0.0  ;;  %v677_v43 = vrot.slane %v589_v32, 7  ;;  %v567_v44 = vadd.f32 %v3496_v1, %v535_v28  ;;  %v533_v46 = vmul.f32 %v3482_v0, %v501_v29  ;;  %v509_v27 = vld [vmem:[%s3491_s10 + $0xa0] sm:$0xff]  ;;  %v510_v28 = vld [vmem:[%s3491_s10 + $0xa8] sm:$0xff] }
  0x28   : > { %5291 = vst [vmem:[#allocation5_spill] sm:$0xff] %v3609_v35  ;;  %v568_v45 = vadd.f32 %v3496_v1, %v536_v33  ;;  %2764 = vrot.lane.b32.xlu2 %v3609_v35, %s3411_s13  ;;  %v678_v49 = vrot.slane %v590_v36, 7  ;;  %v686_v51 = vrot.slane %v595_v37, 7  ;;  %v534_v53 = vmul.f32 %v3482_v0, %v502_v34  ;;  %v517_v35 = vld [vmem:[%s3491_s10 + $0xe0] sm:$0xff] }
  0x29   : > { %v687_v52 = vrot.slane %v596_v38, 7  ;;  %v3618_v54 = vsel %vm667_vm0, 0.0, %v677_v43  ;;  %v599_v58 = vmax.f32 %v567_v44, 0.0  ;;  %v565_v60 = vadd.f32 %v3496_v1, %v533_v46 }
  0x2a   : > { %v600_v59 = vmax.f32 %v568_v45, 0.0  ;;  %v3622_v61 = vsel %vm667_vm0, %v677_v43, %v678_v49  ;;  %v3625_v62 = vsel %vm667_vm0, %v678_v49, 0.0  ;;  %v858_v63 = vrot.slane %v3618_v54, 1 }
  0x2b   : > { %v3629_v2 = vsel %vm667_vm0, %v686_v51, %v687_v52  ;;  %v859_v3 = vrot.slane %v3622_v61, 1  ;;  %v861_v5 = vrot.slane %v3625_v62, 1  ;;  %v3638_v7 = vsel %vm667_vm0, 0.0, %v686_v51 }
  0x2c   : > { %v3641_v8 = vsel %vm667_vm0, %v687_v52, 0.0  ;;  %v873_v9 = vrot.slane %v3638_v7, 1  ;;  %v874_v10 = vrot.slane %v3629_v2, 1  ;;  %v692_v12 = vrot.slane %v599_v58, 7 }
  0x2d   : > { %v876_v11 = vrot.slane %v3641_v8, 1  ;;  %v860_v14 = vsel %vm842_vm1, %v858_v63, %v859_v3  ;;  %v862_v15 = vsel %vm842_vm1, %v859_v3, %v861_v5  ;;  %v693_v16 = vrot.slane %v600_v59, 7  ;;  %v507_v63 = vld [vmem:[%s3491_s10 + $0x90] sm:$0xff] }
  0x2e   : > { %v566_v20 = vadd.f32 %v3496_v1, %v534_v53  ;;  %v3649_v22 = vpack.i.bf16 %v862_v15, %v860_v14  ;;  %v875_v23 = vsel %vm842_vm1, %v873_v9, %v874_v10  ;;  %v3654_v25 = vsel %vm667_vm0, 0.0, %v692_v12 }
  0x2f   : > { %v877_v24 = vsel %vm842_vm1, %v874_v10, %v876_v11  ;;  %v3661_v30 = vsel %vm667_vm0, %v692_v12, %v693_v16  ;;  %v3664_v31 = vsel %vm667_vm0, %v693_v16, 0.0  ;;  %v883_v32 = vrot.slane %v3654_v25, 1  ;;  %v508_v11 = vld [vmem:[%s3491_s10 + $0x98] sm:$0xff] }
  0x30   : > { %5292 = vst [vmem:[#allocation6_spill] sm:$0xff] %v3649_v22  ;;  %v3658_v29 = vpack.i.bf16 %v877_v24, %v875_v23  ;;  %2754 = vrot.lane.b32.xlu1 %v3649_v22, %s3411_s13  ;;  %v884_v33 = vrot.slane %v3661_v30, 1  ;;  %v886_v34 = vrot.slane %v3664_v31, 1  ;;  %v597_v36 = vmax.f32 %v565_v60, 0.0 }
  0x31   : > { %v598_v37 = vmax.f32 %v566_v20, 0.0  ;;  %v474_v38 = vmul.f32 %v3482_v0, %v469_v21  ;;  %v475_v43 = vmul.f32 %v3482_v0, %v470_v26  ;;  %v541_v44 = vmul.f32 %v3482_v0, %v509_v27  ;;  %v505_v26 = vld [vmem:[%s3491_s10 + $0x80] sm:$0xff] }
  0x32   : > { %5293 = vst [vmem:[#allocation7_spill] sm:$0xff] %v3658_v29  ;;  %2769 = vrot.lane.b32.xlu0 %v3658_v29, %s3411_s13  ;;  %v542_v45 = vmul.f32 %v3482_v0, %v510_v28  ;;  %v885_v46 = vsel %vm842_vm1, %v883_v32, %v884_v33  ;;  %v887_v49 = vsel %vm842_vm1, %v884_v33, %v886_v34  ;;  %v689_v51 = vrot.slane %v597_v36, 7  ;;  %v518_v29 = vld [vmem:[%s3491_s10 + $0xe8] sm:$0xff] }
  0x33   : > { %v690_v52 = vrot.slane %v598_v37, 7  ;;  %v3679_v53 = vpack.i.bf16 %v887_v49, %v885_v46  ;;  %v479_v58 = vadd.f32 %v3496_v1, %v474_v38  ;;  %v480_v59 = vadd.f32 %v3496_v1, %v475_v43 }
  0x34   : > { %v573_v60 = vadd.f32 %v3496_v1, %v541_v44  ;;  %v3689_v5 = vsel %vm667_vm0, 0.0, %v689_v51  ;;  %v574_v10 = vadd.f32 %v3496_v1, %v542_v45  ;;  %v539_v24 = vmul.f32 %v3482_v0, %v507_v63 }
  0x35   : > { %5294 = vst [vmem:[#allocation8_spill] sm:$0xff] %v3679_v53  ;;  %v3686_v3 = vsel %vm667_vm0, %v689_v51, %v690_v52  ;;  %v3692_v9 = vsel %vm667_vm0, %v690_v52, 0.0  ;;  %2779 = vrot.lane.b32.xlu2 %v3679_v53, %s3411_s13  ;;  %v878_v12 = vrot.slane %v3689_v5, 1  ;;  %v481_v16 = vmax.f32 %v479_v58, 0.0 }
  0x36   : > { %v879_v14 = vrot.slane %v3686_v3, 1  ;;  %v881_v15 = vrot.slane %v3692_v9, 1  ;;  %v482_v20 = vmax.f32 %v480_v59, 0.0  ;;  %v605_v21 = vmax.f32 %v573_v60, 0.0 }
  0x37   : > { %v606_v23 = vmax.f32 %v574_v10, 0.0  ;;  %v487_v32 = vmul.f32 0.0, %v481_v16  ;;  %v540_v33 = vmul.f32 %v3482_v0, %v508_v11  ;;  %v571_v44 = vadd.f32 %v3496_v1, %v539_v24  ;;  %v506_v11 = vld [vmem:[%s3491_s10 + $0x88] sm:$0xff] }
  0x38   : > { %v880_v27 = vsel %vm842_vm1, %v878_v12, %v879_v14  ;;  %v882_v28 = vsel %vm842_vm1, %v879_v14, %v881_v15  ;;  %v488_v36 = vmul.f32 0.0, %v482_v20  ;;  %v701_v37 = vrot.slane %v605_v21, 7  ;;  %v515_v20 = vld [vmem:[%s3491_s10 + $0xd0] sm:$0xff] }
  0x39   : > { %v3706_v34 = vpack.i.bf16 %v882_v28, %v880_v27  ;;  %v702_v38 = vrot.slane %v606_v23, 7  ;;  %v668_v43 = vrot.slane %v487_v32, 7  ;;  %v572_v45 = vadd.f32 %v3496_v1, %v540_v33 }
  0x3a   : > { %v537_v46 = vmul.f32 %v3482_v0, %v505_v26  ;;  %v669_v49 = vrot.slane %v488_v36, 7  ;;  %v3717_v52 = vsel %vm667_vm0, 0.0, %v701_v37  ;;  %v603_v16 = vmax.f32 %v571_v44, 0.0  ;;  %v516_v36 = vld [vmem:[%s3491_s10 + $0xd8] sm:$0xff] }
  0x3b   : > { %5295 = vst [vmem:[#allocation9_spill] sm:$0xff] %v3706_v34  ;;  %2774 = vrot.lane.b32.xlu1 %v3706_v34, %s3411_s13  ;;  %v3714_v51 = vsel %vm667_vm0, %v701_v37, %v702_v38  ;;  %v3720_v58 = vsel %vm667_vm0, %v702_v38, 0.0  ;;  %v3723_v59 = vsel %vm667_vm0, 0.0, %v668_v43  ;;  %v898_v60 = vrot.slane %v3717_v52, 1 }
  0x3c   : > { %5296 = vst [vmem:[#allocation10_spill] sm:$0xff] %v3723_v59  ;;  %v899_v63 = vrot.slane %v3714_v51, 1  ;;  %v901_v10 = vrot.slane %v3720_v58, 1  ;;  %v3730_v12 = vsel %vm667_vm0, %v668_v43, %v669_v49  ;;  %v3733_v14 = vsel %vm667_vm0, %v669_v49, 0.0  ;;  %v513_v49 = vld [vmem:[%s3491_s10 + $0xc0] sm:$0xff] }
  0x3d   : > { %5297 = vst [vmem:[#allocation11_spill] sm:$0xff] %v3730_v12  ;;  %v843_v15 = vrot.slane %v3723_v59, 1  ;;  %v844_v21 = vrot.slane %v3730_v12, 1  ;;  %v846_v23 = vrot.slane %v3733_v14, 1  ;;  %v604_v28 = vmax.f32 %v572_v45, 0.0 }
  0x3e   : > { %v900_v24 = vsel %vm842_vm1, %v898_v60, %v899_v63  ;;  %v902_v26 = vsel %vm842_vm1, %v899_v63, %v901_v10  ;;  %v698_v32 = vrot.slane %v603_v16, 7  ;;  %v538_v33 = vmul.f32 %v3482_v0, %v506_v11 }
  0x3f   : > { %v3741_v27 = vpack.i.bf16 %v902_v26, %v900_v24  ;;  %v845_v37 = vsel %vm842_vm1, %v843_v15, %v844_v21  ;;  %v847_v38 = vsel %vm842_vm1, %v844_v21, %v846_v23  ;;  %v569_v43 = vadd.f32 %v3496_v1, %v537_v46  ;;  %v514_v21 = vld [vmem:[%s3491_s10 + $0xc8] sm:$0xff] }
  0x40   : > { %v547_v44 = vmul.f32 %v3482_v0, %v515_v20  ;;  %v2783_v60 = vpack.i.bf16 %v847_v38, %v845_v37  ;;  %v699_v63 = vrot.slane %v604_v28, 7  ;;  %v3753_v45 = vsel %vm667_vm0, 0.0, %v698_v32 }
  0x41   : > { %5298 = vst [vmem:[#allocation12_spill] sm:$0xff] %v3741_v27  ;;  %2799 = vrot.lane.b32.xlu2 %v3741_v27, %s3411_s13  ;;  %v570_v10 = vadd.f32 %v3496_v1, %v538_v33  ;;  %v893_v11 = vrot.slane %v3753_v45, 1  ;;  %v601_v15 = vmax.f32 %v569_v43, 0.0  ;;  %v548_v16 = vmul.f32 %v3482_v0, %v516_v36  ;;  %v512_v27 = vld [vmem:[%s3491_s10 + $0xb8] sm:$0xff] }
  0x42   : > { %v579_v46 = vadd.f32 %v3496_v1, %v547_v44  ;;  %2784 = vrot.lane.b32.xlu0 %v2783_v60, %s3411_s13  ;;  %v3762_v20 = vsel %vm667_vm0, %v698_v32, %v699_v63  ;;  %v3765_v23 = vsel %vm667_vm0, %v699_v63, 0.0  ;;  %v545_v26 = vmul.f32 %v3482_v0, %v513_v49 }
  0x43   : > { %v602_v24 = vmax.f32 %v570_v10, 0.0  ;;  %v894_v28 = vrot.slane %v3762_v20, 1  ;;  %v896_v33 = vrot.slane %v3765_v23, 1  ;;  %v695_v36 = vrot.slane %v601_v15, 7 }
  0x44   : > { %v580_v37 = vadd.f32 %v3496_v1, %v548_v16  ;;  %v611_v43 = vmax.f32 %v579_v46, 0.0  ;;  %v546_v32 = vmul.f32 %v3482_v0, %v514_v21  ;;  %v577_v44 = vadd.f32 %v3496_v1, %v545_v26 }
  0x45   : > { %v696_v38 = vrot.slane %v602_v24, 7  ;;  %v895_v60 = vsel %vm842_vm1, %v893_v11, %v894_v28  ;;  %v897_v63 = vsel %vm842_vm1, %v894_v28, %v896_v33  ;;  %v3776_v10 = vsel %vm667_vm0, 0.0, %v695_v36 }
  0x46   : > { %v612_v49 = vmax.f32 %v580_v37, 0.0  ;;  %v3780_v34 = vpack.i.bf16 %v897_v63, %v895_v60  ;;  %v888_v46 = vrot.slane %v3776_v10, 1  ;;  %v710_v24 = vrot.slane %v611_v43, 7 }
  0x47   : > { %v3783_v15 = vsel %vm667_vm0, %v695_v36, %v696_v38  ;;  %v3786_v16 = vsel %vm667_vm0, %v696_v38, 0.0  ;;  %v578_v28 = vadd.f32 %v3496_v1, %v546_v32  ;;  %v609_v33 = vmax.f32 %v577_v44, 0.0 }
  0x48   : > { %5299 = vst [vmem:[#allocation13_spill] sm:$0xff] %v3780_v34  ;;  %v889_v11 = vrot.slane %v3783_v15, 1  ;;  %v891_v21 = vrot.slane %v3786_v16, 1  ;;  %v711_v26 = vrot.slane %v612_v49, 7  ;;  %2794 = vrot.lane.b32.xlu1 %v3780_v34, %s3411_s13  ;;  %v543_v36 = vmul.f32 %v3482_v0, %v511_v6 }
  0x49   : > { %v544_v37 = vmul.f32 %v3482_v0, %v512_v27  ;;  %v3802_v43 = vsel %vm667_vm0, 0.0, %v710_v24  ;;  %v610_v44 = vmax.f32 %v578_v28, 0.0 }
  0x4a   : > { %v890_v38 = vsel %vm842_vm1, %v888_v46, %v889_v11  ;;  %v892_v60 = vsel %vm842_vm1, %v889_v11, %v891_v21  ;;  %v3799_v63 = vsel %vm667_vm0, %v710_v24, %v711_v26  ;;  %5301 = vst [vmem:[#allocation15_spill] sm:$0xff] %v3802_v43  ;;  %v3807_v34 = vsel %vm667_vm0, %v711_v26, 0.0 }
  0x4b   : > { %5300 = vst [vmem:[#allocation14_spill] sm:$0xff] %v3799_v63  ;;  %v3804_v49 = vpack.i.bf16 %v892_v60, %v890_v38  ;;  %v913_v32 = vrot.slane %v3802_v43, 1  ;;  %v914_v6 = vrot.slane %v3799_v63, 1  ;;  %v916_v27 = vrot.slane %v3807_v34, 1 }
  0x4c   : > { %v707_v46 = vrot.slane %v609_v33, 7  ;;  %v575_v11 = vadd.f32 %v3496_v1, %v543_v36  ;;  %v576_v24 = vadd.f32 %v3496_v1, %v544_v37  ;;  %v929_v26 = vrot.slane %v3554_v56, 2 }
  0x4d   : > { %5302 = vst [vmem:[#allocation16_spill] sm:$0xff] %v3804_v49  ;;  %2789 = vrot.lane.b32.xlu0 %v3804_v49, %s3411_s13  ;;  %v915_v21 = vsel %vm842_vm1, %v913_v32, %v914_v6  ;;  %v917_v38 = vsel %vm842_vm1, %v914_v6, %v916_v27  ;;  %v708_v60 = vrot.slane %v610_v44, 7  ;;  %v930_v32 = vrot.slane %v3545_v50, 2 }
  0x4e   : > { %v3820_v53 = vsel %vm667_vm0, 0.0, %v707_v46  ;;  %v607_v28 = vmax.f32 %v575_v11, 0.0  ;;  %v3822_v33 = vpack.i.bf16 %v917_v38, %v915_v21  ;;  %v608_v55 = vmax.f32 %v576_v24, 0.0 }
  0x4f   : > { %v908_v36 = vrot.slane %v3820_v53, 1  ;;  %v3827_v37 = vsel %vm667_vm0, %v707_v46, %v708_v60  ;;  %v3830_v49 = vsel %vm667_vm0, %v708_v60, 0.0  ;;  %v924_v27 = vrot.slane %v3723_v59, 2 }
  0x50   : > { %5303 = vst [vmem:[#allocation17_spill] sm:$0xff] %v3822_v33  ;;  %v704_v6 = vrot.slane %v607_v28, 7  ;;  %2814 = vrot.lane.b32.xlu2 %v3822_v33, %s3411_s13  ;;  %v909_v44 = vrot.slane %v3827_v37, 1  ;;  %v911_v11 = vrot.slane %v3830_v49, 1  ;;  %v705_v21 = vrot.slane %v608_v55, 7 }
  0x51   : > { %v931_v24 = vsel %vm923_vm2, %v929_v26, %v930_v32  ;;  %v5304_v38 = vrot.slane %v3557_v57, 2  ;;  %v925_v28 = vrot.slane %v3730_v12, 2  ;;  %v927_v59 = vrot.slane %v3733_v14, 2 }
  0x52   : > { %v3839_v46 = vsel %vm667_vm0, 0.0, %v704_v6  ;;  %v910_v33 = vsel %vm842_vm1, %v908_v36, %v909_v44  ;;  %v912_v17 = vsel %vm842_vm1, %v909_v44, %v911_v11  ;;  %v3850_v55 = vsel %vm667_vm0, %v704_v6, %v705_v21 }
  0x53   : > { %v933_v60 = vsel %vm923_vm2, %v930_v32, %v5304_v38  ;;  %v3853_v26 = vsel %vm667_vm0, %v705_v21, 0.0  ;;  %v3856_v4 = vpack.i.bf16 %v912_v17, %v910_v33  ;;  %v903_v57 = vrot.slane %v3839_v46, 1 }
  0x54   : > { %v904_v32 = vrot.slane %v3850_v55, 1  ;;  %v906_v14 = vrot.slane %v3853_v26, 1  ;;  %v947_v38 = vrot.slane %v3529_v41, 2  ;;  %v3862_v36 = vpack.i.bf16 %v933_v60, %v931_v24 }
  0x55   : > { %5305 = vst [vmem:[#allocation18_spill] sm:$0xff] %v3856_v4  ;;  %v926_v44 = vsel %vm923_vm2, %v924_v27, %v925_v28  ;;  %v549_v6 = vmul.f32 %v3482_v0, %v517_v35  ;;  %2809 = vrot.lane.b32.xlu1 %v3856_v4, %s3411_s13  ;;  %v928_v11 = vsel %vm923_vm2, %v925_v28, %v927_v59  ;;  %v944_v24 = vrot.slane %v3526_v40, 2 }
  0x56   : > { %5306 = vst [vmem:[#allocation19_spill] sm:$0xff] %v3862_v36  ;;  %v905_v17 = vsel %vm842_vm1, %v903_v57, %v904_v32  ;;  %v907_v33 = vsel %vm842_vm1, %v904_v32, %v906_v14  ;;  %v550_v21 = vmul.f32 %v3482_v0, %v518_v29  ;;  %v945_v27 = vrot.slane %v3523_v39, 2 }
  0x57   : > { %v3872_v12 = vpack.i.bf16 %v907_v33, %v905_v17  ;;  %v581_v41 = vadd.f32 %v3496_v1, %v549_v6  ;;  %v2823_v60 = vpack.i.bf16 %v928_v11, %v926_v44  ;;  %v939_v14 = vrot.slane %v3618_v54, 2 }
  0x58   : > { %v582_v35 = vadd.f32 %v3496_v1, %v550_v21  ;;  %2829 = vrot.lane.b32.xlu2 %v3862_v36, %s3412_s17  ;;  %v946_v28 = vsel %vm923_vm2, %v944_v24, %v945_v27  ;;  %v948_v57 = vsel %vm923_vm2, %v945_v27, %v947_v38  ;;  %v940_v6 = vrot.slane %v3622_v61, 2 }
  0x59   : > { %5307 = vst [vmem:[#allocation20_spill] sm:$0xff] %v3872_v12  ;;  %2804 = vrot.lane.b32.xlu0 %v3872_v12, %s3411_s13  ;;  %v613_v59 = vmax.f32 %v581_v41, 0.0  ;;  %v942_v17 = vrot.slane %v3625_v62, 2  ;;  %v3890_v4 = vpack.i.bf16 %v948_v57, %v946_v28  ;;  %v959_v44 = vrot.slane %v3689_v5, 2 }
  0x5a   : > { %v614_v29 = vmax.f32 %v582_v35, 0.0  ;;  %v960_v11 = vrot.slane %v3686_v3, 2  ;;  %v962_v24 = vrot.slane %v3692_v9, 2  ;;  %v935_v9 = vrot.slane %v3538_v47, 2 }
  0x5b   : > { %v713_v32 = vrot.slane %v613_v59, 7  ;;  %v941_v59 = vsel %vm923_vm2, %v939_v14, %v940_v6 }
  0x5c   : > { %v714_v33 = vrot.slane %v614_v29, 7  ;;  %v943_v29 = vsel %vm923_vm2, %v940_v6, %v942_v17  ;;  %v961_v14 = vsel %vm923_vm2, %v959_v44, %v960_v11  ;;  %v963_v6 = vsel %vm923_vm2, %v960_v11, %v962_v24 }
  0x5d   : > { %v3888_v21 = vsel %vm667_vm0, 0.0, %v713_v32  ;;  %2824 = vrot.lane.b32.xlu1 %v2823_v60, %s3412_s17  ;;  %v937_v60 = vrot.slane %v3541_v48, 2  ;;  %v3916_v36 = vpack.i.bf16 %v943_v29, %v941_v59  ;;  %v954_v48 = vrot.slane %v3638_v7, 2 }
  0x5e   : > { %v3896_v38 = vsel %vm667_vm0, %v713_v32, %v714_v33  ;;  %v3899_v41 = vsel %vm667_vm0, %v714_v33, 0.0  ;;  %v918_v62 = vrot.slane %v3888_v21, 1  ;;  %v934_v32 = vrot.slane %v3532_v42, 2 }
  0x5f   : > { %v919_v27 = vrot.slane %v3896_v38, 1  ;;  %v921_v35 = vrot.slane %v3899_v41, 1  ;;  %v955_v17 = vrot.slane %v3629_v2, 2  ;;  %v974_v44 = vrot.slane %v3753_v45, 2 }
  0x60   : > { %2844 = vrot.lane.b32.xlu2 %v3890_v4, %s3412_s17  ;;  %v975_v11 = vrot.slane %v3762_v20, 2  ;;  %v977_v24 = vrot.slane %v3765_v23, 2 }
  0x61   : > { %v920_v28 = vsel %vm842_vm1, %v918_v62, %v919_v27  ;;  %v922_v57 = vsel %vm842_vm1, %v919_v27, %v921_v35  ;;  %v957_v62 = vrot.slane %v3641_v8, 2  ;;  %v936_v27 = vsel %vm923_vm2, %v934_v32, %v935_v9 }
  0x62   : > { %v3914_v33 = vpack.i.bf16 %v922_v57, %v920_v28  ;;  %v938_v35 = vsel %vm923_vm2, %v935_v9, %v937_v60  ;;  %v3927_v28 = vpack.i.bf16 %v963_v6, %v961_v14  ;;  %v956_v8 = vsel %vm923_vm2, %v954_v48, %v955_v17 }
  0x63   : > { %v958_v59 = vsel %vm923_vm2, %v955_v17, %v957_v62  ;;  %v3936_v29 = vpack.i.bf16 %v938_v35, %v936_v27  ;;  %v949_v60 = vrot.slane %v3580_v13, 2  ;;  %v950_v57 = vrot.slane %v3588_v18, 2 }
  0x64   : > { %5308 = vst [vmem:[#allocation21_spill] sm:$0xff] %v3914_v33  ;;  %2819 = vrot.lane.b32.xlu0 %v3914_v33, %s3411_s13  ;;  %v952_v32 = vrot.slane %v3591_v19, 2  ;;  %v3943_v9 = vpack.i.bf16 %v958_v59, %v956_v8  ;;  %v976_v14 = vsel %vm923_vm2, %v974_v44, %v975_v11  ;;  %v978_v23 = vsel %vm923_vm2, %v975_v11, %v977_v24 }
  0x65   : > { %2839 = vrot.lane.b32.xlu1 %v3916_v36, %s3412_s17  ;;  %v969_v6 = vrot.slane %v3776_v10, 2  ;;  %v970_v48 = vrot.slane %v3783_v15, 2  ;;  %v972_v17 = vrot.slane %v3786_v16, 2  ;;  %v951_v62 = vsel %vm923_vm2, %v949_v60, %v950_v57 }
  0x66   : > { %v953_v27 = vsel %vm923_vm2, %v950_v57, %v952_v32  ;;  %v3954_v19 = vpack.i.bf16 %v978_v23, %v976_v14  ;;  %v989_v35 = vrot.slane %v3820_v53, 2  ;;  %v990_v44 = vrot.slane %v3827_v37, 2 }
  0x67   : > { %v992_v11 = vrot.slane %v3830_v49, 2  ;;  %v971_v16 = vsel %vm923_vm2, %v969_v6, %v970_v48  ;;  %v973_v24 = vsel %vm923_vm2, %v970_v48, %v972_v17  ;;  %v3963_v8 = vpack.i.bf16 %v953_v27, %v951_v62 }
  0x68   : > { %2859 = vrot.lane.b32.xlu2 %v3927_v28, %s3412_s17  ;;  %v964_v59 = vrot.slane %v3654_v25, 2  ;;  %v965_v60 = vrot.slane %v3661_v30, 2  ;;  %v967_v57 = vrot.slane %v3664_v31, 2  ;;  %v3970_v32 = vpack.i.bf16 %v973_v24, %v971_v16 }
  0x69   : > { %v991_v14 = vsel %vm923_vm2, %v989_v35, %v990_v44  ;;  %v993_v49 = vsel %vm923_vm2, %v990_v44, %v992_v11  ;;  %v984_v23 = vrot.slane %v3839_v46, 2  ;;  %v985_v6 = vrot.slane %v3850_v55, 2 }
  0x6a   : > { %5309 = vst [vmem:[#allocation22_spill] sm:$0xff] %v3970_v32  ;;  %v987_v48 = vrot.slane %v3853_v26, 2  ;;  %v966_v17 = vsel %vm923_vm2, %v964_v59, %v965_v60  ;;  %v968_v62 = vsel %vm923_vm2, %v965_v60, %v967_v57  ;;  %v3981_v31 = vpack.i.bf16 %v993_v49, %v991_v14 }
  0x6b   : > { %v986_v27 = vsel %vm923_vm2, %v984_v23, %v985_v6  ;;  %v3987_v44 = vpack.i.bf16 %v968_v62, %v966_v17  ;;  %v979_v26 = vrot.slane %v3717_v52, 2  ;;  %v980_v11 = vrot.slane %v3714_v51, 2 }
  0x6c   : > { %2834 = vrot.lane.b32.xlu0 %v3936_v29, %s3412_s17  ;;  %5310 = vst [vmem:[#allocation23_spill] sm:$0xff] %v3981_v31  ;;  %v988_v35 = vsel %vm923_vm2, %v985_v6, %v987_v48  ;;  %v982_v16 = vrot.slane %v3720_v58, 2  ;;  %v999_v59 = vrot.slane %v3888_v21, 2  ;;  %v1000_v60 = vrot.slane %v3896_v38, 2 }
  0x6d   : > { %2854 = vrot.lane.b32.xlu1 %v3943_v9, %s3412_s17  ;;  %v3994_v24 = vpack.i.bf16 %v988_v35, %v986_v27  ;;  %v1002_v57 = vrot.slane %v3899_v41, 2  ;;  %v981_v14 = vsel %vm923_vm2, %v979_v26, %v980_v11  ;;  %v2903_v23 = vpack.i.bf16 %v3545_v50, %v3554_v56 }
  0x6e   : > { %v983_v49 = vsel %vm923_vm2, %v980_v11, %v982_v16  ;;  %v1001_v58 = vsel %vm923_vm2, %v999_v59, %v1000_v60  ;;  %v994_v41 = vrot.slane %v3802_v43, 2  ;;  %v995_v17 = vrot.slane %v3799_v63, 2 }
  0x6f   : > { %5311 = vst [vmem:[#allocation24_spill] sm:$0xff] %v3994_v24  ;;  %v1003_v6 = vsel %vm923_vm2, %v1000_v60, %v1002_v57  ;;  %v4009_v48 = vpack.i.bf16 %v983_v49, %v981_v14  ;;  %v997_v62 = vrot.slane %v3807_v34, 2  ;;  %v4025_v16 = vpack.i.bf16 %v3523_v39, %v3526_v40  ;;  %v519_v14 = vld [vmem:[%s3491_s10 + $0xf0] sm:$0xff]  ;;  %v520_v49 = vld [vmem:[%s3491_s10 + $0xf8] sm:$0xff] }
  0x70   : > { %2874 = vrot.lane.b32.xlu2 %v3954_v19, %s3412_s17  ;;  %v4015_v27 = vpack.i.bf16 %v1003_v6, %v1001_v58  ;;  %v996_v26 = vsel %vm923_vm2, %v994_v41, %v995_v17  ;;  %v4035_v59 = vpack.i.bf16 %v3622_v61, %v3618_v54  ;;  %v4041_v60 = vpack.i.bf16 %v3686_v3, %v3689_v5 }
  0x71   : > { %v998_v11 = vsel %vm923_vm2, %v995_v17, %v997_v62  ;;  %5313 = vst [vmem:[#allocation26_spill] sm:$0xff] %v4025_v16  ;;  %v4057_v58 = vpack.i.bf16 %v3629_v2, %v3638_v7  ;;  %v551_v6 = vmul.f32 %v3482_v0, %v519_v14  ;;  %v552_v41 = vmul.f32 %v3482_v0, %v520_v49 }
  0x72   : > { %5312 = vst [vmem:[#allocation25_spill] sm:$0xff] %v4015_v27  ;;  %v4029_v34 = vpack.i.bf16 %v998_v11, %v996_v26  ;;  %v4065_v17 = vpack.i.bf16 %v3762_v20, %v3753_v45  ;;  %v4075_v14 = vpack.i.bf16 %v3588_v18, %v3580_v13  ;;  %v4081_v0 = vpack.i.bf16 %v3783_v15, %v3776_v10 }
  0x73   : > { %5314 = vst [vmem:[#allocation27_spill] sm:$0xff] %v4035_v59  ;;  %v583_v62 = vadd.f32 %v3496_v1, %v551_v6  ;;  %v584_v26 = vadd.f32 %v3496_v1, %v552_v41  ;;  %v4087_v1 = vpack.i.bf16 %v3827_v37, %v3820_v53 }
  0x74   : > { %2849 = vrot.lane.b32.xlu0 %v3963_v8, %s3412_s17  ;;  %5315 = vst [vmem:[#allocation28_spill] sm:$0xff] %v4041_v60 }
  0x75   : > { %2869 = vrot.lane.b32.xlu1 %v3970_v32, %s3412_s17  ;;  %5317 = vst [vmem:[#allocation30_spill] sm:$0xff] %v4057_v58  ;;  %v615_v49 = vmax.f32 %v583_v62, 0.0 }
  0x76   : > { %5318 = vst [vmem:[#allocation31_spill] sm:$0xff] %v4065_v17 }
  0x77   : > { %5319 = vst [vmem:[#allocation32_spill] sm:$0xff] %v4075_v14  ;;  %v716_v6 = vrot.slane %v615_v49, 7 }
  0x78   : > { %2889 = vrot.lane.b32.xlu2 %v3981_v31, %s3412_s17  ;;  %5320 = vst [vmem:[#allocation33_spill] sm:$0xff] %v4081_v0 }
  0x79   : > { %5321 = vst [vmem:[#allocation34_spill] sm:$0xff] %v4087_v1 }
  0x7a   : > { %v4017_v35 = vpop.permute.xlu2 %2759 }
  0x7c   : > { %2864 = vrot.lane.b32.xlu0 %v3987_v44, %s3412_s17 }
  0x7d   : > { %2884 = vrot.lane.b32.xlu1 %v3994_v24, %s3412_s17 }
  0x80   : > { %2904 = vrot.lane.b32.xlu2 %v2903_v23, %s3413_s18  ;;  %v4051_v23 = vpack.i.bf16 %v3538_v47, %v3532_v42 }
  0x82   : > { %v4043_v57 = vpop.permute.xlu2 %2764  ;;  %5316 = vst [vmem:[#allocation29_spill] sm:$0xff] %v4051_v23 }
  0x84   : > { %2879 = vrot.lane.b32.xlu0 %v4009_v48, %s3412_s17 }
  0x85   : > { %2899 = vrot.lane.b32.xlu1 %v4015_v27, %s3412_s17  ;;  %v4144_v27 = vpack.i.bf16 %v3799_v63, %v3802_v43 }
  0x87   : > { %5328 = vst [vmem:[#allocation41_spill] sm:$0xff] %v4144_v27 }
  0x88   : > { %2919 = vrot.lane.b32.xlu2 %v4025_v16, %s3413_s18  ;;  %v4095_v16 = vpack.i.bf16 %v3661_v30, %v3654_v25 }
  0x8a   : > { %5322 = vst [vmem:[#allocation35_spill] sm:$0xff] %v4095_v16 }
  0x8c   : > { %2894 = vrot.lane.b32.xlu0 %v4029_v34, %s3412_s17 }
  0x8d   : > { %2914 = vrot.lane.b32.xlu1 %v4035_v59, %s3413_s18 }
  0x8f   : > { %v4071_v11 = vpop.permute.xlu2 %2779 }
  0x90   : > { %2934 = vrot.lane.b32.xlu2 %v4041_v60, %s3413_s18  ;;  %v616_v60 = vmax.f32 %v584_v26, 0.0  ;;  %v4105_v26 = vpack.i.bf16 %v3850_v55, %v3839_v46 }
  0x92   : > { %v4091_v41 = vrot.slane %v616_v60, 7  ;;  %5323 = vst [vmem:[#allocation36_spill] sm:$0xff] %v4105_v26  ;;  %v4112_v60 = vsel %vm667_vm0, 0.0, %v716_v6 }
  0x94   : > { %2909 = vrot.lane.b32.xlu0 %v4051_v23, %s3413_s18  ;;  %v4109_v49 = vsel %vm667_vm0, %v716_v6, %v4091_v41  ;;  %v4130_v6 = vpack.i.bf16 %v3896_v38, %v3888_v21 }
  0x95   : > { %2929 = vrot.lane.b32.xlu1 %v4057_v58, %s3413_s18  ;;  %v4097_v58 = vpop.permute.xlu1 %2749 }
  0x96   : > { %5326 = vst [vmem:[#allocation39_spill] sm:$0xff] %v4130_v6 }
  0x98   : > { %2949 = vrot.lane.b32.xlu2 %v4065_v17, %s3413_s18 }
  0x9b   : > { %v4101_v62 = vpop.permute.xlu2 %2799 }
  0x9c   : > { %2924 = vrot.lane.b32.xlu0 %v4075_v14, %s3413_s18  ;;  %v4124_v14 = vpack.i.bf16 %v3714_v51, %v3717_v52 }
  0x9d   : > { %2944 = vrot.lane.b32.xlu1 %v4081_v0, %s3413_s18  ;;  %v2745_v0 = vpop.permute.xlu0 %2744 }
  0x9e   : > { %5325 = vst [vmem:[#allocation38_spill] sm:$0xff] %v4124_v14  ;;  %v2746_v59 = vunpack.i.l.bf16 %v2745_v0 }
  0xa0   : > { %2964 = vrot.lane.b32.xlu2 %v4087_v1, %s3413_s18  ;;  %v4118_v1 = vpack.i.bf16 %v4109_v49, %v4112_v60  ;;  %v1799_v43 = vsel %vm1796_vm3, %v3554_v56, %v2746_v59  ;;  %v5332_v56 = vld [vmem:[#allocation4_spill] sm:$0xff] }
  0xa2   : > { %5324 = vst [vmem:[#allocation37_spill] sm:$0xff] %v4118_v1 }
  0xa4   : > { %2939 = vrot.lane.b32.xlu0 %v4095_v16, %s3413_s18  ;;  %v4132_v16 = vpop.permute.xlu1 %2754 }
  0xa5   : > { %2959 = vrot.lane.b32.xlu1 %v4105_v26, %s3413_s18  ;;  %v4140_v26 = vpop.permute.xlu0 %2769 }
  0xa8   : > { %2979 = vrot.lane.b32.xlu2 %v4118_v1, %s3413_s18  ;;  %v2747_v1 = vunpack.i.h.bf16 %v2745_v0  ;;  %v5329_v0 = vld [vmem:[#allocation3_spill] sm:$0xff] }
  0xaa   : > { %v4134_v17 = vpop.permute.xlu2 %2814  ;;  %v1800_v31 = vsel %vm1796_vm3, %v3545_v50, %v2747_v1 }
  0xab   : > { %5327 = vst [vmem:[#allocation40_spill] sm:$0xff] %v4134_v17  ;;  %v5331_v17 = vld [vmem:[#allocation7_spill] sm:$0xff] }
  0xac   : > { %2954 = vrot.lane.b32.xlu0 %v4124_v14, %s3413_s18 }
  0xad   : > { %2974 = vrot.lane.b32.xlu1 %v4130_v6, %s3413_s18  ;;  %v2775_v14 = vpop.permute.xlu1 %2774 }
  0xb0   : > { %2994 = vrot.lane.b32.xlu2 %v3649_v22, %s3414_s19 }
  0xb2   : > { %v2830_v24 = vpop.permute.xlu2 %2829 }
  0xb3   : > { %v2832_v6 = vunpack.i.h.bf16 %v2830_v24  ;;  %v2831_v23 = vunpack.i.l.bf16 %v2830_v24  ;;  %v2761_v24 = vunpack.i.l.bf16 %v4017_v35 }
  0xb4   : > { %2969 = vrot.lane.b32.xlu0 %v4144_v27, %s3413_s18  ;;  %v2785_v32 = vpop.permute.xlu0 %2784  ;;  %v2762_v27 = vunpack.i.h.bf16 %v4017_v35 }
  0xb5   : > { %2989 = vrot.lane.b32.xlu1 %v5329_v0, %s3414_s19  ;;  %v4157_v22 = vsel %vm1829_vm4, %v1799_v43, %v2831_v23  ;;  %v4160_v63 = vsel %vm1829_vm4, %v1800_v31, %v2832_v6  ;;  %v1805_v31 = vsel %vm1796_vm3, %v3526_v40, %v2761_v24  ;;  %v5333_v23 = vld [vmem:[#allocation5_spill] sm:$0xff]  ;;  %v5336_v40 = vld [vmem:[#allocation2_spill] sm:$0xff] }
  0xb6   : > { %5330 = vst [vmem:[#allocation42_spill] sm:$0xff] %v4157_v22  ;;  %v1806_v43 = vsel %vm1796_vm3, %v3523_v39, %v2762_v27 }
  0xb8   : > { %3009 = vrot.lane.b32.xlu2 %v5331_v17, %s3414_s19  ;;  %v2777_v17 = vunpack.i.h.bf16 %v2775_v14 }
  0xba   : > { %v2845_v50 = vpop.permute.xlu2 %2844  ;;  %v2795_v6 = vpop.permute.xlu1 %2794 }
  0xbb   : > { %v2847_v59 = vunpack.i.h.bf16 %v2845_v50  ;;  %v2846_v1 = vunpack.i.l.bf16 %v2845_v50  ;;  %v5335_v50 = vld [vmem:[#allocation16_spill] sm:$0xff] }
  0xbc   : > { %2984 = vrot.lane.b32.xlu0 %v5332_v56, %s3414_s19  ;;  %v2776_v56 = vunpack.i.l.bf16 %v2775_v14 }
  0xbd   : > { %3004 = vrot.lane.b32.xlu1 %v5333_v23, %s3414_s19  ;;  %v4175_v35 = vsel %vm1829_vm4, %v1806_v43, %v2847_v59  ;;  %v4178_v0 = vsel %vm1829_vm4, %v1805_v31, %v2846_v1  ;;  %v1812_v59 = vsel %vm1796_vm3, %v3686_v3, %v2777_v17  ;;  %v5337_v43 = vld [vmem:[#allocation8_spill] sm:$0xff]  ;;  %v2797_v23 = vunpack.i.h.bf16 %v2795_v6  ;;  %v5340_v3 = vld [vmem:[#allocation9_spill] sm:$0xff] }
  0xbe   : > { %5334 = vst [vmem:[#allocation4_spill] sm:$0xff] %v4178_v0  ;;  %v1811_v1 = vsel %vm1796_vm3, %v3689_v5, %v2776_v56 }
  0xbf   : > { %v4182_v22 = vpop.permute.xlu0 %2789 }
  0xc0   : > { %3024 = vrot.lane.b32.xlu2 %v5335_v50, %s3414_s19 }
  0xc2   : > { %v2860_v39 = vpop.permute.xlu2 %2859 }
  0xc3   : > { %v2862_v27 = vunpack.i.h.bf16 %v2860_v39  ;;  %v2861_v24 = vunpack.i.l.bf16 %v2860_v39 }
  0xc4   : > { %2999 = vrot.lane.b32.xlu0 %v5336_v40, %s3414_s19  ;;  %v2796_v40 = vunpack.i.l.bf16 %v2795_v6  ;;  %v5341_v6 = vld [vmem:[#allocation12_spill] sm:$0xff] }
  0xc5   : > { %3019 = vrot.lane.b32.xlu1 %v5337_v43, %s3414_s19  ;;  %v4193_v14 = vsel %vm1829_vm4, %v1812_v59, %v2862_v27  ;;  %v4196_v31 = vsel %vm1829_vm4, %v1811_v1, %v2861_v24  ;;  %v1818_v27 = vsel %vm1796_vm3, %v3762_v20, %v2797_v23  ;;  %v2787_v59 = vunpack.i.h.bf16 %v2785_v32 }
  0xc6   : > { %5338 = vst [vmem:[#allocation43_spill] sm:$0xff] %v4193_v14  ;;  %v1817_v24 = vsel %vm1796_vm3, %v3753_v45, %v2796_v40  ;;  %v2786_v1 = vunpack.i.l.bf16 %v2785_v32  ;;  %v5342_v45 = vld [vmem:[#allocation11_spill] sm:$0xff]  ;;  %v5343_v32 = vld [vmem:[#allocation10_spill] sm:$0xff] }
  0xc7   : > { %5339 = vst [vmem:[#allocation44_spill] sm:$0xff] %v4196_v31  ;;  %v2810_v50 = vpop.permute.xlu1 %2809  ;;  %v1798_v20 = vsel %vm1796_vm3, %v5342_v45, %v2787_v59 }
  0xc8   : > { %3039 = vrot.lane.b32.xlu2 %v3872_v12, %s3414_s19  ;;  %v2812_v31 = vunpack.i.h.bf16 %v2810_v50  ;;  %v1797_v23 = vsel %vm1796_vm3, %v5343_v32, %v2786_v1  ;;  %v2756_v1 = vunpack.i.l.bf16 %v4132_v16  ;;  %v4244_v32 = vsel %vm667_vm0, %v4091_v41, 0.0 }
  0xca   : > { %v2875_v39 = vpop.permute.xlu2 %2874  ;;  %v1803_v41 = vsel %vm1796_vm3, %v3618_v54, %v2756_v1  ;;  %v2772_v54 = vunpack.i.h.bf16 %v4140_v26  ;;  %v2771_v1 = vunpack.i.l.bf16 %v4140_v26 }
  0xcb   : > { %v4202_v5 = vpop.permute.xlu0 %2804  ;;  %v2877_v17 = vunpack.i.h.bf16 %v2875_v39  ;;  %v2876_v56 = vunpack.i.l.bf16 %v2875_v39  ;;  %v2811_v39 = vunpack.i.l.bf16 %v2810_v50 }
  0xcc   : > { %3014 = vrot.lane.b32.xlu0 %v5340_v3, %s3414_s19 }
  0xcd   : > { %3034 = vrot.lane.b32.xlu1 %v5341_v6, %s3414_s19  ;;  %v4211_v12 = vsel %vm1829_vm4, %v1818_v27, %v2877_v17  ;;  %v4214_v43 = vsel %vm1829_vm4, %v1817_v24, %v2876_v56  ;;  %v5344_v27 = vld [vmem:[#allocation13_spill] sm:$0xff]  ;;  %v1823_v59 = vsel %vm1796_vm3, %v3820_v53, %v2811_v39  ;;  %v1006_v53 = vrot.slane %v4112_v60, 1  ;;  %v5346_v6 = vld [vmem:[#allocation18_spill] sm:$0xff] }
  0xce   : > { %v1007_v39 = vrot.slane %v4109_v49, 1 }
  0xcf   : > { %v2825_v3 = vpop.permute.xlu1 %2824 }
  0xd0   : > { %v2827_v14 = vunpack.i.h.bf16 %v2825_v3  ;;  %v2826_v0 = vunpack.i.l.bf16 %v2825_v3  ;;  %3054 = vrot.lane.b32.xlu2 %v3914_v33, %s3414_s19  ;;  %v2757_v3 = vunpack.i.h.bf16 %v4132_v16  ;;  %v1824_v33 = vsel %vm1796_vm3, %v3827_v37, %v2812_v31 }
  0xd2   : > { %v1830_v40 = vsel %vm1829_vm4, %v1797_v23, %v2826_v0  ;;  %v1831_v17 = vsel %vm1829_vm4, %v1798_v20, %v2827_v14  ;;  %v2890_v56 = vpop.permute.xlu2 %2889  ;;  %v5345_v0 = vld [vmem:[#allocation17_spill] sm:$0xff]  ;;  %v1804_v23 = vsel %vm1796_vm3, %v3622_v61, %v2757_v3  ;;  %v1008_v61 = vsel %vm842_vm1, %v1006_v53, %v1007_v39 }
  0xd3   : > { %v2892_v50 = vunpack.i.h.bf16 %v2890_v56  ;;  %v2891_v24 = vunpack.i.l.bf16 %v2890_v56 }
  0xd4   : > { %3029 = vrot.lane.b32.xlu0 %v5344_v27, %s3414_s19 }
  0xd5   : > { %3049 = vrot.lane.b32.xlu1 %v5345_v0, %s3414_s19  ;;  %v4237_v14 = vsel %vm1829_vm4, %v1824_v33, %v2892_v50  ;;  %v4240_v20 = vsel %vm1829_vm4, %v1823_v59, %v2891_v24  ;;  %v1009_v33 = vrot.slane %v4244_v32, 1  ;;  %v2752_v59 = vunpack.i.h.bf16 %v4097_v58 }
  0xd6   : > { %v4232_v45 = vpop.permute.xlu0 %2819 }
  0xd7   : > { %v2840_v37 = vpop.permute.xlu1 %2839  ;;  %v1010_v3 = vsel %vm842_vm1, %v1007_v39, %v1009_v33  ;;  %v1802_v53 = vsel %vm1796_vm3, %v3538_v47, %v2752_v59  ;;  %v1810_v47 = vsel %vm1796_vm3, %v3629_v2, %v2772_v54  ;;  %v2791_v2 = vunpack.i.l.bf16 %v4182_v22 }
  0xd8   : > { %v2842_v31 = vunpack.i.h.bf16 %v2840_v37  ;;  %v2841_v16 = vunpack.i.l.bf16 %v2840_v37  ;;  %3069 = vrot.lane.b32.xlu2 %v3936_v29, %s3415_s20  ;;  %v2751_v37 = vunpack.i.l.bf16 %v4097_v58  ;;  %v4277_v33 = vpack.i.bf16 %v1010_v3, %v1008_v61 }
  0xd9   : > { %v2767_v61 = vunpack.i.h.bf16 %v4043_v57  ;;  %v2766_v3 = vunpack.i.l.bf16 %v4043_v57 }
  0xda   : > { %v1837_v56 = vsel %vm1829_vm4, %v1804_v23, %v2842_v31  ;;  %v1836_v50 = vsel %vm1829_vm4, %v1803_v41, %v2841_v16  ;;  %v2905_v24 = vpop.permute.xlu2 %2904  ;;  %v5347_v16 = vld [vmem:[#allocation19_spill] sm:$0xff]  ;;  %v1801_v39 = vsel %vm1796_vm3, %v3532_v42, %v2751_v37  ;;  %v1809_v42 = vsel %vm1796_vm3, %v3638_v7, %v2771_v1 }
  0xdb   : > { %v2907_v0 = vunpack.i.h.bf16 %v2905_v24  ;;  %v2906_v27 = vunpack.i.l.bf16 %v2905_v24 }
  0xdc   : > { %3044 = vrot.lane.b32.xlu0 %v5346_v6, %s3414_s19 }
  0xdd   : > { %3064 = vrot.lane.b32.xlu1 %v5347_v16, %s3415_s20  ;;  %v4268_v23 = vsel %vm1862_vm5, %v1830_v40, %v2906_v27  ;;  %v4271_v58 = vsel %vm1862_vm5, %v1831_v17, %v2907_v0 }
  0xde   : > { %v2835_v31 = vpop.permute.xlu0 %2834 }
  0xdf   : > { %v2837_v41 = vunpack.i.h.bf16 %v2835_v31  ;;  %v2836_v24 = vunpack.i.l.bf16 %v2835_v31  ;;  %v2855_v26 = vpop.permute.xlu1 %2854 }
  0xe0   : > { %v2857_v27 = vunpack.i.h.bf16 %v2855_v26  ;;  %v2856_v17 = vunpack.i.l.bf16 %v2855_v26  ;;  %3084 = vrot.lane.b32.xlu2 %v3963_v8, %s3415_s20 }
  0xe1   : > { %v4280_v6 = vsel %vm1829_vm4, %v1802_v53, %v2837_v41  ;;  %v4283_v40 = vsel %vm1829_vm4, %v1801_v39, %v2836_v24  ;;  %v2792_v41 = vunpack.i.h.bf16 %v4182_v22  ;;  %v1808_v53 = vsel %vm1796_vm3, %v3588_v18, %v2767_v61 }
  0xe2   : > { %v1843_v0 = vsel %vm1829_vm4, %v1810_v47, %v2857_v27  ;;  %v1842_v59 = vsel %vm1829_vm4, %v1809_v42, %v2856_v17  ;;  %v2920_v37 = vpop.permute.xlu2 %2919  ;;  %v1807_v39 = vsel %vm1796_vm3, %v3580_v13, %v2766_v3  ;;  %v1815_v18 = vsel %vm1796_vm3, %v3776_v10, %v2791_v2 }
  0xe3   : > { %v2922_v31 = vunpack.i.h.bf16 %v2920_v37  ;;  %v2921_v16 = vunpack.i.l.bf16 %v2920_v37  ;;  %v2782_v37 = vunpack.i.h.bf16 %v4071_v11  ;;  %v2781_v61 = vunpack.i.l.bf16 %v4071_v11 }
  0xe4   : > { %3059 = vrot.lane.b32.xlu0 %v4277_v33, %s3414_s19 }
  0xe5   : > { %3079 = vrot.lane.b32.xlu1 %v3890_v4, %s3415_s20  ;;  %v4302_v7 = vsel %vm1862_vm5, %v1836_v50, %v2921_v16  ;;  %v4305_v1 = vsel %vm1862_vm5, %v1837_v56, %v2922_v31  ;;  %v1816_v56 = vsel %vm1796_vm3, %v3783_v15, %v2792_v41  ;;  %v2807_v16 = vunpack.i.h.bf16 %v4202_v5 }
  0xe6   : > { %v2850_v54 = vpop.permute.xlu0 %2849  ;;  %v2806_v15 = vunpack.i.l.bf16 %v4202_v5 }
  0xe7   : > { %v2852_v57 = vunpack.i.h.bf16 %v2850_v54  ;;  %v2851_v24 = vunpack.i.l.bf16 %v2850_v54  ;;  %v2870_v26 = vpop.permute.xlu1 %2869 }
  0xe8   : > { %v2872_v50 = vunpack.i.h.bf16 %v2870_v26  ;;  %v2871_v17 = vunpack.i.l.bf16 %v2870_v26  ;;  %3099 = vrot.lane.b32.xlu2 %v3987_v44, %s3415_s20 }
  0xe9   : > { %v4312_v22 = vsel %vm1829_vm4, %v1808_v53, %v2852_v57  ;;  %v4315_v27 = vsel %vm1829_vm4, %v1807_v39, %v2851_v24  ;;  %v1814_v57 = vsel %vm1796_vm3, %v3661_v30, %v2782_v37  ;;  %v1813_v24 = vsel %vm1796_vm3, %v3654_v25, %v2781_v61 }
  0xea   : > { %v1848_v13 = vsel %vm1829_vm4, %v1815_v18, %v2871_v17  ;;  %v1849_v47 = vsel %vm1829_vm4, %v1816_v56, %v2872_v50  ;;  %v2935_v42 = vpop.permute.xlu2 %2934  ;;  %v1821_v30 = vsel %vm1796_vm3, %v3839_v46, %v2806_v15  ;;  %v2802_v56 = vunpack.i.h.bf16 %v4101_v62 }
  0xeb   : > { %v2937_v3 = vunpack.i.h.bf16 %v2935_v42  ;;  %v2936_v31 = vunpack.i.l.bf16 %v2935_v42  ;;  %v2801_v18 = vunpack.i.l.bf16 %v4101_v62  ;;  %v2822_v61 = vunpack.i.h.bf16 %v4232_v45 }
  0xec   : > { %3074 = vrot.lane.b32.xlu0 %v3916_v36, %s3415_s20  ;;  %v1820_v15 = vsel %vm1796_vm3, %v3714_v51, %v2802_v56 }
  0xed   : > { %3094 = vrot.lane.b32.xlu1 %v3927_v28, %s3415_s20  ;;  %v4334_v10 = vsel %vm1862_vm5, %v1842_v59, %v2936_v31  ;;  %v4337_v2 = vsel %vm1862_vm5, %v1843_v0, %v2937_v3  ;;  %v1822_v0 = vsel %vm1796_vm3, %v3850_v55, %v2807_v16  ;;  %v2821_v55 = vunpack.i.l.bf16 %v4232_v45 }
  0xee   : > { %v2865_v41 = vpop.permute.xlu0 %2864 }
  0xef   : > { %v2867_v11 = vunpack.i.h.bf16 %v2865_v41  ;;  %v2866_v54 = vunpack.i.l.bf16 %v2865_v41  ;;  %v2885_v53 = vpop.permute.xlu1 %2884  ;;  %v1819_v41 = vsel %vm1796_vm3, %v3717_v52, %v2801_v18  ;;  %v1827_v51 = vsel %vm1796_vm3, %v3888_v21, %v2821_v55 }
  0xf0   : > { %v2887_v59 = vunpack.i.h.bf16 %v2885_v53  ;;  %v2886_v26 = vunpack.i.l.bf16 %v2885_v53  ;;  %3114 = vrot.lane.b32.xlu2 %v4009_v48, %s3415_s20  ;;  %v1011_v52 = vrot.slane %v4112_v60, 2  ;;  %v5350_v60 = vld [vmem:[#allocation23_spill] sm:$0xff] }
  0xf1   : > { %v4344_v5 = vsel %vm1829_vm4, %v1814_v57, %v2867_v11  ;;  %v4347_v39 = vsel %vm1829_vm4, %v1813_v24, %v2866_v54 }
  0xf2   : > { %v1854_v25 = vsel %vm1829_vm4, %v1821_v30, %v2886_v26  ;;  %v1855_v50 = vsel %vm1829_vm4, %v1822_v0, %v2887_v59  ;;  %v2950_v17 = vpop.permute.xlu2 %2949  ;;  %v1012_v26 = vrot.slane %v4109_v49, 2  ;;  %v1014_v0 = vrot.slane %v4244_v32, 2  ;;  %v5348_v30 = vld [vmem:[#allocation40_spill] sm:$0xff] }
  0xf3   : > { %v2952_v42 = vunpack.i.h.bf16 %v2950_v17  ;;  %v2951_v37 = vunpack.i.l.bf16 %v2950_v17  ;;  %v2817_v17 = vunpack.i.h.bf16 %v5348_v30  ;;  %v2816_v56 = vunpack.i.l.bf16 %v5348_v30 }
  0xf4   : > { %3089 = vrot.lane.b32.xlu0 %v3943_v9, %s3415_s20  ;;  %v1013_v55 = vsel %vm923_vm2, %v1011_v52, %v1012_v26 }
  0xf5   : > { %3109 = vrot.lane.b32.xlu1 %v3954_v19, %s3415_s20  ;;  %v4366_v46 = vsel %vm1862_vm5, %v1848_v13, %v2951_v37  ;;  %v4369_v31 = vsel %vm1862_vm5, %v1849_v47, %v2952_v42  ;;  %v1828_v47 = vsel %vm1796_vm3, %v3896_v38, %v2822_v61  ;;  %v5349_v38 = vld [vmem:[#allocation22_spill] sm:$0xff] }
  0xf6   : > { %v2880_v3 = vpop.permute.xlu0 %2879 }
  0xf7   : > { %v2882_v62 = vunpack.i.h.bf16 %v2880_v3  ;;  %v2881_v16 = vunpack.i.l.bf16 %v2880_v3  ;;  %v2900_v11 = vpop.permute.xlu1 %2899  ;;  %v1015_v3 = vsel %vm923_vm2, %v1012_v26, %v1014_v0  ;;  %v5354_v0 = vld [vmem:[#allocation24_spill] sm:$0xff] }
  0xf8   : > { %v2902_v13 = vunpack.i.h.bf16 %v2900_v11  ;;  %v2901_v57 = vunpack.i.l.bf16 %v2900_v11  ;;  %3129 = vrot.lane.b32.xlu2 %v4029_v34, %s3415_s20 }
  0xf9   : > { %v4376_v45 = vsel %vm1829_vm4, %v1820_v15, %v2882_v62  ;;  %v4379_v54 = vsel %vm1829_vm4, %v1819_v41, %v2881_v16  ;;  %v5351_v62 = vld [vmem:[#allocation14_spill] sm:$0xff]  ;;  %v5352_v15 = vld [vmem:[#allocation15_spill] sm:$0xff] }
  0xfa   : > { %v1860_v24 = vsel %vm1829_vm4, %v1827_v51, %v2901_v57  ;;  %v1861_v53 = vsel %vm1829_vm4, %v1828_v47, %v2902_v13  ;;  %v2965_v59 = vpop.permute.xlu2 %2964  ;;  %v1826_v16 = vsel %vm1796_vm3, %v5351_v62, %v2817_v17  ;;  %v1825_v41 = vsel %vm1796_vm3, %v5352_v15, %v2816_v56  ;;  %v5353_v47 = vld [vmem:[#allocation29_spill] sm:$0xff] }
  0xfb   : > { %v2967_v18 = vunpack.i.h.bf16 %v2965_v59  ;;  %v2966_v21 = vunpack.i.l.bf16 %v2965_v59  ;;  %v4418_v51 = vpack.i.bf16 %v1015_v3, %v1013_v55 }
  0xfc   : > { %3104 = vrot.lane.b32.xlu0 %v5349_v38, %s3415_s20 }
  0xfd   : > { %3124 = vrot.lane.b32.xlu1 %v5350_v60, %s3415_s20  ;;  %v4399_v37 = vsel %vm1862_vm5, %v1854_v25, %v2966_v21  ;;  %v4402_v49 = vsel %vm1862_vm5, %v1855_v50, %v2967_v18 }
  0xfe   : > { %v2895_v42 = vpop.permute.xlu0 %2894 }
  0xff   : > { %v2897_v32 = vunpack.i.h.bf16 %v2895_v42  ;;  %v2896_v61 = vunpack.i.l.bf16 %v2895_v42  ;;  %v2915_v11 = vpop.permute.xlu1 %2914 }
 0x100   : > { %v2917_v50 = vunpack.i.h.bf16 %v2915_v11  ;;  %v2916_v57 = vunpack.i.l.bf16 %v2915_v11  ;;  %3144 = vrot.lane.b32.xlu2 %v5353_v47, %s3416_s21 }
 0x101   : > { %v4411_v13 = vsel %vm1829_vm4, %v1826_v16, %v2897_v32  ;;  %v4414_v25 = vsel %vm1829_vm4, %v1825_v41, %v2896_v61  ;;  %v5355_v61 = vld [vmem:[#allocation42_spill] sm:$0xff]  ;;  %v5356_v16 = vld [vmem:[#allocation27_spill] sm:$0xff] }
 0x102   : > { %v1867_v52 = vsel %vm1862_vm5, %v4283_v40, %v2916_v57  ;;  %v1868_v59 = vsel %vm1862_vm5, %v4280_v6, %v2917_v50  ;;  %v2980_v26 = vpop.permute.xlu2 %2979 }
 0x103   : > { %v2982_v30 = vunpack.i.h.bf16 %v2980_v26  ;;  %v2981_v17 = vunpack.i.l.bf16 %v2980_v26 }
 0x104   : > { %3119 = vrot.lane.b32.xlu0 %v5354_v0, %s3415_s20 }
 0x105   : > { %3139 = vrot.lane.b32.xlu1 %v4418_v51, %s3415_s20  ;;  %v4429_v18 = vsel %vm1862_vm5, %v1860_v24, %v2981_v17  ;;  %v4432_v21 = vsel %vm1862_vm5, %v1861_v53, %v2982_v30  ;;  %v5358_v17 = vld [vmem:[#allocation4_spill] sm:$0xff] }
 0x106   : > { %v2910_v56 = vpop.permute.xlu0 %2909 }
 0x107   : > { %v2912_v40 = vunpack.i.h.bf16 %v2910_v56  ;;  %v2911_v42 = vunpack.i.l.bf16 %v2910_v56  ;;  %v2930_v32 = vpop.permute.xlu1 %2929 }
 0x108   : > { %v2932_v3 = vunpack.i.h.bf16 %v2930_v32  ;;  %v2931_v62 = vunpack.i.l.bf16 %v2930_v32  ;;  %3159 = vrot.lane.b32.xlu2 %v5356_v16, %s3416_s21  ;;  %v5361_v16 = vld [vmem:[#allocation6_spill] sm:$0xff] }
 0x109   : > { %v4436_v6 = vsel %vm1862_vm5, %v4160_v63, %v2912_v40  ;;  %v4440_v55 = vsel %vm1862_vm5, %v5355_v61, %v2911_v42  ;;  %v5357_v63 = vld [vmem:[#allocation25_spill] sm:$0xff] }
 0x10a   : > { %v1873_v24 = vsel %vm1862_vm5, %v4315_v27, %v2931_v62  ;;  %v1874_v53 = vsel %vm1862_vm5, %v4312_v22, %v2932_v3  ;;  %v2995_v15 = vpop.permute.xlu2 %2994 }
 0x10b   : > { %v2997_v41 = vunpack.i.h.bf16 %v2995_v15  ;;  %v2996_v11 = vunpack.i.l.bf16 %v2995_v15 }
 0x10c   : > { %3134 = vrot.lane.b32.xlu0 %v5357_v63, %s3415_s20 }
 0x10d   : > { %3154 = vrot.lane.b32.xlu1 %v3936_v29, %s3417_s22  ;;  %v4453_v57 = vsel %vm1895_vm6, %v1867_v52, %v2996_v11  ;;  %v4456_v27 = vsel %vm1895_vm6, %v1868_v59, %v2997_v41  ;;  %v5359_v29 = vld [vmem:[#allocation7_spill] sm:$0xff] }
 0x10e   : > { %v2925_v50 = vpop.permute.xlu0 %2924 }
 0x10f   : > { %v2927_v47 = vunpack.i.h.bf16 %v2925_v50  ;;  %v2926_v22 = vunpack.i.l.bf16 %v2925_v50  ;;  %v2945_v26 = vpop.permute.xlu1 %2944 }
 0x110   : > { %v2947_v40 = vunpack.i.h.bf16 %v2945_v26  ;;  %v2946_v42 = vunpack.i.l.bf16 %v2945_v26  ;;  %3174 = vrot.lane.b32.xlu2 %v5359_v29, %s3418_s23 }
 0x111   : > { %v4460_v30 = vsel %vm1862_vm5, %v4175_v35, %v2927_v47  ;;  %v4464_v56 = vsel %vm1862_vm5, %v5358_v17, %v2926_v22  ;;  %v5360_v35 = vld [vmem:[#allocation3_spill] sm:$0xff]  ;;  %v5363_v22 = vld [vmem:[#allocation44_spill] sm:$0xff] }
 0x112   : > { %v1879_v52 = vsel %vm1862_vm5, %v4347_v39, %v2946_v42  ;;  %v1880_v59 = vsel %vm1862_vm5, %v4344_v5, %v2947_v40  ;;  %v3010_v32 = vpop.permute.xlu2 %3009  ;;  %v5362_v5 = vld [vmem:[#allocation43_spill] sm:$0xff] }
 0x113   : > { %v3012_v61 = vunpack.i.h.bf16 %v3010_v32  ;;  %v3011_v3 = vunpack.i.l.bf16 %v3010_v32  ;;  %v5364_v42 = vld [vmem:[#allocation31_spill] sm:$0xff]  ;;  %v5365_v32 = vld [vmem:[#allocation30_spill] sm:$0xff] }
 0x114   : > { %3149 = vrot.lane.b32.xlu0 %v5360_v35, %s3418_s23 }
 0x115   : > { %3169 = vrot.lane.b32.xlu1 %v5361_v16, %s3418_s23  ;;  %v4477_v15 = vsel %vm1895_vm6, %v1873_v24, %v3011_v3  ;;  %v4480_v41 = vsel %vm1895_vm6, %v1874_v53, %v3012_v61 }
 0x116   : > { %v2940_v62 = vpop.permute.xlu0 %2939 }
 0x117   : > { %v2942_v39 = vunpack.i.h.bf16 %v2940_v62  ;;  %v2941_v11 = vunpack.i.l.bf16 %v2940_v62  ;;  %v2960_v50 = vpop.permute.xlu1 %2959 }
 0x118   : > { %v2962_v17 = vunpack.i.h.bf16 %v2960_v50  ;;  %v2961_v40 = vunpack.i.l.bf16 %v2960_v50  ;;  %3189 = vrot.lane.b32.xlu2 %v5364_v42, %s3416_s21 }
 0x119   : > { %v4484_v47 = vsel %vm1862_vm5, %v5362_v5, %v2942_v39  ;;  %v4488_v26 = vsel %vm1862_vm5, %v5363_v22, %v2941_v11 }
 0x11a   : > { %v1885_v24 = vsel %vm1862_vm5, %v4379_v54, %v2961_v40  ;;  %v1886_v53 = vsel %vm1862_vm5, %v4376_v45, %v2962_v17  ;;  %v3025_v29 = vpop.permute.xlu2 %3024 }
 0x11b   : > { %v3027_v35 = vunpack.i.h.bf16 %v3025_v29  ;;  %v3026_v61 = vunpack.i.l.bf16 %v3025_v29 }
 0x11c   : > { %3164 = vrot.lane.b32.xlu0 %v5365_v32, %s3416_s21 }
 0x11d   : > { %3184 = vrot.lane.b32.xlu1 %v3943_v9, %s3417_s22  ;;  %v4501_v62 = vsel %vm1895_vm6, %v1879_v52, %v3026_v61  ;;  %v4504_v16 = vsel %vm1895_vm6, %v1880_v59, %v3027_v35  ;;  %v5366_v9 = vld [vmem:[#allocation26_spill] sm:$0xff] }
 0x11e   : > { %v2955_v3 = vpop.permute.xlu0 %2954 }
 0x11f   : > { %v2957_v54 = vunpack.i.h.bf16 %v2955_v3  ;;  %v2956_v39 = vunpack.i.l.bf16 %v2955_v3  ;;  %v2975_v11 = vpop.permute.xlu1 %2974 }
 0x120   : > { %v2977_v5 = vunpack.i.h.bf16 %v2975_v11  ;;  %v2976_v22 = vunpack.i.l.bf16 %v2975_v11  ;;  %3204 = vrot.lane.b32.xlu2 %v5366_v9, %s3416_s21 }
 0x121   : > { %v4508_v45 = vsel %vm1862_vm5, %v4211_v12, %v2957_v54  ;;  %v4512_v50 = vsel %vm1862_vm5, %v4214_v43, %v2956_v39 }
 0x122   : > { %v1891_v52 = vsel %vm1862_vm5, %v4414_v25, %v2976_v22  ;;  %v1892_v59 = vsel %vm1862_vm5, %v4411_v13, %v2977_v5  ;;  %v3040_v17 = vpop.permute.xlu2 %3039  ;;  %v5369_v5 = vld [vmem:[#allocation2_spill] sm:$0xff] }
 0x123   : > { %v3042_v12 = vunpack.i.h.bf16 %v3040_v17  ;;  %v3041_v40 = vunpack.i.l.bf16 %v3040_v17 }
 0x124   : > { %3179 = vrot.lane.b32.xlu0 %v3916_v36, %s3417_s22 }
 0x125   : > { %3199 = vrot.lane.b32.xlu1 %v3954_v19, %s3417_s22  ;;  %v4525_v43 = vsel %vm1895_vm6, %v1885_v24, %v3041_v40  ;;  %v4528_v29 = vsel %vm1895_vm6, %v1886_v53, %v3042_v12  ;;  %v5367_v19 = vld [vmem:[#allocation9_spill] sm:$0xff] }
 0x126   : > { %v2970_v42 = vpop.permute.xlu0 %2969 }
 0x127   : > { %v2972_v25 = vunpack.i.h.bf16 %v2970_v42  ;;  %v2971_v32 = vunpack.i.l.bf16 %v2970_v42  ;;  %v2990_v35 = vpop.permute.xlu1 %2989 }
 0x128   : > { %v2992_v61 = vunpack.i.h.bf16 %v2990_v35  ;;  %v2991_v3 = vunpack.i.l.bf16 %v2990_v35  ;;  %3219 = vrot.lane.b32.xlu2 %v5367_v19, %s3418_s23 }
 0x129   : > { %v4532_v13 = vsel %vm1862_vm5, %v4237_v14, %v2972_v25  ;;  %v4536_v36 = vsel %vm1862_vm5, %v4240_v20, %v2971_v32  ;;  %v5368_v14 = vld [vmem:[#allocation13_spill] sm:$0xff]  ;;  %v5370_v32 = vld [vmem:[#allocation38_spill] sm:$0xff] }
 0x12a   : > { %v4542_v24 = vsel %vm1895_vm6, %v4440_v55, %v2991_v3  ;;  %v4546_v53 = vsel %vm1895_vm6, %v4436_v6, %v2992_v61  ;;  %v3055_v54 = vpop.permute.xlu2 %3054 }
 0x12b   : > { %v3057_v39 = vunpack.i.h.bf16 %v3055_v54  ;;  %v3056_v20 = vunpack.i.l.bf16 %v3055_v54 }
 0x12c   : > { %3194 = vrot.lane.b32.xlu0 %v5368_v14, %s3418_s23 }
 0x12d   : > { %3214 = vrot.lane.b32.xlu1 %v5369_v5, %s3418_s23  ;;  %v4553_v22 = vsel %vm1895_vm6, %v1891_v52, %v3056_v20  ;;  %v4556_v55 = vsel %vm1895_vm6, %v1892_v59, %v3057_v39  ;;  %v5372_v39 = vld [vmem:[#allocation17_spill] sm:$0xff] }
 0x12e   : > { %v2985_v11 = vpop.permute.xlu0 %2984 }
 0x12f   : > { %v2987_v9 = vunpack.i.h.bf16 %v2985_v11  ;;  %v2986_v17 = vunpack.i.l.bf16 %v2985_v11  ;;  %v3005_v6 = vpop.permute.xlu1 %3004 }
 0x130   : > { %v3007_v42 = vunpack.i.h.bf16 %v3005_v6  ;;  %v3006_v25 = vunpack.i.l.bf16 %v3005_v6  ;;  %3234 = vrot.lane.b32.xlu2 %v5370_v32, %s3416_s21 }
 0x131   : > { %v4560_v12 = vsel %vm1895_vm6, %v4268_v23, %v2986_v17  ;;  %v4564_v40 = vsel %vm1895_vm6, %v4271_v58, %v2987_v9  ;;  %v5371_v23 = vld [vmem:[#allocation28_spill] sm:$0xff] }
 0x132   : > { %v4570_v52 = vsel %vm1895_vm6, %v4464_v56, %v3006_v25  ;;  %v4574_v59 = vsel %vm1895_vm6, %v4460_v30, %v3007_v42  ;;  %v4576_v35 = vpop.permute.xlu2 %3069  ;;  %v5374_v25 = vld [vmem:[#allocation32_spill] sm:$0xff] }
 0x134   : > { %3209 = vrot.lane.b32.xlu0 %v5371_v23, %s3416_s21 }
 0x135   : > { %3229 = vrot.lane.b32.xlu1 %v3927_v28, %s3417_s22 }
 0x136   : > { %v3000_v58 = vpop.permute.xlu0 %2999 }
 0x137   : > { %v3002_v61 = vunpack.i.h.bf16 %v3000_v58  ;;  %v3001_v3 = vunpack.i.l.bf16 %v3000_v58  ;;  %v3020_v19 = vpop.permute.xlu1 %3019  ;;  %v5375_v58 = vld [vmem:[#allocation41_spill] sm:$0xff] }
 0x138   : > { %v3022_v54 = vunpack.i.h.bf16 %v3020_v19  ;;  %v3021_v14 = vunpack.i.l.bf16 %v3020_v19  ;;  %3249 = vrot.lane.b32.xlu2 %v5372_v39, %s3418_s23 }
 0x139   : > { %v4584_v56 = vsel %vm1895_vm6, %v4305_v1, %v3002_v61  ;;  %v4588_v30 = vsel %vm1895_vm6, %v4302_v7, %v3001_v3  ;;  %v5373_v7 = vld [vmem:[#allocation12_spill] sm:$0xff] }
 0x13a   : > { %v1910_v20 = vsel %vm1895_vm6, %v4488_v26, %v3021_v14  ;;  %v1911_v28 = vsel %vm1895_vm6, %v4484_v47, %v3022_v54  ;;  %v4596_v11 = vpop.permute.xlu2 %3084 }
 0x13c   : > { %3224 = vrot.lane.b32.xlu0 %v3890_v4, %s3417_s22 }
 0x13d   : > { %3244 = vrot.lane.b32.xlu1 %v5373_v7, %s3418_s23 }
 0x13e   : > { %v3015_v1 = vpop.permute.xlu0 %3014 }
 0x13f   : > { %v3017_v5 = vunpack.i.h.bf16 %v3015_v1  ;;  %v3016_v9 = vunpack.i.l.bf16 %v3015_v1  ;;  %v3035_v17 = vpop.permute.xlu1 %3034 }
 0x140   : > { %v3037_v47 = vunpack.i.h.bf16 %v3035_v17  ;;  %v3036_v42 = vunpack.i.l.bf16 %v3035_v17  ;;  %3264 = vrot.lane.b32.xlu2 %v5374_v25, %s3416_s21 }
 0x141   : > { %v4604_v6 = vsel %vm1895_vm6, %v4337_v2, %v3017_v5  ;;  %v4608_v26 = vsel %vm1895_vm6, %v4334_v10, %v3016_v9 }
 0x142   : > { %v1916_v4 = vsel %vm1895_vm6, %v4512_v50, %v3036_v42  ;;  %v1917_v32 = vsel %vm1895_vm6, %v4508_v45, %v3037_v47  ;;  %v3100_v23 = vpop.permute.xlu2 %3099 }
 0x143   : > { %v3102_v2 = vunpack.i.h.bf16 %v3100_v23  ;;  %v3101_v61 = vunpack.i.l.bf16 %v3100_v23 }
 0x144   : > { %3239 = vrot.lane.b32.xlu0 %v5375_v58, %s3416_s21  ;;  %v5378_v58 = vld [vmem:[#allocation36_spill] sm:$0xff] }
 0x145   : > { %3259 = vrot.lane.b32.xlu1 %v4029_v34, %s3417_s22  ;;  %v4621_v3 = vsel %vm1928_vm7, %v1910_v20, %v3101_v61  ;;  %v4624_v19 = vsel %vm1928_vm7, %v1911_v28, %v3102_v2  ;;  %v5376_v34 = vld [vmem:[#allocation8_spill] sm:$0xff]  ;;  %v5379_v2 = vld [vmem:[#allocation35_spill] sm:$0xff] }
 0x146   : > { %v3030_v10 = vpop.permute.xlu0 %3029 }
 0x147   : > { %v3032_v50 = vunpack.i.h.bf16 %v3030_v10  ;;  %v3031_v54 = vunpack.i.l.bf16 %v3030_v10  ;;  %v3050_v45 = vpop.permute.xlu1 %3049  ;;  %v2084_v10 = vld [vmem:[%s5230_s5 + $0x20] sm:$0xf] }
 0x148   : > { %v3052_v1 = vunpack.i.h.bf16 %v3050_v45  ;;  %v3051_v7 = vunpack.i.l.bf16 %v3050_v45  ;;  %3279 = vrot.lane.b32.xlu2 %v5376_v34, %s3418_s23 }
 0x149   : > { %v4628_v14 = vsel %vm1895_vm6, %v4366_v46, %v3031_v54  ;;  %v4632_v39 = vsel %vm1895_vm6, %v4369_v31, %v3032_v50  ;;  %v5377_v31 = vld [vmem:[#allocation5_spill] sm:$0xff]  ;;  %v2102_v50 = vunpack.c.l.b16 %v2084_v10 }
 0x14a   : > { %v1922_v20 = vsel %vm1895_vm6, %v4536_v36, %v3051_v7  ;;  %v1923_v28 = vsel %vm1895_vm6, %v4532_v13, %v3052_v1  ;;  %v3115_v5 = vpop.permute.xlu2 %3114 }
 0x14b   : > { %v3117_v46 = vunpack.i.h.bf16 %v3115_v5  ;;  %v3116_v9 = vunpack.i.l.bf16 %v3115_v5  ;;  %v2107_v7 = vpack.c.b16 %v2102_v50, %v2102_v50 }
 0x14c   : > { %3254 = vrot.lane.b32.xlu0 %v4009_v48, %s3417_s22 }
 0x14d   : > { %3274 = vrot.lane.b32.xlu1 %v5377_v31, %s3418_s23  ;;  %v4645_v47 = vsel %vm1928_vm7, %v1916_v4, %v3116_v9  ;;  %v4648_v42 = vsel %vm1928_vm7, %v1917_v32, %v3117_v46  ;;  %v5380_v46 = vld [vmem:[#allocation21_spill] sm:$0xff]  ;;  %v2163_v9 = vsel %vm2161_vm8, %v2107_v7, 0 }
 0x14e   : > { %v3045_v17 = vpop.permute.xlu0 %3044  ;;  %2168 = vmatpush.bf16.msra.mxu0 %v2163_v9  ;;  %2696 = vmatpush.bf16.msra.mxu1 %v2163_v9  ;;  %v5382_v7 = vld [vmem:[#allocation33_spill] sm:$0xff] }
 0x14f   : > { %v3047_v36 = vunpack.i.h.bf16 %v3045_v17  ;;  %v3046_v25 = vunpack.i.l.bf16 %v3045_v17  ;;  %v4650_v13 = vpop.permute.xlu1 %3064  ;;  %2697 = vmatpush.bf16.msra.mxu2 %v2163_v9  ;;  %2698 = vmatpush.bf16.msra.mxu3 %v2163_v9  ;;  %v2692_v9 = vld [vmem:[%s5230_s5 + $0x8] sm:$0xff] }
 0x150   : > { %3294 = vrot.lane.b32.xlu2 %v5378_v58, %s3416_s21 }
 0x151   : > { %v4654_v48 = vsel %vm1895_vm6, %v4399_v37, %v3046_v25  ;;  %v4658_v23 = vsel %vm1895_vm6, %v4402_v49, %v3047_v36  ;;  %v618_v36 = vld [vmem:[%s443_s11 + $0x8] sm:$0xff] }
 0x152   : > { %v3130_v4 = vpop.permute.xlu2 %3129 }
 0x153   : > { %v3132_v32 = vunpack.i.h.bf16 %v3130_v4  ;;  %v3131_v61 = vunpack.i.l.bf16 %v3130_v4 }
 0x154   : > { %3269 = vrot.lane.b32.xlu0 %v5379_v2, %s3416_s21 }
 0x155   : > { %3289 = vrot.lane.b32.xlu1 %v3987_v44, %s3417_s22  ;;  %v4671_v49 = vsel %vm1928_vm7, %v1922_v20, %v3131_v61  ;;  %v4674_v54 = vsel %vm1928_vm7, %v1923_v28, %v3132_v32  ;;  %v2693_v61 = vld [vmem:[%s5230_s5 + $0x10] sm:$0xff] }
 0x156   : > { %v3060_v37 = vpop.permute.xlu0 %3059 }
 0x157   : > { %v3062_v45 = vunpack.i.h.bf16 %v3060_v37  ;;  %v3061_v1 = vunpack.i.l.bf16 %v3060_v37  ;;  %v3080_v34 = vpop.permute.xlu1 %3079 }
 0x158   : > { %v3082_v20 = vunpack.i.h.bf16 %v3080_v34  ;;  %v3081_v28 = vunpack.i.l.bf16 %v3080_v34  ;;  %3309 = vrot.lane.b32.xlu2 %v5380_v46, %s3418_s23  ;;  %v3386_v34 = vld [vmem:[%s5229_s4] ss:$0 sm:$0xff]  ;;  %v5383_v46 = vld [vmem:[#allocation39_spill] sm:$0xff] }
 0x159   : > { %v4681_v5 = vsel %vm1895_vm6, %v4429_v18, %v3061_v1  ;;  %v4685_v44 = vsel %vm1895_vm6, %v4432_v21, %v3062_v45  ;;  %v617_v18 = vld [vmem:[%s443_s11] sm:$0xff]  ;;  %v2694_v21 = vld [vmem:[%s5230_s5 + $0x18] sm:$0xff] }
 0x15a   : > { %v4691_v17 = vsel %vm1928_vm7, %v4588_v30, %v3081_v28  ;;  %v4695_v31 = vsel %vm1928_vm7, %v4584_v56, %v3082_v20  ;;  %v5381_v30 = vld [vmem:[#allocation20_spill] sm:$0xff]  ;;  %v3385_v56 = vld [vmem:[%s5228_s3] ss:$0 sm:$0xff]  ;;  %2169 = vmatpush.bf16.msra.mxu0 %v2694_v21  ;;  %2699 = vmatpush.bf16.msra.mxu1 %v2694_v21  ;;  %v4718_v37 = vpop.permute.xlu2 %3144 }
 0x15b   : > { %v619_v58 = vmul.f32 %v3385_v56, %v617_v18  ;;  %v620_v4 = vmul.f32 %v3385_v56, %v618_v36  ;;  %2700 = vmatpush.bf16.msra.mxu2 %v2694_v21  ;;  %2701 = vmatpush.bf16.msra.mxu3 %v2694_v21  ;;  %v2691_v21 = vld [vmem:[%s5230_s5] sm:$0xff] }
 0x15c   : > { %3284 = vrot.lane.b32.xlu0 %v3963_v8, %s3417_s22  ;;  %v5384_v56 = vld [vmem:[#allocation34_spill] sm:$0xff] }
 0x15d   : > { %3304 = vrot.lane.b32.xlu1 %v5381_v30, %s3418_s23  ;;  %v621_v20 = vadd.f32 %v3386_v34, %v619_v58  ;;  %v622_v28 = vadd.f32 %v3386_v34, %v620_v4 }
 0x15e   : > { %v3075_v25 = vpop.permute.xlu0 %3074  ;;  %2170 = vmatpush.bf16.msra.mxu0 %v2693_v61  ;;  %2702 = vmatpush.bf16.msra.mxu1 %v2693_v61 }
 0x15f   : > { %v3077_v2 = vunpack.i.h.bf16 %v3075_v25  ;;  %v3076_v32 = vunpack.i.l.bf16 %v3075_v25  ;;  %v3095_v8 = vpop.permute.xlu1 %3094  ;;  %2703 = vmatpush.bf16.msra.mxu2 %v2693_v61  ;;  %v624_v36 = vmax.f32 %v622_v28, 0.0  ;;  %2704 = vmatpush.bf16.msra.mxu3 %v2693_v61 }
 0x160   : > { %v3097_v45 = vunpack.i.h.bf16 %v3095_v8  ;;  %v3096_v1 = vunpack.i.l.bf16 %v3095_v8  ;;  %3324 = vrot.lane.b32.xlu2 %v5382_v7, %s3416_s21 }
 0x161   : > { %v4712_v10 = vsel %vm1928_vm7, %v4453_v57, %v3076_v32  ;;  %v4716_v50 = vsel %vm1928_vm7, %v4456_v27, %v3077_v2  ;;  %v630_v4 = vmul.f32 0.0, %v624_v36 }
 0x162   : > { %v4727_v57 = vsel %vm1928_vm7, %v4608_v26, %v3096_v1  ;;  %v4731_v27 = vsel %vm1928_vm7, %v4604_v6, %v3097_v45  ;;  %v623_v26 = vmax.f32 %v621_v20, 0.0  ;;  %2171 = vmatpush.bf16.msra.mxu0 %v2692_v9  ;;  %2705 = vmatpush.bf16.msra.mxu1 %v2692_v9  ;;  %v5385_v20 = vld [vmem:[#allocation16_spill] sm:$0xff] }
 0x163   : > { %2706 = vmatpush.bf16.msra.mxu2 %v2692_v9  ;;  %2707 = vmatpush.bf16.msra.mxu3 %v2692_v9  ;;  %v720_v45 = vrot.slane %v630_v4, 7 }
 0x164   : > { %3299 = vrot.lane.b32.xlu0 %v5383_v46, %s3416_s21  ;;  %v629_v58 = vmul.f32 0.0, %v623_v26 }
 0x165   : > { %3319 = vrot.lane.b32.xlu1 %v5357_v63, %s3417_s22  ;;  %v4747_v63 = vpop.permute.xlu2 %3159 }
 0x166   : > { %v4738_v18 = vpop.permute.xlu0 %3089  ;;  %2172 = vmatpush.bf16.msra.mxu0 %v2691_v21  ;;  %2708 = vmatpush.bf16.msra.mxu1 %v2691_v21  ;;  %v719_v61 = vrot.slane %v629_v58, 7 }
 0x167   : > { %v3110_v6 = vpop.permute.xlu1 %3109  ;;  %2709 = vmatpush.bf16.msra.mxu2 %v2691_v21  ;;  %2710 = vmatpush.bf16.msra.mxu3 %v2691_v21 }
 0x168   : > { %v3112_v25 = vunpack.i.h.bf16 %v3110_v6  ;;  %v3111_v30 = vunpack.i.l.bf16 %v3110_v6  ;;  %3339 = vrot.lane.b32.xlu2 %v5384_v56, %s3416_s21 }
 0x16a   : > { %v4751_v2 = vsel %vm1928_vm7, %v4628_v14, %v3111_v30  ;;  %v4755_v32 = vsel %vm1928_vm7, %v4632_v39, %v3112_v25  ;;  %v721_v39 = vsel %vm667_vm0, %v719_v61, %v720_v45 }
 0x16c   : > { %3314 = vrot.lane.b32.xlu0 %v5354_v0, %s3417_s22  ;;  %v791_v0 = vsel %vm667_vm0, 0.0, %v719_v61  ;;  %v1024_v61 = vrot.slane %v721_v39, 2 }
 0x16d   : > { %3334 = vrot.lane.b32.xlu1 %v5349_v38, %s3417_s22  ;;  %v4777_v28 = vpop.permute.xlu2 %3174  ;;  %v3368_v46 = vpack.i.bf16 %v721_v39, %v791_v0  ;;  %v1023_v56 = vrot.slane %v791_v0, 2 }
 0x16e   : > { %v4759_v8 = vpop.permute.xlu0 %3104 }
 0x16f   : > { %v3125_v14 = vpop.permute.xlu1 %3124 }
 0x170   : > { %v3127_v1 = vunpack.i.h.bf16 %v3125_v14  ;;  %v3126_v7 = vunpack.i.l.bf16 %v3125_v14  ;;  %3354 = vrot.lane.b32.xlu2 %v4277_v33, %s3418_s23  ;;  %v5386_v33 = vld [vmem:[#allocation18_spill] sm:$0xff] }
 0x172   : > { %v4769_v34 = vsel %vm1928_vm7, %v4654_v48, %v3126_v7  ;;  %v4773_v38 = vsel %vm1928_vm7, %v4658_v23, %v3127_v1  ;;  %v809_v48 = vsel %vm667_vm0, %v720_v45, 0.0  ;;  %v5387_v45 = vld [vmem:[#allocation37_spill] sm:$0xff] }
 0x174   : > { %3329 = vrot.lane.b32.xlu0 %v5385_v20, %s3418_s23 }
 0x175   : > { %3349 = vrot.lane.b32.xlu1 %v5386_v33, %s3418_s23  ;;  %v4803_v14 = vpop.permute.xlu2 %3189 }
 0x176   : > { %v3120_v9 = vpop.permute.xlu0 %3119 }
 0x177   : > { %v3122_v26 = vunpack.i.h.bf16 %v3120_v9  ;;  %v3121_v36 = vunpack.i.l.bf16 %v3120_v9  ;;  %v3140_v6 = vpop.permute.xlu1 %3139 }
 0x178   : > { %v3142_v25 = vunpack.i.h.bf16 %v3140_v6  ;;  %v3141_v30 = vunpack.i.l.bf16 %v3140_v6  ;;  %3369 = vrot.lane.b32.xlu2 %v3368_v46, %s3416_s21  ;;  %v1018_v46 = vrot.slane %v791_v0, 1  ;;  %v3146_v0 = vunpack.i.l.bf16 %v4718_v37 }
 0x179   : > { %v4784_v21 = vsel %vm1928_vm7, %v4525_v43, %v3121_v36  ;;  %v4788_v23 = vsel %vm1928_vm7, %v4528_v29, %v3122_v26  ;;  %v1026_v43 = vrot.slane %v809_v48, 2  ;;  %v1019_v26 = vrot.slane %v721_v39, 1 }
 0x17a   : > { %v4793_v58 = vsel %vm1928_vm7, %v4681_v5, %v3141_v30  ;;  %v4797_v4 = vsel %vm1928_vm7, %v4685_v44, %v3142_v25  ;;  %v1025_v5 = vsel %vm923_vm2, %v1023_v56, %v1024_v61  ;;  %v3066_v36 = vunpack.i.l.bf16 %v4650_v13 }
 0x17b   : > { %v1027_v20 = vsel %vm923_vm2, %v1024_v61, %v1026_v43  ;;  %v3067_v25 = vunpack.i.h.bf16 %v4650_v13  ;;  %v3147_v30 = vunpack.i.h.bf16 %v4718_v37 }
 0x17c   : > { %3344 = vrot.lane.b32.xlu0 %v5387_v45, %s3416_s21  ;;  %v3378_v6 = vpack.i.bf16 %v1027_v20, %v1025_v5  ;;  %v1929_v39 = vsel %vm1928_vm7, %v4560_v12, %v3066_v36  ;;  %v3176_v36 = vunpack.i.l.bf16 %v4777_v28 }
 0x17d   : > { %3364 = vrot.lane.b32.xlu1 %v4418_v51, %s3417_s22  ;;  %v1021_v51 = vrot.slane %v809_v48, 1  ;;  %v1930_v13 = vsel %vm1928_vm7, %v4564_v40, %v3067_v25 }
 0x17e   : > { %v3135_v29 = vpop.permute.xlu0 %3134  ;;  %v1963_v45 = vsel %vm1961_vm9, %v1930_v13, %v3147_v30 }
 0x17f   : > { %v3137_v1 = vunpack.i.h.bf16 %v3135_v29  ;;  %v3136_v7 = vunpack.i.l.bf16 %v3135_v29  ;;  %v3155_v44 = vpop.permute.xlu1 %3154 }
 0x180   : > { %v3157_v48 = vunpack.i.h.bf16 %v3155_v44  ;;  %v3156_v56 = vunpack.i.l.bf16 %v3155_v44  ;;  %v3087_v44 = vunpack.i.h.bf16 %v4596_v11 }
 0x181   : > { %v4809_v9 = vsel %vm1928_vm7, %v4553_v22, %v3136_v7  ;;  %v4813_v33 = vsel %vm1928_vm7, %v4556_v55, %v3137_v1  ;;  %v1020_v22 = vsel %vm842_vm1, %v1018_v46, %v1019_v26  ;;  %v1022_v55 = vsel %vm842_vm1, %v1019_v26, %v1021_v51  ;;  %v4830_v7 = vpop.permute.xlu2 %3204 }
 0x182   : > { %v3373_v29 = vpack.i.bf16 %v1022_v55, %v1020_v22  ;;  %v3086_v26 = vunpack.i.l.bf16 %v4596_v11  ;;  %v3177_v51 = vunpack.i.h.bf16 %v4777_v28  ;;  %v1938_v22 = vsel %vm1928_vm7, %v4574_v59, %v3087_v44 }
 0x183   : > { %v3071_v28 = vunpack.i.l.bf16 %v4576_v35 }
 0x184   : > { %3359 = vrot.lane.b32.xlu0 %v5350_v60, %s3417_s22  ;;  %v1962_v60 = vsel %vm1961_vm9, %v1929_v39, %v3146_v0  ;;  %v1937_v0 = vsel %vm1928_vm7, %v4570_v52, %v3086_v26  ;;  %v3162_v52 = vunpack.i.h.bf16 %v4747_v63 }
 0x185   : > { %3379 = vrot.lane.b32.xlu1 %v3378_v6, %s3417_s22 }
 0x186   : > { %v3150_v61 = vpop.permute.xlu0 %3149 }
 0x187   : > { %v3152_v37 = vunpack.i.h.bf16 %v3150_v61  ;;  %v3151_v43 = vunpack.i.l.bf16 %v3150_v61  ;;  %v3170_v1 = vpop.permute.xlu1 %3169  ;;  %v3072_v61 = vunpack.i.h.bf16 %v4576_v35 }
 0x189   : > { %v1995_v12 = vsel %vm1994_vm10, %v1962_v60, %v3151_v43  ;;  %v1996_v5 = vsel %vm1994_vm10, %v1963_v45, %v3152_v37  ;;  %v3161_v43 = vunpack.i.l.bf16 %v4747_v63  ;;  %v3220_v59 = vpop.permute.xlu2 %3219  ;;  %v1932_v35 = vsel %vm1928_vm7, %v4546_v53, %v3072_v61 }
 0x18a   : > { %v2028_v20 = vsel %vm2027_vm11, %v1995_v12, %v3156_v56  ;;  %v2029_v46 = vsel %vm2027_vm11, %v1996_v5, %v3157_v48  ;;  %v3171_v12 = vunpack.i.l.bf16 %v3170_v1  ;;  %v1965_v63 = vsel %vm1961_vm9, %v1932_v35, %v3162_v52 }
 0x18b   : > { %v2060_v40 = vpack.c.bf16 %v2029_v46, %v2028_v20  ;;  %v1931_v20 = vsel %vm1928_vm7, %v4542_v24, %v3071_v28  ;;  %v3107_v53 = vunpack.i.h.bf16 %v4759_v8 }
 0x18c   : > { %3374 = vrot.lane.b32.xlu0 %v3373_v29, %s3418_s23  ;;  %v3172_v29 = vunpack.i.h.bf16 %v3170_v1  ;;  %s5009_s23 = scalar_lea.vmem %s5231_s6, %s3485_s30  ;;  %s2651_s30 = sshll.u32 %s5393_s24, 1 }
 0x18d   : > { %2668 = vmatmul.msk.bf16.vlgmr.msra.gmra.mxu0 %vm2112_vm12, %v2060_v40  ;;  %v1964_v40 = vsel %vm1961_vm9, %v1931_v20, %v3161_v43  ;;  %v1946_v61 = vsel %vm1928_vm7, %v4504_v16, %v3107_v53  ;;  %v3091_v16 = vunpack.i.l.bf16 %v4738_v18  ;;  %s465_s11 = scalar_lea.vmem %s5232_s7, %s2651_s30 }
 0x18e   : > { %v3165_v6 = vpop.permute.xlu0 %3164  ;;  %v1998_v1 = vsel %vm1994_vm10, %v1965_v63, %v3172_v29 }
 0x18f   : > { %v3167_v25 = vunpack.i.h.bf16 %v3165_v6  ;;  %v3166_v30 = vunpack.i.l.bf16 %v3165_v6  ;;  %v3185_v55 = vpop.permute.xlu1 %3184  ;;  %v1939_v63 = vsel %vm1928_vm7, %v4477_v15, %v3091_v16 }
 0x190   : > { %v3187_v48 = vunpack.i.h.bf16 %v3185_v55  ;;  %v3186_v56 = vunpack.i.l.bf16 %v3185_v55 }
 0x191   : > { %v1970_v11 = vsel %vm1961_vm9, %v1937_v0, %v3166_v30  ;;  %v1971_v39 = vsel %vm1961_vm9, %v1938_v22, %v3167_v25  ;;  %v3106_v30 = vunpack.i.l.bf16 %v4759_v8  ;;  %v3192_v0 = vunpack.i.h.bf16 %v4803_v14  ;;  %v4871_v55 = vpop.permute.xlu2 %3234 }
 0x192   : > { %v2003_v13 = vsel %vm1994_vm10, %v1970_v11, %v3176_v36  ;;  %v2004_v37 = vsel %vm1994_vm10, %v1971_v39, %v3177_v51  ;;  %v1997_v51 = vsel %vm1994_vm10, %v1964_v40, %v3171_v12  ;;  %v3191_v22 = vunpack.i.l.bf16 %v4803_v14 }
 0x193   : > { %v2036_v60 = vsel %vm2027_vm11, %v2003_v13, %v3186_v56  ;;  %v2037_v45 = vsel %vm2027_vm11, %v2004_v37, %v3187_v48  ;;  %v1945_v56 = vsel %vm1928_vm7, %v4501_v62, %v3106_v30  ;;  %v1979_v37 = vsel %vm1961_vm9, %v1946_v61, %v3192_v0 }
 0x194   : > { %v2064_v5 = vpack.c.bf16 %v2037_v45, %v2036_v60  ;;  %v1978_v8 = vsel %vm1961_vm9, %v1945_v56, %v3191_v22  ;;  %v3092_v62 = vunpack.i.h.bf16 %v4738_v18  ;;  %v3222_v12 = vunpack.i.h.bf16 %v3220_v59 }
 0x196   : > { %v3180_v46 = vpop.permute.xlu0 %3179  ;;  %2672 = vmatmul.msk.bf16.vlgmr.msra.gmra.mxu1 %vm2112_vm12, %v2064_v5  ;;  %v3221_v5 = vunpack.i.l.bf16 %v3220_v59 }
 0x197   : > { %v3182_v44 = vunpack.i.h.bf16 %v3180_v46  ;;  %v3181_v26 = vunpack.i.l.bf16 %v3180_v46  ;;  %v3200_v36 = vpop.permute.xlu1 %3199 }
 0x198   : > { %v3202_v11 = vunpack.i.h.bf16 %v3200_v36  ;;  %v3201_v39 = vunpack.i.l.bf16 %v3200_v36 }
 0x199   : > { %v2030_v6 = vsel %vm2027_vm11, %v1997_v51, %v3181_v26  ;;  %v2031_v24 = vsel %vm2027_vm11, %v1998_v1, %v3182_v44  ;;  %v3250_v35 = vpop.permute.xlu2 %3249  ;;  %v1940_v44 = vsel %vm1928_vm7, %v4480_v41, %v3092_v62 }
 0x19a   : > { %v2061_v25 = vpack.c.bf16 %v2031_v24, %v2030_v6  ;;  %v3207_v24 = vunpack.i.h.bf16 %v4830_v7 }
 0x19d   : > { %2669 = vmatmul.msk.bf16.gmra.mxu0 %vm2112_vm12, %v2061_v25  ;;  %v3206_v25 = vunpack.i.l.bf16 %v4830_v7 }
 0x19e   : > { %v3195_v48 = vpop.permute.xlu0 %3194 }
 0x19f   : > { %v3197_v28 = vunpack.i.h.bf16 %v3195_v48  ;;  %v3196_v13 = vunpack.i.l.bf16 %v3195_v48  ;;  %v3215_v14 = vpop.permute.xlu1 %3214 }
 0x1a0   : > { %v3217_v41 = vunpack.i.h.bf16 %v3215_v14  ;;  %v3216_v30 = vunpack.i.l.bf16 %v3215_v14 }
 0x1a1   : > { %v2011_v52 = vsel %vm1994_vm10, %v1978_v8, %v3196_v13  ;;  %v2012_v43 = vsel %vm1994_vm10, %v1979_v37, %v3197_v28  ;;  %v4906_v13 = vpop.permute.xlu2 %3264 }
 0x1a2   : > { %v2044_v60 = vsel %vm2027_vm11, %v2011_v52, %v3201_v39  ;;  %v2045_v45 = vsel %vm2027_vm11, %v2012_v43, %v3202_v11  ;;  %v1966_v11 = vsel %vm1961_vm9, %v4712_v10, %v3206_v25  ;;  %v1967_v39 = vsel %vm1961_vm9, %v4716_v50, %v3207_v24 }
 0x1a3   : > { %v2068_v29 = vpack.c.bf16 %v2045_v45, %v2044_v60  ;;  %v1999_v7 = vsel %vm1994_vm10, %v1966_v11, %v3216_v30  ;;  %v2000_v61 = vsel %vm1994_vm10, %v1967_v39, %v3217_v41  ;;  %v3252_v10 = vunpack.i.h.bf16 %v3250_v35 }
 0x1a4   : > { %v3251_v52 = vunpack.i.l.bf16 %v3250_v35  ;;  %v3236_v35 = vunpack.i.l.bf16 %v4871_v55 }
 0x1a5   : > { %2676 = vmatmul.msk.bf16.vlgmr.msra.gmra.mxu2 %vm2112_vm12, %v2068_v29 }
 0x1a6   : > { %v3210_v20 = vpop.permute.xlu0 %3209 }
 0x1a7   : > { %v3212_v46 = vunpack.i.h.bf16 %v3210_v20  ;;  %v3211_v40 = vunpack.i.l.bf16 %v3210_v20  ;;  %v3230_v26 = vpop.permute.xlu1 %3229 }
 0x1a8   : > { %v3232_v18 = vunpack.i.h.bf16 %v3230_v26  ;;  %v3231_v36 = vunpack.i.l.bf16 %v3230_v26 }
 0x1a9   : > { %v1972_v51 = vsel %vm1961_vm9, %v1939_v63, %v3211_v40  ;;  %v1973_v1 = vsel %vm1961_vm9, %v1940_v44, %v3212_v46  ;;  %v3237_v46 = vunpack.i.h.bf16 %v4871_v55  ;;  %v3280_v40 = vpop.permute.xlu2 %3279 }
 0x1aa   : > { %v2005_v6 = vsel %vm1994_vm10, %v1972_v51, %v3221_v5  ;;  %v2006_v59 = vsel %vm1994_vm10, %v1973_v1, %v3222_v12  ;;  %v3282_v30 = vunpack.i.h.bf16 %v3280_v40 }
 0x1ab   : > { %v2038_v15 = vsel %vm2027_vm11, %v2005_v6, %v3231_v36  ;;  %v2039_v53 = vsel %vm2027_vm11, %v2006_v59, %v3232_v18  ;;  %v1981_v18 = vsel %vm1961_vm9, %v4755_v32, %v3237_v46 }
 0x1ac   : > { %v2065_v0 = vpack.c.bf16 %v2039_v53, %v2038_v15 }
 0x1ae   : > { %v3225_v22 = vpop.permute.xlu0 %3224  ;;  %2673 = vmatmul.msk.bf16.gmra.mxu1 %vm2112_vm12, %v2065_v0 }
 0x1af   : > { %v3227_v48 = vunpack.i.h.bf16 %v3225_v22  ;;  %v3226_v56 = vunpack.i.l.bf16 %v3225_v22  ;;  %v3245_v28 = vpop.permute.xlu1 %3244 }
 0x1b0   : > { %v3247_v26 = vunpack.i.h.bf16 %v3245_v28 }
 0x1b1   : > { %v2032_v8 = vsel %vm2027_vm11, %v1999_v7, %v3226_v56  ;;  %v2033_v37 = vsel %vm2027_vm11, %v2000_v61, %v3227_v48  ;;  %v3295_v41 = vpop.permute.xlu2 %3294 }
 0x1b2   : > { %v2062_v14 = vpack.c.bf16 %v2033_v37, %v2032_v8  ;;  %v2014_v59 = vsel %vm1994_vm10, %v1981_v18, %v3247_v26  ;;  %v3267_v8 = vunpack.i.h.bf16 %v4906_v13  ;;  %v3266_v37 = vunpack.i.l.bf16 %v4906_v13 }
 0x1b4   : > { %2670 = vmatmul.msk.bf16.gmra.mxu0 %vm2112_vm12, %v2062_v14 }
 0x1b6   : > { %v3240_v43 = vpop.permute.xlu0 %3239 }
 0x1b7   : > { %v3242_v50 = vunpack.i.h.bf16 %v3240_v43  ;;  %v3241_v60 = vunpack.i.l.bf16 %v3240_v43  ;;  %v3260_v45 = vpop.permute.xlu1 %3259 }
 0x1b8   : > { %v3262_v16 = vunpack.i.h.bf16 %v3260_v45  ;;  %v3261_v12 = vunpack.i.l.bf16 %v3260_v45 }
 0x1b9   : > { %v1986_v29 = vsel %vm1961_vm9, %v4769_v34, %v3241_v60  ;;  %v1987_v62 = vsel %vm1961_vm9, %v4773_v38, %v3242_v50  ;;  %v3246_v34 = vunpack.i.l.bf16 %v3245_v28  ;;  %v1980_v38 = vsel %vm1961_vm9, %v4751_v2, %v3236_v35  ;;  %v3310_v45 = vpop.permute.xlu2 %3309 }
 0x1ba   : > { %v2019_v5 = vsel %vm1994_vm10, %v1986_v29, %v3251_v52  ;;  %v2020_v20 = vsel %vm1994_vm10, %v1987_v62, %v3252_v10  ;;  %v3281_v2 = vunpack.i.l.bf16 %v3280_v40  ;;  %v1969_v60 = vsel %vm1961_vm9, %v4695_v31, %v3267_v8 }
 0x1bb   : > { %v2052_v63 = vsel %vm2027_vm11, %v2019_v5, %v3261_v12  ;;  %v2053_v44 = vsel %vm2027_vm11, %v2020_v20, %v3262_v16  ;;  %v2013_v55 = vsel %vm1994_vm10, %v1980_v38, %v3246_v34  ;;  %v3312_v35 = vunpack.i.h.bf16 %v3310_v45 }
 0x1bc   : > { %v2072_v51 = vpack.c.bf16 %v2053_v44, %v2052_v63 }
 0x1be   : > { %v3255_v1 = vpop.permute.xlu0 %3254  ;;  %2680 = vmatmul.msk.bf16.vlgmr.msra.gmra.mxu3 %vm2112_vm12, %v2072_v51 }
 0x1bf   : > { %v3257_v36 = vunpack.i.h.bf16 %v3255_v1  ;;  %v3256_v6 = vunpack.i.l.bf16 %v3255_v1  ;;  %v3275_v24 = vpop.permute.xlu1 %3274 }
 0x1c0   : > { %v3277_v52 = vunpack.i.h.bf16 %v3275_v24  ;;  %v3276_v43 = vunpack.i.l.bf16 %v3275_v24 }
 0x1c1   : > { %v2046_v25 = vsel %vm2027_vm11, %v2013_v55, %v3256_v6  ;;  %v2047_v15 = vsel %vm2027_vm11, %v2014_v59, %v3257_v36  ;;  %v3325_v26 = vpop.permute.xlu2 %3324  ;;  %v3297_v6 = vunpack.i.h.bf16 %v3295_v41  ;;  %v3296_v55 = vunpack.i.l.bf16 %v3295_v41 }
 0x1c2   : > { %v2069_v53 = vpack.c.bf16 %v2047_v15, %v2046_v25  ;;  %v2002_v16 = vsel %vm1994_vm10, %v1969_v60, %v3277_v52 }
 0x1c4   : > { %2677 = vmatmul.msk.bf16.gmra.mxu2 %vm2112_vm12, %v2069_v53 }
 0x1c6   : > { %v3270_v0 = vpop.permute.xlu0 %3269 }
 0x1c7   : > { %v3272_v22 = vunpack.i.h.bf16 %v3270_v0  ;;  %v3271_v32 = vunpack.i.l.bf16 %v3270_v0  ;;  %v3290_v11 = vpop.permute.xlu1 %3289 }
 0x1c8   : > { %v3292_v56 = vunpack.i.h.bf16 %v3290_v11  ;;  %v3291_v7 = vunpack.i.l.bf16 %v3290_v11 }
 0x1c9   : > { %v1974_v39 = vsel %vm1961_vm9, %v4727_v57, %v3271_v32  ;;  %v1975_v48 = vsel %vm1961_vm9, %v4731_v27, %v3272_v22  ;;  %v1968_v27 = vsel %vm1961_vm9, %v4691_v17, %v3266_v37  ;;  %v3311_v17 = vunpack.i.l.bf16 %v3310_v45 }
 0x1ca   : > { %v2007_v61 = vsel %vm1994_vm10, %v1974_v39, %v3281_v2  ;;  %v2008_v28 = vsel %vm1994_vm10, %v1975_v48, %v3282_v30  ;;  %v2001_v13 = vsel %vm1994_vm10, %v1968_v27, %v3276_v43 }
 0x1cb   : > { %v2040_v14 = vsel %vm2027_vm11, %v2007_v61, %v3291_v7  ;;  %v2041_v10 = vsel %vm2027_vm11, %v2008_v28, %v3292_v56  ;;  %v3340_v56 = vpop.permute.xlu2 %3339  ;;  %v3327_v7 = vunpack.i.h.bf16 %v3325_v26  ;;  %v3326_v61 = vunpack.i.l.bf16 %v3325_v26 }
 0x1cc   : > { %v2066_v57 = vpack.c.bf16 %v2041_v10, %v2040_v14 }
 0x1cd   : > { %v1976_v14 = vsel %vm1961_vm9, %v4621_v3, %v3326_v61  ;;  %v1977_v10 = vsel %vm1961_vm9, %v4624_v19, %v3327_v7 }
 0x1ce   : > { %v3285_v50 = vpop.permute.xlu0 %3284  ;;  %2674 = vmatmul.msk.bf16.gmra.mxu1 %vm2112_vm12, %v2066_v57 }
 0x1cf   : > { %v3287_v29 = vunpack.i.h.bf16 %v3285_v50  ;;  %v3286_v62 = vunpack.i.l.bf16 %v3285_v50  ;;  %v3305_v12 = vpop.permute.xlu1 %3304 }
 0x1d0   : > { %v3307_v25 = vunpack.i.h.bf16 %v3305_v12  ;;  %v3306_v15 = vunpack.i.l.bf16 %v3305_v12 }
 0x1d1   : > { %v2034_v5 = vsel %vm2027_vm11, %v2001_v13, %v3286_v62  ;;  %v2035_v20 = vsel %vm2027_vm11, %v2002_v16, %v3287_v29 }
 0x1d2   : > { %v2063_v46 = vpack.c.bf16 %v2035_v20, %v2034_v5 }
 0x1d3   : > { %v3355_v45 = vpop.permute.xlu2 %3354 }
 0x1d4   : > { %2671 = vmatmul.msk.bf16.gmra.mxu0 %vm2112_vm12, %v2063_v46  ;;  %v3357_v29 = vunpack.i.h.bf16 %v3355_v45  ;;  %v3356_v62 = vunpack.i.l.bf16 %v3355_v45 }
 0x1d6   : > { %v3300_v40 = vpop.permute.xlu0 %3299 }
 0x1d7   : > { %v3302_v63 = vunpack.i.h.bf16 %v3300_v40  ;;  %v3301_v31 = vunpack.i.l.bf16 %v3300_v40  ;;  %v3320_v44 = vpop.permute.xlu1 %3319  ;;  %v3342_v40 = vunpack.i.h.bf16 %v3340_v56 }
 0x1d8   : > { %v3322_v1 = vunpack.i.h.bf16 %v3320_v44  ;;  %v3321_v38 = vunpack.i.l.bf16 %v3320_v44 }
 0x1d9   : > { %v1988_v34 = vsel %vm1961_vm9, %v4671_v49, %v3301_v31  ;;  %v1989_v51 = vsel %vm1961_vm9, %v4674_v54, %v3302_v63  ;;  %v1982_v49 = vsel %vm1961_vm9, %v4645_v47, %v3296_v55  ;;  %v1983_v54 = vsel %vm1961_vm9, %v4648_v42, %v3297_v6 }
 0x1da   : > { %v2021_v18 = vsel %vm1994_vm10, %v1988_v34, %v3311_v17  ;;  %v2022_v36 = vsel %vm1994_vm10, %v1989_v51, %v3312_v35  ;;  %v2015_v41 = vsel %vm1994_vm10, %v1982_v49, %v3306_v15  ;;  %v2016_v22 = vsel %vm1994_vm10, %v1983_v54, %v3307_v25 }
 0x1db   : > { %v2054_v59 = vsel %vm2027_vm11, %v2021_v18, %v3321_v38  ;;  %v2055_v24 = vsel %vm2027_vm11, %v2022_v36, %v3322_v1  ;;  %v3341_v63 = vunpack.i.l.bf16 %v3340_v56  ;;  %v3370_v55 = vpop.permute.xlu2 %3369 }
 0x1dc   : > { %v2073_v53 = vpack.c.bf16 %v2055_v24, %v2054_v59 }
 0x1de   : > { %v3315_v30 = vpop.permute.xlu0 %3314  ;;  %2681 = vmatmul.msk.bf16.gmra.mxu3 %vm2112_vm12, %v2073_v53  ;;  %v3372_v53 = vunpack.i.h.bf16 %v3370_v55 }
 0x1df   : > { %v3317_v2 = vunpack.i.h.bf16 %v3315_v30  ;;  %v3316_v0 = vunpack.i.l.bf16 %v3315_v30  ;;  %v3335_v32 = vpop.permute.xlu1 %3334  ;;  %v3371_v30 = vunpack.i.l.bf16 %v3370_v55 }
 0x1e0   : > { %v3337_v47 = vunpack.i.h.bf16 %v3335_v32  ;;  %v3336_v28 = vunpack.i.l.bf16 %v3335_v32 }
 0x1e1   : > { %v2048_v11 = vsel %vm2027_vm11, %v2015_v41, %v3316_v0  ;;  %v2049_v39 = vsel %vm2027_vm11, %v2016_v22, %v3317_v2  ;;  %v1992_v0 = vsel %vm1961_vm9, %v4793_v58, %v3371_v30  ;;  %v1993_v41 = vsel %vm1961_vm9, %v4797_v4, %v3372_v53 }
 0x1e2   : > { %v2070_v48 = vpack.c.bf16 %v2049_v39, %v2048_v11 }
 0x1e4   : > { %2678 = vmatmul.msk.bf16.gmra.mxu2 %vm2112_vm12, %v2070_v48 }
 0x1e6   : > { %v3330_v42 = vpop.permute.xlu0 %3329 }
 0x1e7   : > { %v3332_v8 = vunpack.i.h.bf16 %v3330_v42  ;;  %v3331_v37 = vunpack.i.l.bf16 %v3330_v42  ;;  %v3350_v52 = vpop.permute.xlu1 %3349 }
 0x1e8   : > { %v3352_v26 = vunpack.i.h.bf16 %v3350_v52  ;;  %v3351_v34 = vunpack.i.l.bf16 %v3350_v52 }
 0x1e9   : > { %v2009_v43 = vsel %vm1994_vm10, %v1976_v14, %v3331_v37  ;;  %v2010_v57 = vsel %vm1994_vm10, %v1977_v10, %v3332_v8 }
 0x1ea   : > { %v2042_v50 = vsel %vm2027_vm11, %v2009_v43, %v3336_v28  ;;  %v2043_v27 = vsel %vm2027_vm11, %v2010_v57, %v3337_v47 }
 0x1eb   : > { %v2067_v60 = vpack.c.bf16 %v2043_v27, %v2042_v50 }
 0x1ed   : > { %2675 = vmatmul.msk.bf16.gmra.mxu1 %vm2112_vm12, %v2067_v60 }
 0x1ee   : > { %v3345_v13 = vpop.permute.xlu0 %3344 }
 0x1ef   : > { %v3347_v3 = vunpack.i.h.bf16 %v3345_v13  ;;  %v3346_v16 = vunpack.i.l.bf16 %v3345_v13  ;;  %v3365_v12 = vpop.permute.xlu1 %3364 }
 0x1f0   : > { %v3367_v20 = vunpack.i.h.bf16 %v3365_v12  ;;  %v3366_v46 = vunpack.i.l.bf16 %v3365_v12 }
 0x1f1   : > { %v1990_v19 = vsel %vm1961_vm9, %v4809_v9, %v3346_v16  ;;  %v1991_v5 = vsel %vm1961_vm9, %v4813_v33, %v3347_v3  ;;  %v1984_v9 = vsel %vm1961_vm9, %v4784_v21, %v3341_v63  ;;  %v1985_v33 = vsel %vm1961_vm9, %v4788_v23, %v3342_v40 }
 0x1f2   : > { %v2023_v35 = vsel %vm1994_vm10, %v1990_v19, %v3356_v62  ;;  %v2024_v17 = vsel %vm1994_vm10, %v1991_v5, %v3357_v29  ;;  %v2017_v36 = vsel %vm1994_vm10, %v1984_v9, %v3351_v34  ;;  %v2018_v6 = vsel %vm1994_vm10, %v1985_v33, %v3352_v26 }
 0x1f3   : > { %v2056_v31 = vsel %vm2027_vm11, %v2023_v35, %v3366_v46  ;;  %v2057_v44 = vsel %vm2027_vm11, %v2024_v17, %v3367_v20 }
 0x1f4   : > { %v2074_v51 = vpack.c.bf16 %v2057_v44, %v2056_v31 }
 0x1f6   : > { %v3360_v1 = vpop.permute.xlu0 %3359  ;;  %2682 = vmatmul.msk.bf16.gmra.mxu3 %vm2112_vm12, %v2074_v51 }
 0x1f7   : > { %v3362_v38 = vunpack.i.h.bf16 %v3360_v1  ;;  %v3361_v18 = vunpack.i.l.bf16 %v3360_v1  ;;  %v3380_v15 = vpop.permute.xlu1 %3379 }
 0x1f8   : > { %v3382_v23 = vunpack.i.h.bf16 %v3380_v15  ;;  %v3381_v49 = vunpack.i.l.bf16 %v3380_v15 }
 0x1f9   : > { %v2050_v59 = vsel %vm2027_vm11, %v2017_v36, %v3361_v18  ;;  %v2051_v24 = vsel %vm2027_vm11, %v2018_v6, %v3362_v38 }
 0x1fa   : > { %v2071_v25 = vpack.c.bf16 %v2051_v24, %v2050_v59 }
 0x1fc   : > { %2679 = vmatmul.msk.bf16.gmra.mxu2 %vm2112_vm12, %v2071_v25 }
 0x1fe   : > { %v3375_v21 = vpop.permute.xlu0 %3374 }
 0x1ff   : > { %v3377_v54 = vunpack.i.h.bf16 %v3375_v21  ;;  %v3376_v2 = vunpack.i.l.bf16 %v3375_v21 }
 0x201   : > { %v2025_v22 = vsel %vm1994_vm10, %v1992_v0, %v3376_v2  ;;  %v2026_v32 = vsel %vm1994_vm10, %v1993_v41, %v3377_v54 }
 0x202   : > { %v2058_v11 = vsel %vm2027_vm11, %v2025_v22, %v3381_v49  ;;  %v2059_v39 = vsel %vm2027_vm11, %v2026_v32, %v3382_v23 }
 0x203   : > { %v2075_v48 = vpack.c.bf16 %v2059_v39, %v2058_v11 }
 0x206   : > { %2683 = vmatmul.msk.bf16.gmra.mxu3 %vm2112_vm12, %v2075_v48 }
 0x20a   : > { %v2174_v58 = vpop.f32.mrf.mxu0 }
 0x20b   : > { %2254 = vst.msk [vmem:[%s5009_s23] sm:$0xff] %vm1796_vm3, %v2174_v58  ;;  %v2355_v4 = vmul.f32 %v2174_v58, %v2174_v58  ;;  %v2286_v7 = vsel %vm1796_vm3, %v2174_v58, 0.0 }
 0x20d   : > { %v2387_v8 = vsel %vm1796_vm3, %v2355_v4, 0.0 }
 0x212   : > { %v2176_v56 = vpop.f32.mrf.mxu0 }
 0x213   : > { %2255 = vst.msk [vmem:[%s5009_s23 + $0x8] sm:$0xff] %vm1796_vm3, %v2176_v56  ;;  %v2287_v61 = vsel %vm1796_vm3, %v2176_v56, 0.0  ;;  %v2356_v47 = vmul.f32 %v2176_v56, %v2176_v56  ;;  %v5017_v28 = vpop.f32.mrf.mxu1 }
 0x214   : > { %v2288_v42 = vadd.f32 %v2287_v61, %v2286_v7  ;;  %2262 = vst.msk [vmem:[%s5009_s23 + $0x40] sm:$0xff] %vm1796_vm3, %v5017_v28  ;;  %v2363_v21 = vmul.f32 %v5017_v28, %v5017_v28  ;;  %v2301_v0 = vsel %vm1796_vm3, %v5017_v28, 0.0 }
 0x215   : > { %v2388_v37 = vsel %vm1796_vm3, %v2356_v47, 0.0 }
 0x216   : > { %v2389_v14 = vadd.f32 %v2388_v37, %v2387_v8  ;;  %v2402_v39 = vsel %vm1796_vm3, %v2363_v21, 0.0 }
 0x21a   : > { %v2179_v10 = vpop.f32.mrf.mxu0 }
 0x21b   : > { %2256 = vst.msk [vmem:[%s5009_s23 + $0x10] sm:$0xff] %vm1796_vm3, %v2179_v10  ;;  %v2289_v52 = vsel %vm1796_vm3, %v2179_v10, 0.0  ;;  %v2357_v43 = vmul.f32 %v2179_v10, %v2179_v10  ;;  %v5027_v57 = vpop.f32.mrf.mxu1 }
 0x21c   : > { %v2290_v50 = vadd.f32 %v2289_v52, %v2288_v42  ;;  %2263 = vst.msk [vmem:[%s5009_s23 + $0x48] sm:$0xff] %vm1796_vm3, %v5027_v57  ;;  %v2364_v41 = vmul.f32 %v5027_v57, %v5027_v57  ;;  %v2303_v48 = vsel %vm1796_vm3, %v5027_v57, 0.0 }
 0x21d   : > { %v2390_v27 = vsel %vm1796_vm3, %v2357_v43, 0.0 }
 0x21e   : > { %v2391_v60 = vadd.f32 %v2390_v27, %v2389_v14  ;;  %v2404_v7 = vsel %vm1796_vm3, %v2364_v41, 0.0 }
 0x222   : > { %v2181_v45 = vpop.f32.mrf.mxu0 }
 0x223   : > { %2257 = vst.msk [vmem:[%s5009_s23 + $0x18] sm:$0xff] %vm1796_vm3, %v2181_v45  ;;  %v2358_v35 = vmul.f32 %v2181_v45, %v2181_v45  ;;  %v2291_v40 = vsel %vm1796_vm3, %v2181_v45, 0.0 }
 0x224   : > { %v2292_v51 = vadd.f32 %v2291_v40, %v2290_v50 }
 0x225   : > { %v2392_v44 = vsel %vm1796_vm3, %v2358_v35, 0.0 }
 0x226   : > { %v2393_v18 = vadd.f32 %v2392_v44, %v2391_v60 }
 0x228   : > { %v5035_v29 = vpop.f32.mrf.mxu2 }
 0x229   : > { %2270 = vst.msk [vmem:[%s5009_s23 + $0x80] sm:$0xff] %vm1796_vm3, %v5035_v29 }
 0x22b   : > { %v2199_v62 = vpop.f32.mrf.mxu1 }
 0x22c   : > { %2264 = vst.msk [vmem:[%s5009_s23 + $0x50] sm:$0xff] %vm1796_vm3, %v2199_v62  ;;  %v2365_v58 = vmul.f32 %v2199_v62, %v2199_v62  ;;  %v2305_v61 = vsel %vm1796_vm3, %v2199_v62, 0.0 }
 0x22e   : > { %v2406_v8 = vsel %vm1796_vm3, %v2365_v58, 0.0 }
 0x230   : > { %v5042_v13 = vpop.f32.mrf.mxu2 }
 0x231   : > { %2271 = vst.msk [vmem:[%s5009_s23 + $0x88] sm:$0xff] %vm1796_vm3, %v5042_v13  ;;  %v2184_v3 = vpop.f32.mrf.mxu0 }
 0x232   : > { %2258 = vst.msk [vmem:[%s5009_s23 + $0x20] sm:$0xff] %vm1796_vm3, %v2184_v3  ;;  %v2359_v63 = vmul.f32 %v2184_v3, %v2184_v3  ;;  %v2293_v26 = vsel %vm1796_vm3, %v2184_v3, 0.0 }
 0x233   : > { %v5049_v16 = vpop.f32.mrf.mxu1  ;;  %v2294_v36 = vadd.f32 %v2293_v26, %v2292_v51 }
 0x234   : > { %2265 = vst.msk [vmem:[%s5009_s23 + $0x58] sm:$0xff] %vm1796_vm3, %v5049_v16  ;;  %v2394_v9 = vsel %vm1796_vm3, %v2359_v63, 0.0  ;;  %v2366_v14 = vmul.f32 %v5049_v16, %v5049_v16  ;;  %v2307_v10 = vsel %vm1796_vm3, %v5049_v16, 0.0 }
 0x235   : > { %v2395_v59 = vadd.f32 %v2394_v9, %v2393_v18 }
 0x236   : > { %v2408_v57 = vsel %vm1796_vm3, %v2366_v14, 0.0 }
 0x239   : > { %v2186_v12 = vpop.f32.mrf.mxu0 }
 0x23a   : > { %2259 = vst.msk [vmem:[%s5009_s23 + $0x28] sm:$0xff] %vm1796_vm3, %v2186_v12  ;;  %v2360_v34 = vmul.f32 %v2186_v12, %v2186_v12  ;;  %v2295_v33 = vsel %vm1796_vm3, %v2186_v12, 0.0 }
 0x23b   : > { %v2296_v24 = vadd.f32 %v2295_v33, %v2294_v36 }
 0x23c   : > { %v2396_v6 = vsel %vm1796_vm3, %v2360_v34, 0.0 }
 0x23d   : > { %v2397_v15 = vadd.f32 %v2396_v6, %v2395_v59  ;;  %v2372_v59 = vmul.f32 %v5042_v13, %v5042_v13 }
 0x241   : > { %v5056_v19 = vpop.f32.mrf.mxu3 }
 0x242   : > { %2278 = vst.msk [vmem:[%s5009_s23 + $0xc0] sm:$0xff] %vm1796_vm3, %v5056_v19 }
 0x247   : > { %v5061_v5 = vpop.f32.mrf.mxu2 }
 0x248   : > { %2272 = vst.msk [vmem:[%s5009_s23 + $0x90] sm:$0xff] %vm1796_vm3, %v5061_v5  ;;  %v2373_v21 = vmul.f32 %v5061_v5, %v5061_v5 }
 0x249   : > { %v5066_v20 = vpop.f32.mrf.mxu3 }
 0x24a   : > { %2279 = vst.msk [vmem:[%s5009_s23 + $0xc8] sm:$0xff] %vm1796_vm3, %v5066_v20 }
 0x24b   : > { %v5071_v46 = vpop.f32.mrf.mxu1 }
 0x24c   : > { %2266 = vst.msk [vmem:[%s5009_s23 + $0x60] sm:$0xff] %vm1796_vm3, %v5071_v46  ;;  %v2367_v50 = vmul.f32 %v5071_v46, %v5071_v46  ;;  %v2309_v62 = vsel %vm1796_vm3, %v5071_v46, 0.0 }
 0x24e   : > { %v2410_v16 = vsel %vm1796_vm3, %v2367_v50, 0.0 }
 0x24f   : > { %v5076_v17 = vpop.f32.mrf.mxu2 }
 0x250   : > { %2273 = vst.msk [vmem:[%s5009_s23 + $0x98] sm:$0xff] %vm1796_vm3, %v5076_v17 }
 0x251   : > { %v2189_v31 = vpop.f32.mrf.mxu0 }
 0x252   : > { %2260 = vst.msk [vmem:[%s5009_s23 + $0x30] sm:$0xff] %vm1796_vm3, %v2189_v31  ;;  %v2361_v38 = vmul.f32 %v2189_v31, %v2189_v31  ;;  %v2297_v55 = vsel %vm1796_vm3, %v2189_v31, 0.0 }
 0x253   : > { %v2206_v1 = vpop.f32.mrf.mxu1  ;;  %v2298_v53 = vadd.f32 %v2297_v55, %v2296_v24  ;;  %v2317_v55 = vsel %vm1796_vm3, %v5035_v29, 0.0 }
 0x254   : > { %2267 = vst.msk [vmem:[%s5009_s23 + $0x68] sm:$0xff] %vm1796_vm3, %v2206_v1  ;;  %v2398_v25 = vsel %vm1796_vm3, %v2361_v38, 0.0  ;;  %v2368_v12 = vmul.f32 %v2206_v1, %v2206_v1  ;;  %v2311_v63 = vsel %vm1796_vm3, %v2206_v1, 0.0  ;;  %v2371_v38 = vmul.f32 %v5035_v29, %v5035_v29 }
 0x255   : > { %v2399_v54 = vadd.f32 %v2398_v25, %v2397_v15  ;;  %v2420_v29 = vsel %vm1796_vm3, %v2372_v59, 0.0 }
 0x256   : > { %v2412_v34 = vsel %vm1796_vm3, %v2368_v12, 0.0 }
 0x259   : > { %v2191_v30 = vpop.f32.mrf.mxu0 }
 0x25a   : > { %2261 = vst.msk [vmem:[%s5009_s23 + $0x38] sm:$0xff] %vm1796_vm3, %v2191_v30  ;;  %v2299_v23 = vsel %vm1796_vm3, %v2191_v30, 0.0  ;;  %v2362_v49 = vmul.f32 %v2191_v30, %v2191_v30  ;;  %v2319_v30 = vsel %vm1796_vm3, %v5042_v13, 0.0  ;;  %v2422_v13 = vsel %vm1796_vm3, %v2373_v21, 0.0 }
 0x25b   : > { %v2300_v2 = vadd.f32 %v2299_v23, %v2298_v53  ;;  %v2418_v53 = vsel %vm1796_vm3, %v2371_v38, 0.0 }
 0x25c   : > { %v2400_v22 = vsel %vm1796_vm3, %v2362_v49, 0.0 }
 0x25d   : > { %v2302_v32 = vadd.f32 %v2301_v0, %v2300_v2  ;;  %v2401_v11 = vadd.f32 %v2400_v22, %v2399_v54  ;;  %v2321_v54 = vsel %vm1796_vm3, %v5061_v5, 0.0  ;;  %v2374_v2 = vmul.f32 %v5076_v17, %v5076_v17 }
 0x25f   : > { %v2304_v4 = vadd.f32 %v2303_v48, %v2302_v32  ;;  %v2403_v56 = vadd.f32 %v2402_v39, %v2401_v11  ;;  %v2323_v32 = vsel %vm1796_vm3, %v5076_v17, 0.0  ;;  %v2424_v5 = vsel %vm1796_vm3, %v2374_v2, 0.0 }
 0x261   : > { %v2306_v47 = vadd.f32 %v2305_v61, %v2304_v4  ;;  %v2405_v28 = vadd.f32 %v2404_v7, %v2403_v56  ;;  %v5108_v42 = vpop.f32.mrf.mxu3 }
 0x262   : > { %2280 = vst.msk [vmem:[%s5009_s23 + $0xd0] sm:$0xff] %vm1796_vm3, %v5108_v42  ;;  %v2337_v38 = vsel %vm1796_vm3, %v5108_v42, 0.0 }
 0x263   : > { %v2407_v37 = vadd.f32 %v2406_v8, %v2405_v28  ;;  %v2308_v43 = vadd.f32 %v2307_v10, %v2306_v47 }
 0x265   : > { %v2409_v60 = vadd.f32 %v2408_v57, %v2407_v37  ;;  %v2310_v3 = vadd.f32 %v2309_v62, %v2308_v43 }
 0x267   : > { %v2224_v52 = vpop.f32.mrf.mxu2  ;;  %v2411_v40 = vadd.f32 %v2410_v16, %v2409_v60  ;;  %v2312_v26 = vadd.f32 %v2311_v63, %v2310_v3  ;;  %v2380_v63 = vmul.f32 %v5066_v20, %v5066_v20 }
 0x268   : > { %2274 = vst.msk [vmem:[%s5009_s23 + $0xa0] sm:$0xff] %vm1796_vm3, %v2224_v52  ;;  %v2375_v11 = vmul.f32 %v2224_v52, %v2224_v52  ;;  %v2325_v58 = vsel %vm1796_vm3, %v2224_v52, 0.0 }
 0x269   : > { %v5123_v27 = vpop.f32.mrf.mxu3  ;;  %v2413_v51 = vadd.f32 %v2412_v34, %v2411_v40  ;;  %v2333_v40 = vsel %vm1796_vm3, %v5056_v19, 0.0 }
 0x26a   : > { %v2209_v45 = vpop.f32.mrf.mxu1  ;;  %2281 = vst.msk [vmem:[%s5009_s23 + $0xd8] sm:$0xff] %vm1796_vm3, %v5123_v27  ;;  %v2426_v61 = vsel %vm1796_vm3, %v2375_v11, 0.0 }
 0x26b   : > { %2268 = vst.msk [vmem:[%s5009_s23 + $0x70] sm:$0xff] %vm1796_vm3, %v2209_v45  ;;  %v2369_v35 = vmul.f32 %v2209_v45, %v2209_v45  ;;  %v2313_v31 = vsel %vm1796_vm3, %v2209_v45, 0.0  ;;  %v2379_v45 = vmul.f32 %v5056_v19, %v5056_v19 }
 0x26c   : > { %v2314_v9 = vadd.f32 %v2313_v31, %v2312_v26 }
 0x26d   : > { %v2414_v46 = vsel %vm1796_vm3, %v2369_v35, 0.0  ;;  %v2434_v34 = vsel %vm1796_vm3, %v2379_v45, 0.0 }
 0x26e   : > { %v2415_v36 = vadd.f32 %v2414_v46, %v2413_v51  ;;  %v2335_v46 = vsel %vm1796_vm3, %v5066_v20, 0.0  ;;  %v2381_v51 = vmul.f32 %v5108_v42, %v5108_v42  ;;  %v2339_v20 = vsel %vm1796_vm3, %v5123_v27, 0.0 }
 0x26f   : > { %v2226_v44 = vpop.f32.mrf.mxu2 }
 0x270   : > { %2275 = vst.msk [vmem:[%s5009_s23 + $0xa8] sm:$0xff] %vm1796_vm3, %v2226_v44  ;;  %v2376_v47 = vmul.f32 %v2226_v44, %v2226_v44  ;;  %v2327_v17 = vsel %vm1796_vm3, %v2226_v44, 0.0 }
 0x272   : > { %v2211_v33 = vpop.f32.mrf.mxu1  ;;  %v2428_v10 = vsel %vm1796_vm3, %v2376_v47, 0.0 }
 0x273   : > { %2269 = vst.msk [vmem:[%s5009_s23 + $0x78] sm:$0xff] %vm1796_vm3, %v2211_v33  ;;  %v2315_v1 = vsel %vm1796_vm3, %v2211_v33, 0.0  ;;  %v2370_v18 = vmul.f32 %v2211_v33, %v2211_v33  ;;  %v2436_v33 = vsel %vm1796_vm3, %v2380_v63, 0.0 }
 0x274   : > { %v2316_v6 = vadd.f32 %v2315_v1, %v2314_v9  ;;  %v2382_v1 = vmul.f32 %v5123_v27, %v5123_v27 }
 0x275   : > { %v2416_v24 = vsel %vm1796_vm3, %v2370_v18, 0.0 }
 0x276   : > { %v2318_v25 = vadd.f32 %v2317_v55, %v2316_v6  ;;  %v2417_v15 = vadd.f32 %v2416_v24, %v2415_v36  ;;  %v2438_v6 = vsel %vm1796_vm3, %v2381_v51, 0.0 }
 0x278   : > { %v2320_v23 = vadd.f32 %v2319_v30, %v2318_v25  ;;  %v2419_v49 = vadd.f32 %v2418_v53, %v2417_v15  ;;  %v2440_v15 = vsel %vm1796_vm3, %v2382_v1, 0.0 }
 0x279   : > { %v2244_v0 = vpop.f32.mrf.mxu3 }
 0x27a   : > { %v2322_v41 = vadd.f32 %v2321_v54, %v2320_v23  ;;  %v2421_v22 = vadd.f32 %v2420_v29, %v2419_v49  ;;  %2282 = vst.msk [vmem:[%s5009_s23 + $0xe0] sm:$0xff] %vm1796_vm3, %v2244_v0  ;;  %v2383_v55 = vmul.f32 %v2244_v0, %v2244_v0  ;;  %v2341_v53 = vsel %vm1796_vm3, %v2244_v0, 0.0 }
 0x27c   : > { %v2423_v39 = vadd.f32 %v2422_v13, %v2421_v22  ;;  %v2324_v48 = vadd.f32 %v2323_v32, %v2322_v41  ;;  %v2442_v23 = vsel %vm1796_vm3, %v2383_v55, 0.0 }
 0x27e   : > { %v2425_v4 = vadd.f32 %v2424_v5, %v2423_v39  ;;  %v2326_v7 = vadd.f32 %v2325_v58, %v2324_v48 }
 0x27f   : > { %v2229_v56 = vpop.f32.mrf.mxu2 }
 0x280   : > { %2276 = vst.msk [vmem:[%s5009_s23 + $0xb0] sm:$0xff] %vm1796_vm3, %v2229_v56  ;;  %v2427_v28 = vadd.f32 %v2426_v61, %v2425_v4  ;;  %v2377_v37 = vmul.f32 %v2229_v56, %v2229_v56  ;;  %v2328_v14 = vadd.f32 %v2327_v17, %v2326_v7  ;;  %v2329_v52 = vsel %vm1796_vm3, %v2229_v56, 0.0 }
 0x281   : > { %v2246_v8 = vpop.f32.mrf.mxu3 }
 0x282   : > { %2283 = vst.msk [vmem:[%s5009_s23 + $0xe8] sm:$0xff] %vm1796_vm3, %v2246_v8  ;;  %v2429_v43 = vadd.f32 %v2428_v10, %v2427_v28  ;;  %v2430_v57 = vsel %vm1796_vm3, %v2377_v37, 0.0  ;;  %v2330_v50 = vadd.f32 %v2329_v52, %v2328_v14  ;;  %v2384_v30 = vmul.f32 %v2246_v8, %v2246_v8 }
 0x283   : > { %v2343_v49 = vsel %vm1796_vm3, %v2246_v8, 0.0 }
 0x284   : > { %v2431_v16 = vadd.f32 %v2430_v57, %v2429_v43  ;;  %v2444_v41 = vsel %vm1796_vm3, %v2384_v30, 0.0 }
 0x287   : > { %v2231_v60 = vpop.f32.mrf.mxu2 }
 0x288   : > { %2277 = vst.msk [vmem:[%s5009_s23 + $0xb8] sm:$0xff] %vm1796_vm3, %v2231_v60  ;;  %v2331_v62 = vsel %vm1796_vm3, %v2231_v60, 0.0  ;;  %v2378_v3 = vmul.f32 %v2231_v60, %v2231_v60 }
 0x289   : > { %v2332_v12 = vadd.f32 %v2331_v62, %v2330_v50  ;;  %v2249_v35 = vpop.f32.mrf.mxu3 }
 0x28a   : > { %v2432_v31 = vsel %vm1796_vm3, %v2378_v3, 0.0  ;;  %2284 = vst.msk [vmem:[%s5009_s23 + $0xf0] sm:$0xff] %vm1796_vm3, %v2249_v35  ;;  %v2385_v29 = vmul.f32 %v2249_v35, %v2249_v35  ;;  %v2345_v22 = vsel %vm1796_vm3, %v2249_v35, 0.0 }
 0x28b   : > { %v2334_v44 = vadd.f32 %v2333_v40, %v2332_v12  ;;  %v2433_v26 = vadd.f32 %v2432_v31, %v2431_v16 }
 0x28c   : > { %v2446_v11 = vsel %vm1796_vm3, %v2385_v29, 0.0 }
 0x28d   : > { %v2336_v9 = vadd.f32 %v2335_v46, %v2334_v44  ;;  %v2435_v19 = vadd.f32 %v2434_v34, %v2433_v26 }
 0x28f   : > { %v2338_v18 = vadd.f32 %v2337_v38, %v2336_v9  ;;  %v2437_v36 = vadd.f32 %v2436_v33, %v2435_v19 }
 0x291   : > { %v2439_v59 = vadd.f32 %v2438_v6, %v2437_v36  ;;  %v2340_v24 = vadd.f32 %v2339_v20, %v2338_v18  ;;  %v2251_v25 = vpop.f32.mrf.mxu3 }
 0x292   : > { %2285 = vst.msk [vmem:[%s5009_s23 + $0xf8] sm:$0xff] %vm1796_vm3, %v2251_v25  ;;  %v2386_v54 = vmul.f32 %v2251_v25, %v2251_v25  ;;  %v2347_v13 = vsel %vm1796_vm3, %v2251_v25, 0.0 }
 0x293   : > { %v2342_v42 = vadd.f32 %v2341_v53, %v2340_v24  ;;  %v2441_v21 = vadd.f32 %v2440_v15, %v2439_v59 }
 0x294   : > { %v2448_v39 = vsel %vm1796_vm3, %v2386_v54, 0.0 }
 0x295   : > { %v2344_v27 = vadd.f32 %v2343_v49, %v2342_v42  ;;  %v2443_v2 = vadd.f32 %v2442_v23, %v2441_v21 }
 0x297   : > { %v2445_v0 = vadd.f32 %v2444_v41, %v2443_v2  ;;  %v2346_v32 = vadd.f32 %v2345_v22, %v2344_v27 }
 0x299   : > { %v2447_v48 = vadd.f32 %v2446_v11, %v2445_v0  ;;  %v2348_v5 = vadd.f32 %v2347_v13, %v2346_v32 }
 0x29b   : > { %v2349_v58 = vrot.slane %v2348_v5, 4  ;;  %v2449_v4 = vadd.f32 %v2448_v39, %v2447_v48 }
 0x29d   : > { %v2350_v56 = vadd.f32 %v2349_v58, %v2348_v5  ;;  %v2450_v7 = vrot.slane %v2449_v4, 4 }
 0x29f   : > { %v2351_v61 = vrot.slane %v2350_v56, 2  ;;  %v2451_v47 = vadd.f32 %v2450_v7, %v2449_v4 }
 0x2a1   : > { %v2352_v28 = vadd.f32 %v2351_v61, %v2350_v56  ;;  %v2452_v8 = vrot.slane %v2451_v47, 2 }
 0x2a3   : > { %v2353_v17 = vrot.slane %v2352_v28, 1  ;;  %v2453_v37 = vadd.f32 %v2452_v8, %v2451_v47 }
 0x2a5   : > { %v2454_v14 = vrot.slane %v2453_v37, 1  ;;  %v2354_v10 = vadd.f32 %v2353_v17, %v2352_v28 }
 0x2a7   : > { %v2455_v52 = vadd.f32 %v2454_v14, %v2453_v37 }
 0x2a9   : > { %v2456_v43 = vsel %vm667_vm0, %v2354_v10, %v2455_v52 }
 0x2aa   : > { %2458 = vst.msk [vmem:[%s465_s11] sm:$0x3] %vm2457_vm13, %v2456_v43 }
 0x2ab PF: > { %s18_s26 = sadd.s32 1, %s3409_s26   ;;  %s5388_s24 = smov %s3405_s25 }
 0x2ac   : > { %p15_p5 = scmp.ge.s32.totalorder %s18_s26, 4   ;;  %s5389_s25 = smov %s5391_s27 }
 0x2ae   :  { %17 = sbr.rel (!%p15_p5) target bundleno = 2 (0x2), region = 92 }

</bundles_post_ra>
